<compile_context>
chip_gen: v6e
topology: v6e:2x2x1
jax: 0.10.0
libtpu: 0.0.40
codegen_flags: <defaults>
</compile_context>

<pallas_src>
import math

import jax
import jax.numpy as jnp
from jax.experimental import pallas as pl
from jax.experimental.pallas import tpu as pltpu

# ----------------------------- config (small synthetic BERT) -----------------------------
VOCAB        = 100
HIDDEN       = 32
HEADS        = 4
HEAD_DIM     = HIDDEN // HEADS
LAYERS       = 2
INTERMEDIATE = 64
MAX_POS      = 16
QKV_PAD      = 128                       # fused QKV output lanes padded to one full vreg
LN_EPS_BERT  = 1e-12                     # HF BERT LayerNorm eps
LN_EPS_PROJ  = 1e-5                      # torch.nn.LayerNorm default eps (projection head)
ATTN_SCALE   = 1.0 / math.sqrt(HEAD_DIM)


# ----------------------------- fused encoder kernel -----------------------------
def _fused_encoder_kernel(
    x_ref,                 # [2*B*S, H]  embedded tokens (word+pos+type), pre-LayerNorm (f32)
    mask_ref,              # [2*B, S]    attention mask (1 = keep, 0 = pad), f32
    emb_g_ref, emb_b_ref,  # [1, H]      embedding LayerNorm (f32)
    wqkv_ref, bqkv_ref,    # [L, H, 128] bf16, [L, 1, 128] f32  (Q scale folded in, lane padded)
    wo_ref, bo_ref,        # [L, H, H] bf16, [L, 1, H] f32
    ln1_g_ref, ln1_b_ref,  # [L, 1, H] f32
    w1_ref, b1_ref,        # [L, H, I] bf16, [L, 1, I] f32
    w2_ref, b2_ref,        # [L, I, H] bf16, [L, 1, H] f32
    ln2_g_ref, ln2_b_ref,  # [L, 1, H] f32
    pw1_ref, pb1_ref, pg_ref, pbe_ref, pw2_ref, pb2_ref,   # projection head
    o_ref,                 # [2*B, H]    projected CLS embeddings (tower1 rows then tower2)
):
    BS = x_ref.shape[0]
    B2, S = mask_ref.shape           # B2 = 2*B (both towers stacked on the batch axis)

    def layernorm(v, g, b, eps):     # f32 VPU/EUP path on all chips
        mean = jnp.mean(v, axis=-1, keepdims=True)
        var = jnp.mean(jnp.square(v - mean), axis=-1, keepdims=True)
        return (v - mean) * jax.lax.rsqrt(var + eps) * g + b

    # --- embedding LayerNorm ---
    x = layernorm(x_ref[...].astype(jnp.float32), emb_g_ref[...], emb_b_ref[...], LN_EPS_BERT)

    # Additive key mask, hoisted out of the layer loop: [2B*HEADS, 1, S].
    mask = mask_ref[...].astype(jnp.float32)
    neg = jnp.broadcast_to(((1.0 - mask) * (-1e9))[:, None, None, :],
                           (B2, HEADS, 1, S)).reshape(B2 * HEADS, 1, S)

    # One-hot CLS-row selector (rows 0, S, 2S, ...); used once after the last attention.
    b_idx = jax.lax.broadcasted_iota(jnp.int32, (B2, BS), 0)
    n_idx = jax.lax.broadcasted_iota(jnp.int32, (B2, BS), 1)
    sel = (n_idx == b_idx * S).astype(jnp.float32)                    # [2B, 2B*S]

    for l in range(LAYERS):
        # Fused Q/K/V projection: bf16 MXU operands, one 128-lane (full vreg) output.
        qkv = jnp.dot(x.astype(jnp.bfloat16), wqkv_ref[l],
                      preferred_element_type=jnp.float32) + bqkv_ref[l]     # [BS, 128] f32

        # Head-batched split: [BS, 3H] -> [2B, 3*HEADS, S, D] -> three [2B*HEADS, S, D].
        qkvh = (qkv[:, : 3 * HIDDEN]
                .reshape(B2, S, 3 * HEADS, HEAD_DIM)
                .transpose(0, 2, 1, 3))                                     # [2B, 3*HEADS, S, D]
        qh = qkvh[:, 0:HEADS].reshape(B2 * HEADS, S, HEAD_DIM)
        kh = qkvh[:, HEADS:2 * HEADS].reshape(B2 * HEADS, S, HEAD_DIM)
        vh = qkvh[:, 2 * HEADS:3 * HEADS].reshape(B2 * HEADS, S, HEAD_DIM)

        # Batched attention (scale already folded into Q weights); softmax math in f32.
        s = jnp.einsum("bqd,bkd->bqk", qh.astype(jnp.bfloat16), kh.astype(jnp.bfloat16),
                       preferred_element_type=jnp.float32) + neg            # [2B*HEADS, S, S]
        s = s - jnp.max(s, axis=-1, keepdims=True)
        p = jnp.exp(s)
        p = p * pl.reciprocal(jnp.sum(p, axis=-1, keepdims=True), approx=True)
        c = jnp.einsum("bqk,bkd->bqd", p.astype(jnp.bfloat16), vh.astype(jnp.bfloat16),
                       preferred_element_type=jnp.float32)                  # [2B*HEADS, S, D]
        ctx = (c.reshape(B2, HEADS, S, HEAD_DIM)
               .transpose(0, 2, 1, 3)
               .reshape(-1, HIDDEN))                                        # [BS, H]

        if l == LAYERS - 1:
            # Only the CLS rows are consumed after the last attention: pool context and
            # residual now so the remaining row-wise work runs on 2B rows, not 2B*S.
            ctx = jnp.dot(sel, ctx, preferred_element_type=jnp.float32)     # [2B, H]
            x = jnp.dot(sel, x, preferred_element_type=jnp.float32)         # [2B, H]

        attn_out = jnp.dot(ctx.astype(jnp.bfloat16), wo_ref[l],
                           preferred_element_type=jnp.float32) + bo_ref[l]
        x = layernorm(attn_out + x, ln1_g_ref[l], ln1_b_ref[l], LN_EPS_BERT)

        hmid = jnp.dot(x.astype(jnp.bfloat16), w1_ref[l],
                       preferred_element_type=jnp.float32) + b1_ref[l]
        # TODO(synk): HF BERT uses exact erf-GELU; tanh approximation is used here (tiny delta).
        hmid = jax.nn.gelu(hmid, approximate=True)
        ff = jnp.dot(hmid.astype(jnp.bfloat16), w2_ref[l],
                     preferred_element_type=jnp.float32) + b2_ref[l]
        x = layernorm(ff + x, ln2_g_ref[l], ln2_b_ref[l], LN_EPS_BERT)

    # --- projection head on the pooled CLS rows: Linear -> LayerNorm -> ReLU -> Dropout(id) -> Linear ---
    y = jnp.dot(x.astype(jnp.bfloat16), pw1_ref[...],
                preferred_element_type=jnp.float32) + pb1_ref[...]
    y = layernorm(y, pg_ref[...], pbe_ref[...], LN_EPS_PROJ)
    y = jnp.maximum(y, 0.0)
    o_ref[...] = (jnp.dot(y.astype(jnp.bfloat16), pw2_ref[...],
                          preferred_element_type=jnp.float32) + pb2_ref[...]).astype(o_ref.dtype)


# ----------------------------- deterministic parameter init -----------------------------
def init_params(key):
    keys = iter(jax.random.split(key, 128))

    def dense(din, dout):
        w = jax.random.normal(next(keys), (din, dout), jnp.float32) * 0.02
        b = jnp.zeros((1, dout), jnp.float32)
        return w, b

    def ln():
        return jnp.ones((1, HIDDEN), jnp.float32), jnp.zeros((1, HIDDEN), jnp.float32)

    params = {
        "word_emb": jax.random.normal(next(keys), (VOCAB, HIDDEN), jnp.float32) * 0.02,
        "pos_emb": jax.random.normal(next(keys), (MAX_POS, HIDDEN), jnp.float32) * 0.02,
        "type_emb": jax.random.normal(next(keys), (2, HIDDEN), jnp.float32) * 0.02,
        "emb_ln": ln(),
        "layers": [],
    }
    for _ in range(LAYERS):
        params["layers"].append({
            "q": dense(HIDDEN, HIDDEN),
            "k": dense(HIDDEN, HIDDEN),
            "v": dense(HIDDEN, HIDDEN),
            "o": dense(HIDDEN, HIDDEN),
            "attn_ln": ln(),
            "ffn1": dense(HIDDEN, INTERMEDIATE),
            "ffn2": dense(INTERMEDIATE, HIDDEN),
            "ffn_ln": ln(),
        })
    pw1, pb1 = dense(HIDDEN, HIDDEN)
    pw2, pb2 = dense(HIDDEN, HIDDEN)
    pg, pbe = ln()
    params["proj"] = {"w1": pw1, "b1": pb1, "g": pg, "beta": pbe, "w2": pw2, "b2": pb2}
    return params


def prepare_fused_params(params):
    """Stack per-layer weights along a leading LAYERS axis, concatenate Q/K/V into one
    [H, 128]-lane-padded projection per layer (attention scale folded into the Q part),
    and store all matmul weights as bf16 (MXU-native); biases/LN params stay f32."""
    wqkv, bqkv, wo, bo = [], [], [], []
    ln1g, ln1b, w1, b1, w2, b2, ln2g, ln2b = [], [], [], [], [], [], [], []
    wpad = jnp.zeros((HIDDEN, QKV_PAD - 3 * HIDDEN), jnp.float32)
    bpad = jnp.zeros((1, QKV_PAD - 3 * HIDDEN), jnp.float32)
    for lyr in params["layers"]:
        wq, bq = lyr["q"]; wk, bk = lyr["k"]; wv, bv = lyr["v"]
        wqkv.append(jnp.concatenate([wq * ATTN_SCALE, wk, wv, wpad], axis=1))
        bqkv.append(jnp.concatenate([bq * ATTN_SCALE, bk, bv, bpad], axis=1))
        wo.append(lyr["o"][0]);        bo.append(lyr["o"][1])
        ln1g.append(lyr["attn_ln"][0]); ln1b.append(lyr["attn_ln"][1])
        w1.append(lyr["ffn1"][0]);     b1.append(lyr["ffn1"][1])
        w2.append(lyr["ffn2"][0]);     b2.append(lyr["ffn2"][1])
        ln2g.append(lyr["ffn_ln"][0]); ln2b.append(lyr["ffn_ln"][1])
    mat = lambda xs: jnp.stack(xs, axis=0).astype(jnp.bfloat16)   # matmul operands -> bf16
    vec = lambda xs: jnp.stack(xs, axis=0)                        # biases / LN -> f32
    return {
        "word_emb": params["word_emb"], "pos_emb": params["pos_emb"], "type_emb": params["type_emb"],
        "emb_g": params["emb_ln"][0], "emb_b": params["emb_ln"][1],
        "wqkv": mat(wqkv), "bqkv": vec(bqkv), "wo": mat(wo), "bo": vec(bo),
        "ln1_g": vec(ln1g), "ln1_b": vec(ln1b),
        "w1": mat(w1), "b1": vec(b1), "w2": mat(w2), "b2": vec(b2),
        "ln2_g": vec(ln2g), "ln2_b": vec(ln2b),
        "pw1": params["proj"]["w1"].astype(jnp.bfloat16), "pb1": params["proj"]["b1"],
        "pg": params["proj"]["g"], "pbe": params["proj"]["beta"],
        "pw2": params["proj"]["w2"].astype(jnp.bfloat16), "pb2": params["proj"]["b2"],
    }


# ----------------------------- model forward -----------------------------
@jax.jit
def siamese_forward(fp, ids1, mask1, ids2, mask2):
    B, S = ids1.shape

    # Both Siamese towers share weights -> stack them along the batch/row axis and run
    # one grid-less pallas_call (single step, no per-tower grid overhead, 2x MXU rows).
    ids = jnp.concatenate([ids1, ids2], axis=0)                      # [2B, S]
    masks = jnp.concatenate([mask1, mask2], axis=0).astype(jnp.float32)

    # Embedding-table gathers are glue in plain JAX (data-dependent lookup).
    emb = fp["word_emb"][ids]                                        # [2B, S, H]
    emb = emb + fp["pos_emb"][:S][None, :, :]
    emb = emb + fp["type_emb"][0][None, None, :]
    x = emb.reshape(2 * B * S, HIDDEN)

    weights = (fp["emb_g"], fp["emb_b"],
               fp["wqkv"], fp["bqkv"], fp["wo"], fp["bo"],
               fp["ln1_g"], fp["ln1_b"],
               fp["w1"], fp["b1"], fp["w2"], fp["b2"],
               fp["ln2_g"], fp["ln2_b"],
               fp["pw1"], fp["pb1"], fp["pg"], fp["pbe"], fp["pw2"], fp["pb2"])

    vmem_spec = pl.BlockSpec(memory_space=pltpu.MemorySpace.VMEM)    # whole array in VMEM
    n_inputs = 2 + len(weights)

    out = pl.pallas_call(
        _fused_encoder_kernel,
        out_shape=jax.ShapeDtypeStruct((2 * B, HIDDEN), jnp.float32),
        in_specs=[vmem_spec] * n_inputs,
        out_specs=vmem_spec,
    )(x, masks, *weights)

    return out[:B], out[B:]


# ----------------------------- main -----------------------------
if __name__ == "__main__":
    B, S = 2, 8
    key = jax.random.PRNGKey(0)
    k_ids1, k_ids2 = jax.random.split(key, 2)

    raw_params = init_params(jax.random.PRNGKey(42))
    fused_params = prepare_fused_params(raw_params)

    input_ids1 = jax.random.randint(k_ids1, (B, S), 0, VOCAB, dtype=jnp.int32)
    input_ids2 = jax.random.randint(k_ids2, (B, S), 0, VOCAB, dtype=jnp.int32)
    attention_mask1 = jnp.ones((B, S), jnp.int32).at[1, 6:].set(0)
    attention_mask2 = jnp.ones((B, S), jnp.int32).at[0, 5:].set(0)

    emb1, emb2 = siamese_forward(fused_params, input_ids1, attention_mask1,
                                 input_ids2, attention_mask2)
    jax.block_until_ready((emb1, emb2))
    assert emb1.shape == (B, HIDDEN) and emb2.shape == (B, HIDDEN)
    assert jnp.all(jnp.isfinite(emb1)) and jnp.all(jnp.isfinite(emb2))
    print("KERNEL_OK")
</pallas_src>

<mosaic_0001>
module attributes {stable_mosaic.version = 11 : i64} {
  func.func @_fused_encoder_kernel(%arg0: memref<32x32xf32, #tpu.memory_space<vmem>>, %arg1: memref<4x8xf32, #tpu.memory_space<vmem>>, %arg2: memref<1x32xf32, #tpu.memory_space<vmem>>, %arg3: memref<1x32xf32, #tpu.memory_space<vmem>>, %arg4: memref<2x32x128xbf16, #tpu.memory_space<vmem>>, %arg5: memref<2x1x128xf32, #tpu.memory_space<vmem>>, %arg6: memref<2x32x32xbf16, #tpu.memory_space<vmem>>, %arg7: memref<2x1x32xf32, #tpu.memory_space<vmem>>, %arg8: memref<2x1x32xf32, #tpu.memory_space<vmem>>, %arg9: memref<2x1x32xf32, #tpu.memory_space<vmem>>, %arg10: memref<2x32x64xbf16, #tpu.memory_space<vmem>>, %arg11: memref<2x1x64xf32, #tpu.memory_space<vmem>>, %arg12: memref<2x64x32xbf16, #tpu.memory_space<vmem>>, %arg13: memref<2x1x32xf32, #tpu.memory_space<vmem>>, %arg14: memref<2x1x32xf32, #tpu.memory_space<vmem>>, %arg15: memref<2x1x32xf32, #tpu.memory_space<vmem>>, %arg16: memref<32x32xbf16, #tpu.memory_space<vmem>>, %arg17: memref<1x32xf32, #tpu.memory_space<vmem>>, %arg18: memref<1x32xf32, #tpu.memory_space<vmem>>, %arg19: memref<1x32xf32, #tpu.memory_space<vmem>>, %arg20: memref<32x32xbf16, #tpu.memory_space<vmem>>, %arg21: memref<1x32xf32, #tpu.memory_space<vmem>>, %arg22: memref<4x32xf32, #tpu.memory_space<vmem>>) attributes {dimension_semantics = [], scalar_prefetch = 0 : i64, scratch_operands = 0 : i64, tpu.core_type = #tpu.core_type<tc>} {
    %c0 = arith.constant 0 : index
    %c0_0 = arith.constant 0 : index
    %0 = vector.load %arg0[%c0, %c0_0] : memref<32x32xf32, #tpu.memory_space<vmem>>, vector<32x32xf32>
    %c0_1 = arith.constant 0 : index
    %c0_2 = arith.constant 0 : index
    %1 = vector.load %arg2[%c0_1, %c0_2] : memref<1x32xf32, #tpu.memory_space<vmem>>, vector<1x32xf32>
    %c0_3 = arith.constant 0 : index
    %c0_4 = arith.constant 0 : index
    %2 = vector.load %arg3[%c0_3, %c0_4] : memref<1x32xf32, #tpu.memory_space<vmem>>, vector<1x32xf32>
    %cst = arith.constant dense<0.000000e+00> : vector<32xf32>
    %3 = vector.multi_reduction <add>, %0, %cst [1] : vector<32x32xf32> to vector<32xf32>
    %4 = vector.shape_cast %3 : vector<32xf32> to vector<32x1xf32>
    %cst_5 = arith.constant 3.200000e+01 : f32
    %5 = vector.broadcast %cst_5 : f32 to vector<32x1xf32>
    %6 = arith.divf %4, %5 : vector<32x1xf32>
    %7 = vector.broadcast %6 : vector<32x1xf32> to vector<32x32xf32>
    %8 = arith.subf %0, %7 : vector<32x32xf32>
    %9 = arith.mulf %8, %8 : vector<32x32xf32>
    %cst_6 = arith.constant dense<0.000000e+00> : vector<32xf32>
    %10 = vector.multi_reduction <add>, %9, %cst_6 [1] : vector<32x32xf32> to vector<32xf32>
    %11 = vector.shape_cast %10 : vector<32xf32> to vector<32x1xf32>
    %cst_7 = arith.constant 3.200000e+01 : f32
    %12 = vector.broadcast %cst_7 : f32 to vector<32x1xf32>
    %13 = arith.divf %11, %12 : vector<32x1xf32>
    %14 = vector.broadcast %6 : vector<32x1xf32> to vector<32x32xf32>
    %15 = arith.subf %0, %14 : vector<32x32xf32>
    %cst_8 = arith.constant 9.99999996E-13 : f32
    %16 = vector.broadcast %cst_8 : f32 to vector<32x1xf32>
    %17 = arith.addf %13, %16 : vector<32x1xf32>
    %18 = math.rsqrt %17 : vector<32x1xf32>
    %19 = vector.broadcast %18 : vector<32x1xf32> to vector<32x32xf32>
    %20 = arith.mulf %15, %19 : vector<32x32xf32>
    %21 = vector.broadcast %1 : vector<1x32xf32> to vector<32x32xf32>
    %22 = arith.mulf %20, %21 : vector<32x32xf32>
    %23 = vector.broadcast %2 : vector<1x32xf32> to vector<32x32xf32>
    %24 = arith.addf %22, %23 : vector<32x32xf32>
    %c0_9 = arith.constant 0 : index
    %c0_10 = arith.constant 0 : index
    %25 = vector.load %arg1[%c0_9, %c0_10] : memref<4x8xf32, #tpu.memory_space<vmem>>, vector<4x8xf32>
    %cst_11 = arith.constant 1.000000e+00 : f32
    %26 = vector.broadcast %cst_11 : f32 to vector<4x8xf32>
    %27 = arith.subf %26, %25 : vector<4x8xf32>
    %cst_12 = arith.constant -1.000000e+09 : f32
    %28 = vector.broadcast %cst_12 : f32 to vector<4x8xf32>
    %29 = arith.mulf %27, %28 : vector<4x8xf32>
    %30 = vector.shape_cast %29 : vector<4x8xf32> to vector<4x1x1x8xf32>
    %31 = vector.shape_cast %30 : vector<4x1x1x8xf32> to vector<4x1x1x8xf32>
    %32 = vector.broadcast %31 : vector<4x1x1x8xf32> to vector<4x4x1x8xf32>
    %33 = vector.shape_cast %32 : vector<4x4x1x8xf32> to vector<16x1x8xf32>
    %34 = tpu.iota {dimensions = array<i32: 0>} : vector<4x32xi32>
    %35 = tpu.iota {dimensions = array<i32: 1>} : vector<4x32xi32>
    %c8_i32 = arith.constant 8 : i32
    %36 = vector.broadcast %c8_i32 : i32 to vector<4x32xi32>
    %37 = arith.muli %34, %36 : vector<4x32xi32>
    %38 = arith.cmpi eq, %35, %37 : vector<4x32xi32>
    %39 = arith.extui %38 : vector<4x32xi1> to vector<4x32xi32>
    %40 = arith.sitofp %39 : vector<4x32xi32> to vector<4x32xf32>
    %41 = arith.truncf %24 : vector<32x32xf32> to vector<32x32xbf16>
    %c0_13 = arith.constant 0 : index
    %c0_14 = arith.constant 0 : index
    %c0_15 = arith.constant 0 : index
    %42 = vector.load %arg4[%c0_13, %c0_14, %c0_15] : memref<2x32x128xbf16, #tpu.memory_space<vmem>>, vector<1x32x128xbf16>
    %43 = vector.shape_cast %42 : vector<1x32x128xbf16> to vector<32x128xbf16>
    %cst_16 = arith.constant dense<0.000000e+00> : vector<32x128xf32>
    %44 = tpu.matmul %41, %43, %cst_16 {dimension_numbers = #tpu.dot_dimension_numbers<[1], [0], [0], [1], [0, 0, 1, 1], [], []>} : vector<32x32xbf16>, vector<32x128xbf16>, vector<32x128xf32> -> vector<32x128xf32>
    %c0_17 = arith.constant 0 : index
    %c0_18 = arith.constant 0 : index
    %c0_19 = arith.constant 0 : index
    %45 = vector.load %arg5[%c0_17, %c0_18, %c0_19] : memref<2x1x128xf32, #tpu.memory_space<vmem>>, vector<1x1x128xf32>
    %46 = vector.shape_cast %45 : vector<1x1x128xf32> to vector<1x128xf32>
    %47 = vector.broadcast %46 : vector<1x128xf32> to vector<32x128xf32>
    %48 = arith.addf %44, %47 : vector<32x128xf32>
    %49 = vector.extract_strided_slice %48 {offsets = [0, 0], sizes = [32, 96], strides = [1, 1]} : vector<32x128xf32> to vector<32x96xf32>
    %50 = vector.shape_cast %49 : vector<32x96xf32> to vector<4x8x12x8xf32>
    %51 = tpu.transpose %50, [0, 2, 1, 3] : vector<4x8x12x8xf32> -> vector<4x12x8x8xf32>
    %52 = vector.extract_strided_slice %51 {offsets = [0, 0, 0, 0], sizes = [4, 4, 8, 8], strides = [1, 1, 1, 1]} : vector<4x12x8x8xf32> to vector<4x4x8x8xf32>
    %53 = vector.shape_cast %52 : vector<4x4x8x8xf32> to vector<16x8x8xf32>
    %54 = vector.extract_strided_slice %51 {offsets = [0, 4, 0, 0], sizes = [4, 4, 8, 8], strides = [1, 1, 1, 1]} : vector<4x12x8x8xf32> to vector<4x4x8x8xf32>
    %55 = vector.shape_cast %54 : vector<4x4x8x8xf32> to vector<16x8x8xf32>
    %56 = vector.extract_strided_slice %51 {offsets = [0, 8, 0, 0], sizes = [4, 4, 8, 8], strides = [1, 1, 1, 1]} : vector<4x12x8x8xf32> to vector<4x4x8x8xf32>
    %57 = vector.shape_cast %56 : vector<4x4x8x8xf32> to vector<16x8x8xf32>
    %58 = arith.truncf %53 : vector<16x8x8xf32> to vector<16x8x8xbf16>
    %59 = arith.truncf %55 : vector<16x8x8xf32> to vector<16x8x8xbf16>
    "tpu.trace_start"() <{level = 10 : i32, message = "bqd,bkd->bqk"}> : () -> ()
    %cst_20 = arith.constant dense<0.000000e+00> : vector<16x8x8xf32>
    %60 = tpu.matmul %58, %59, %cst_20 {dimension_numbers = #tpu.dot_dimension_numbers<[2], [2], [1], [1], [0, 0, 0, 1, 1, 1], [0], [0]>} : vector<16x8x8xbf16>, vector<16x8x8xbf16>, vector<16x8x8xf32> -> vector<16x8x8xf32>
    "tpu.trace_stop"() : () -> ()
    %61 = vector.broadcast %33 : vector<16x1x8xf32> to vector<16x8x8xf32>
    %62 = arith.addf %60, %61 : vector<16x8x8xf32>
    %cst_21 = arith.constant dense<0xFF800000> : vector<16x8xf32>
    %63 = vector.multi_reduction <maximumf>, %62, %cst_21 [2] : vector<16x8x8xf32> to vector<16x8xf32>
    %64 = vector.shape_cast %63 : vector<16x8xf32> to vector<16x8x1xf32>
    %65 = vector.broadcast %64 : vector<16x8x1xf32> to vector<16x8x8xf32>
    %66 = arith.subf %62, %65 : vector<16x8x8xf32>
    %67 = math.exp %66 : vector<16x8x8xf32>
    %cst_22 = arith.constant dense<0.000000e+00> : vector<16x8xf32>
    %68 = vector.multi_reduction <add>, %67, %cst_22 [2] : vector<16x8x8xf32> to vector<16x8xf32>
    %69 = vector.shape_cast %68 : vector<16x8xf32> to vector<16x8x1xf32>
    %70 = tpu.reciprocal %69 {approx = true} : vector<16x8x1xf32> -> vector<16x8x1xf32>
    %71 = vector.broadcast %70 : vector<16x8x1xf32> to vector<16x8x8xf32>
    %72 = arith.mulf %67, %71 : vector<16x8x8xf32>
    %73 = arith.truncf %72 : vector<16x8x8xf32> to vector<16x8x8xbf16>
    %74 = arith.truncf %57 : vector<16x8x8xf32> to vector<16x8x8xbf16>
    "tpu.trace_start"() <{level = 10 : i32, message = "bqk,bkd->bqd"}> : () -> ()
    %cst_23 = arith.constant dense<0.000000e+00> : vector<16x8x8xf32>
    %75 = tpu.matmul %73, %74, %cst_23 {dimension_numbers = #tpu.dot_dimension_numbers<[2], [1], [1], [2], [0, 0, 0, 1, 1, 2], [0], [0]>} : vector<16x8x8xbf16>, vector<16x8x8xbf16>, vector<16x8x8xf32> -> vector<16x8x8xf32>
    "tpu.trace_stop"() : () -> ()
    %76 = vector.shape_cast %75 : vector<16x8x8xf32> to vector<4x4x8x8xf32>
    %77 = tpu.transpose %76, [0, 2, 1, 3] : vector<4x4x8x8xf32> -> vector<4x8x4x8xf32>
    %78 = vector.shape_cast %77 : vector<4x8x4x8xf32> to vector<32x32xf32>
    %79 = arith.truncf %78 : vector<32x32xf32> to vector<32x32xbf16>
    %c0_24 = arith.constant 0 : index
    %c0_25 = arith.constant 0 : index
    %c0_26 = arith.constant 0 : index
    %80 = vector.load %arg6[%c0_24, %c0_25, %c0_26] : memref<2x32x32xbf16, #tpu.memory_space<vmem>>, vector<1x32x32xbf16>
    %81 = vector.shape_cast %80 : vector<1x32x32xbf16> to vector<32x32xbf16>
    %cst_27 = arith.constant dense<0.000000e+00> : vector<32x32xf32>
    %82 = tpu.matmul %79, %81, %cst_27 {dimension_numbers = #tpu.dot_dimension_numbers<[1], [0], [0], [1], [0, 0, 1, 1], [], []>} : vector<32x32xbf16>, vector<32x32xbf16>, vector<32x32xf32> -> vector<32x32xf32>
    %c0_28 = arith.constant 0 : index
    %c0_29 = arith.constant 0 : index
    %c0_30 = arith.constant 0 : index
    %83 = vector.load %arg7[%c0_28, %c0_29, %c0_30] : memref<2x1x32xf32, #tpu.memory_space<vmem>>, vector<1x1x32xf32>
    %84 = vector.shape_cast %83 : vector<1x1x32xf32> to vector<1x32xf32>
    %85 = vector.broadcast %84 : vector<1x32xf32> to vector<32x32xf32>
    %86 = arith.addf %82, %85 : vector<32x32xf32>
    %87 = arith.addf %86, %24 : vector<32x32xf32>
    %c0_31 = arith.constant 0 : index
    %c0_32 = arith.constant 0 : index
    %c0_33 = arith.constant 0 : index
    %88 = vector.load %arg8[%c0_31, %c0_32, %c0_33] : memref<2x1x32xf32, #tpu.memory_space<vmem>>, vector<1x1x32xf32>
    %89 = vector.shape_cast %88 : vector<1x1x32xf32> to vector<1x32xf32>
    %c0_34 = arith.constant 0 : index
    %c0_35 = arith.constant 0 : index
    %c0_36 = arith.constant 0 : index
    %90 = vector.load %arg9[%c0_34, %c0_35, %c0_36] : memref<2x1x32xf32, #tpu.memory_space<vmem>>, vector<1x1x32xf32>
    %91 = vector.shape_cast %90 : vector<1x1x32xf32> to vector<1x32xf32>
    %cst_37 = arith.constant dense<0.000000e+00> : vector<32xf32>
    %92 = vector.multi_reduction <add>, %87, %cst_37 [1] : vector<32x32xf32> to vector<32xf32>
    %93 = vector.shape_cast %92 : vector<32xf32> to vector<32x1xf32>
    %cst_38 = arith.constant 3.200000e+01 : f32
    %94 = vector.broadcast %cst_38 : f32 to vector<32x1xf32>
    %95 = arith.divf %93, %94 : vector<32x1xf32>
    %96 = vector.broadcast %95 : vector<32x1xf32> to vector<32x32xf32>
    %97 = arith.subf %87, %96 : vector<32x32xf32>
    %98 = arith.mulf %97, %97 : vector<32x32xf32>
    %cst_39 = arith.constant dense<0.000000e+00> : vector<32xf32>
    %99 = vector.multi_reduction <add>, %98, %cst_39 [1] : vector<32x32xf32> to vector<32xf32>
    %100 = vector.shape_cast %99 : vector<32xf32> to vector<32x1xf32>
    %cst_40 = arith.constant 3.200000e+01 : f32
    %101 = vector.broadcast %cst_40 : f32 to vector<32x1xf32>
    %102 = arith.divf %100, %101 : vector<32x1xf32>
    %103 = vector.broadcast %95 : vector<32x1xf32> to vector<32x32xf32>
    %104 = arith.subf %87, %103 : vector<32x32xf32>
    %cst_41 = arith.constant 9.99999996E-13 : f32
    %105 = vector.broadcast %cst_41 : f32 to vector<32x1xf32>
    %106 = arith.addf %102, %105 : vector<32x1xf32>
    %107 = math.rsqrt %106 : vector<32x1xf32>
    %108 = vector.broadcast %107 : vector<32x1xf32> to vector<32x32xf32>
    %109 = arith.mulf %104, %108 : vector<32x32xf32>
    %110 = vector.broadcast %89 : vector<1x32xf32> to vector<32x32xf32>
    %111 = arith.mulf %109, %110 : vector<32x32xf32>
    %112 = vector.broadcast %91 : vector<1x32xf32> to vector<32x32xf32>
    %113 = arith.addf %111, %112 : vector<32x32xf32>
    %114 = arith.truncf %113 : vector<32x32xf32> to vector<32x32xbf16>
    %c0_42 = arith.constant 0 : index
    %c0_43 = arith.constant 0 : index
    %c0_44 = arith.constant 0 : index
    %115 = vector.load %arg10[%c0_42, %c0_43, %c0_44] : memref<2x32x64xbf16, #tpu.memory_space<vmem>>, vector<1x32x64xbf16>
    %116 = vector.shape_cast %115 : vector<1x32x64xbf16> to vector<32x64xbf16>
    %cst_45 = arith.constant dense<0.000000e+00> : vector<32x64xf32>
    %117 = tpu.matmul %114, %116, %cst_45 {dimension_numbers = #tpu.dot_dimension_numbers<[1], [0], [0], [1], [0, 0, 1, 1], [], []>} : vector<32x32xbf16>, vector<32x64xbf16>, vector<32x64xf32> -> vector<32x64xf32>
    %c0_46 = arith.constant 0 : index
    %c0_47 = arith.constant 0 : index
    %c0_48 = arith.constant 0 : index
    %118 = vector.load %arg11[%c0_46, %c0_47, %c0_48] : memref<2x1x64xf32, #tpu.memory_space<vmem>>, vector<1x1x64xf32>
    %119 = vector.shape_cast %118 : vector<1x1x64xf32> to vector<1x64xf32>
    %120 = vector.broadcast %119 : vector<1x64xf32> to vector<32x64xf32>
    %121 = arith.addf %117, %120 : vector<32x64xf32>
    %122 = arith.mulf %121, %121 : vector<32x64xf32>
    %123 = arith.mulf %121, %122 : vector<32x64xf32>
    %cst_49 = arith.constant 4.471500e-02 : f32
    %124 = vector.broadcast %cst_49 : f32 to vector<32x64xf32>
    %125 = arith.mulf %124, %123 : vector<32x64xf32>
    %126 = arith.addf %121, %125 : vector<32x64xf32>
    %cst_50 = arith.constant 0.797884583 : f32
    %127 = vector.broadcast %cst_50 : f32 to vector<32x64xf32>
    %128 = arith.mulf %127, %126 : vector<32x64xf32>
    %129 = math.tanh %128 : vector<32x64xf32>
    %cst_51 = arith.constant 1.000000e+00 : f32
    %130 = vector.broadcast %cst_51 : f32 to vector<32x64xf32>
    %131 = arith.addf %130, %129 : vector<32x64xf32>
    %cst_52 = arith.constant 5.000000e-01 : f32
    %132 = vector.broadcast %cst_52 : f32 to vector<32x64xf32>
    %133 = arith.mulf %132, %131 : vector<32x64xf32>
    %134 = arith.mulf %121, %133 : vector<32x64xf32>
    %135 = arith.truncf %134 : vector<32x64xf32> to vector<32x64xbf16>
    %c0_53 = arith.constant 0 : index
    %c0_54 = arith.constant 0 : index
    %c0_55 = arith.constant 0 : index
    %136 = vector.load %arg12[%c0_53, %c0_54, %c0_55] : memref<2x64x32xbf16, #tpu.memory_space<vmem>>, vector<1x64x32xbf16>
    %137 = vector.shape_cast %136 : vector<1x64x32xbf16> to vector<64x32xbf16>
    %cst_56 = arith.constant dense<0.000000e+00> : vector<32x32xf32>
    %138 = tpu.matmul %135, %137, %cst_56 {dimension_numbers = #tpu.dot_dimension_numbers<[1], [0], [0], [1], [0, 0, 1, 1], [], []>} : vector<32x64xbf16>, vector<64x32xbf16>, vector<32x32xf32> -> vector<32x32xf32>
    %c0_57 = arith.constant 0 : index
    %c0_58 = arith.constant 0 : index
    %c0_59 = arith.constant 0 : index
    %139 = vector.load %arg13[%c0_57, %c0_58, %c0_59] : memref<2x1x32xf32, #tpu.memory_space<vmem>>, vector<1x1x32xf32>
    %140 = vector.shape_cast %139 : vector<1x1x32xf32> to vector<1x32xf32>
    %141 = vector.broadcast %140 : vector<1x32xf32> to vector<32x32xf32>
    %142 = arith.addf %138, %141 : vector<32x32xf32>
    %143 = arith.addf %142, %113 : vector<32x32xf32>
    %c0_60 = arith.constant 0 : index
    %c0_61 = arith.constant 0 : index
    %c0_62 = arith.constant 0 : index
    %144 = vector.load %arg14[%c0_60, %c0_61, %c0_62] : memref<2x1x32xf32, #tpu.memory_space<vmem>>, vector<1x1x32xf32>
    %145 = vector.shape_cast %144 : vector<1x1x32xf32> to vector<1x32xf32>
    %c0_63 = arith.constant 0 : index
    %c0_64 = arith.constant 0 : index
    %c0_65 = arith.constant 0 : index
    %146 = vector.load %arg15[%c0_63, %c0_64, %c0_65] : memref<2x1x32xf32, #tpu.memory_space<vmem>>, vector<1x1x32xf32>
    %147 = vector.shape_cast %146 : vector<1x1x32xf32> to vector<1x32xf32>
    %cst_66 = arith.constant dense<0.000000e+00> : vector<32xf32>
    %148 = vector.multi_reduction <add>, %143, %cst_66 [1] : vector<32x32xf32> to vector<32xf32>
    %149 = vector.shape_cast %148 : vector<32xf32> to vector<32x1xf32>
    %cst_67 = arith.constant 3.200000e+01 : f32
    %150 = vector.broadcast %cst_67 : f32 to vector<32x1xf32>
    %151 = arith.divf %149, %150 : vector<32x1xf32>
    %152 = vector.broadcast %151 : vector<32x1xf32> to vector<32x32xf32>
    %153 = arith.subf %143, %152 : vector<32x32xf32>
    %154 = arith.mulf %153, %153 : vector<32x32xf32>
    %cst_68 = arith.constant dense<0.000000e+00> : vector<32xf32>
    %155 = vector.multi_reduction <add>, %154, %cst_68 [1] : vector<32x32xf32> to vector<32xf32>
    %156 = vector.shape_cast %155 : vector<32xf32> to vector<32x1xf32>
    %cst_69 = arith.constant 3.200000e+01 : f32
    %157 = vector.broadcast %cst_69 : f32 to vector<32x1xf32>
    %158 = arith.divf %156, %157 : vector<32x1xf32>
    %159 = vector.broadcast %151 : vector<32x1xf32> to vector<32x32xf32>
    %160 = arith.subf %143, %159 : vector<32x32xf32>
    %cst_70 = arith.constant 9.99999996E-13 : f32
    %161 = vector.broadcast %cst_70 : f32 to vector<32x1xf32>
    %162 = arith.addf %158, %161 : vector<32x1xf32>
    %163 = math.rsqrt %162 : vector<32x1xf32>
    %164 = vector.broadcast %163 : vector<32x1xf32> to vector<32x32xf32>
    %165 = arith.mulf %160, %164 : vector<32x32xf32>
    %166 = vector.broadcast %145 : vector<1x32xf32> to vector<32x32xf32>
    %167 = arith.mulf %165, %166 : vector<32x32xf32>
    %168 = vector.broadcast %147 : vector<1x32xf32> to vector<32x32xf32>
    %169 = arith.addf %167, %168 : vector<32x32xf32>
    %170 = arith.truncf %169 : vector<32x32xf32> to vector<32x32xbf16>
    %c1 = arith.constant 1 : index
    %c0_71 = arith.constant 0 : index
    %c0_72 = arith.constant 0 : index
    %171 = vector.load %arg4[%c1, %c0_71, %c0_72] : memref<2x32x128xbf16, #tpu.memory_space<vmem>>, vector<1x32x128xbf16>
    %172 = vector.shape_cast %171 : vector<1x32x128xbf16> to vector<32x128xbf16>
    %cst_73 = arith.constant dense<0.000000e+00> : vector<32x128xf32>
    %173 = tpu.matmul %170, %172, %cst_73 {dimension_numbers = #tpu.dot_dimension_numbers<[1], [0], [0], [1], [0, 0, 1, 1], [], []>} : vector<32x32xbf16>, vector<32x128xbf16>, vector<32x128xf32> -> vector<32x128xf32>
    %c1_74 = arith.constant 1 : index
    %c0_75 = arith.constant 0 : index
    %c0_76 = arith.constant 0 : index
    %174 = vector.load %arg5[%c1_74, %c0_75, %c0_76] : memref<2x1x128xf32, #tpu.memory_space<vmem>>, vector<1x1x128xf32>
    %175 = vector.shape_cast %174 : vector<1x1x128xf32> to vector<1x128xf32>
    %176 = vector.broadcast %175 : vector<1x128xf32> to vector<32x128xf32>
    %177 = arith.addf %173, %176 : vector<32x128xf32>
    %178 = vector.extract_strided_slice %177 {offsets = [0, 0], sizes = [32, 96], strides = [1, 1]} : vector<32x128xf32> to vector<32x96xf32>
    %179 = vector.shape_cast %178 : vector<32x96xf32> to vector<4x8x12x8xf32>
    %180 = tpu.transpose %179, [0, 2, 1, 3] : vector<4x8x12x8xf32> -> vector<4x12x8x8xf32>
    %181 = vector.extract_strided_slice %180 {offsets = [0, 0, 0, 0], sizes = [4, 4, 8, 8], strides = [1, 1, 1, 1]} : vector<4x12x8x8xf32> to vector<4x4x8x8xf32>
    %182 = vector.shape_cast %181 : vector<4x4x8x8xf32> to vector<16x8x8xf32>
    %183 = vector.extract_strided_slice %180 {offsets = [0, 4, 0, 0], sizes = [4, 4, 8, 8], strides = [1, 1, 1, 1]} : vector<4x12x8x8xf32> to vector<4x4x8x8xf32>
    %184 = vector.shape_cast %183 : vector<4x4x8x8xf32> to vector<16x8x8xf32>
    %185 = vector.extract_strided_slice %180 {offsets = [0, 8, 0, 0], sizes = [4, 4, 8, 8], strides = [1, 1, 1, 1]} : vector<4x12x8x8xf32> to vector<4x4x8x8xf32>
    %186 = vector.shape_cast %185 : vector<4x4x8x8xf32> to vector<16x8x8xf32>
    %187 = arith.truncf %182 : vector<16x8x8xf32> to vector<16x8x8xbf16>
    %188 = arith.truncf %184 : vector<16x8x8xf32> to vector<16x8x8xbf16>
    "tpu.trace_start"() <{level = 10 : i32, message = "bqd,bkd->bqk"}> : () -> ()
    %cst_77 = arith.constant dense<0.000000e+00> : vector<16x8x8xf32>
    %189 = tpu.matmul %187, %188, %cst_77 {dimension_numbers = #tpu.dot_dimension_numbers<[2], [2], [1], [1], [0, 0, 0, 1, 1, 1], [0], [0]>} : vector<16x8x8xbf16>, vector<16x8x8xbf16>, vector<16x8x8xf32> -> vector<16x8x8xf32>
    "tpu.trace_stop"() : () -> ()
    %190 = vector.broadcast %33 : vector<16x1x8xf32> to vector<16x8x8xf32>
    %191 = arith.addf %189, %190 : vector<16x8x8xf32>
    %cst_78 = arith.constant dense<0xFF800000> : vector<16x8xf32>
    %192 = vector.multi_reduction <maximumf>, %191, %cst_78 [2] : vector<16x8x8xf32> to vector<16x8xf32>
    %193 = vector.shape_cast %192 : vector<16x8xf32> to vector<16x8x1xf32>
    %194 = vector.broadcast %193 : vector<16x8x1xf32> to vector<16x8x8xf32>
    %195 = arith.subf %191, %194 : vector<16x8x8xf32>
    %196 = math.exp %195 : vector<16x8x8xf32>
    %cst_79 = arith.constant dense<0.000000e+00> : vector<16x8xf32>
    %197 = vector.multi_reduction <add>, %196, %cst_79 [2] : vector<16x8x8xf32> to vector<16x8xf32>
    %198 = vector.shape_cast %197 : vector<16x8xf32> to vector<16x8x1xf32>
    %199 = tpu.reciprocal %198 {approx = true} : vector<16x8x1xf32> -> vector<16x8x1xf32>
    %200 = vector.broadcast %199 : vector<16x8x1xf32> to vector<16x8x8xf32>
    %201 = arith.mulf %196, %200 : vector<16x8x8xf32>
    %202 = arith.truncf %201 : vector<16x8x8xf32> to vector<16x8x8xbf16>
    %203 = arith.truncf %186 : vector<16x8x8xf32> to vector<16x8x8xbf16>
    "tpu.trace_start"() <{level = 10 : i32, message = "bqk,bkd->bqd"}> : () -> ()
    %cst_80 = arith.constant dense<0.000000e+00> : vector<16x8x8xf32>
    %204 = tpu.matmul %202, %203, %cst_80 {dimension_numbers = #tpu.dot_dimension_numbers<[2], [1], [1], [2], [0, 0, 0, 1, 1, 2], [0], [0]>} : vector<16x8x8xbf16>, vector<16x8x8xbf16>, vector<16x8x8xf32> -> vector<16x8x8xf32>
    "tpu.trace_stop"() : () -> ()
    %205 = vector.shape_cast %204 : vector<16x8x8xf32> to vector<4x4x8x8xf32>
    %206 = tpu.transpose %205, [0, 2, 1, 3] : vector<4x4x8x8xf32> -> vector<4x8x4x8xf32>
    %207 = vector.shape_cast %206 : vector<4x8x4x8xf32> to vector<32x32xf32>
    %cst_81 = arith.constant dense<0.000000e+00> : vector<4x32xf32>
    %208 = tpu.matmul %40, %207, %cst_81 {dimension_numbers = #tpu.dot_dimension_numbers<[1], [0], [0], [1], [0, 0, 1, 1], [], []>} : vector<4x32xf32>, vector<32x32xf32>, vector<4x32xf32> -> vector<4x32xf32>
    %cst_82 = arith.constant dense<0.000000e+00> : vector<4x32xf32>
    %209 = tpu.matmul %40, %169, %cst_82 {dimension_numbers = #tpu.dot_dimension_numbers<[1], [0], [0], [1], [0, 0, 1, 1], [], []>} : vector<4x32xf32>, vector<32x32xf32>, vector<4x32xf32> -> vector<4x32xf32>
    %210 = arith.truncf %208 : vector<4x32xf32> to vector<4x32xbf16>
    %c1_83 = arith.constant 1 : index
    %c0_84 = arith.constant 0 : index
    %c0_85 = arith.constant 0 : index
    %211 = vector.load %arg6[%c1_83, %c0_84, %c0_85] : memref<2x32x32xbf16, #tpu.memory_space<vmem>>, vector<1x32x32xbf16>
    %212 = vector.shape_cast %211 : vector<1x32x32xbf16> to vector<32x32xbf16>
    %cst_86 = arith.constant dense<0.000000e+00> : vector<4x32xf32>
    %213 = tpu.matmul %210, %212, %cst_86 {dimension_numbers = #tpu.dot_dimension_numbers<[1], [0], [0], [1], [0, 0, 1, 1], [], []>} : vector<4x32xbf16>, vector<32x32xbf16>, vector<4x32xf32> -> vector<4x32xf32>
    %c1_87 = arith.constant 1 : index
    %c0_88 = arith.constant 0 : index
    %c0_89 = arith.constant 0 : index
    %214 = vector.load %arg7[%c1_87, %c0_88, %c0_89] : memref<2x1x32xf32, #tpu.memory_space<vmem>>, vector<1x1x32xf32>
    %215 = vector.shape_cast %214 : vector<1x1x32xf32> to vector<1x32xf32>
    %216 = vector.broadcast %215 : vector<1x32xf32> to vector<4x32xf32>
    %217 = arith.addf %213, %216 : vector<4x32xf32>
    %218 = arith.addf %217, %209 : vector<4x32xf32>
    %c1_90 = arith.constant 1 : index
    %c0_91 = arith.constant 0 : index
    %c0_92 = arith.constant 0 : index
    %219 = vector.load %arg8[%c1_90, %c0_91, %c0_92] : memref<2x1x32xf32, #tpu.memory_space<vmem>>, vector<1x1x32xf32>
    %220 = vector.shape_cast %219 : vector<1x1x32xf32> to vector<1x32xf32>
    %c1_93 = arith.constant 1 : index
    %c0_94 = arith.constant 0 : index
    %c0_95 = arith.constant 0 : index
    %221 = vector.load %arg9[%c1_93, %c0_94, %c0_95] : memref<2x1x32xf32, #tpu.memory_space<vmem>>, vector<1x1x32xf32>
    %222 = vector.shape_cast %221 : vector<1x1x32xf32> to vector<1x32xf32>
    %cst_96 = arith.constant dense<0.000000e+00> : vector<4xf32>
    %223 = vector.multi_reduction <add>, %218, %cst_96 [1] : vector<4x32xf32> to vector<4xf32>
    %224 = vector.shape_cast %223 : vector<4xf32> to vector<4x1xf32>
    %cst_97 = arith.constant 3.200000e+01 : f32
    %225 = vector.broadcast %cst_97 : f32 to vector<4x1xf32>
    %226 = arith.divf %224, %225 : vector<4x1xf32>
    %227 = vector.broadcast %226 : vector<4x1xf32> to vector<4x32xf32>
    %228 = arith.subf %218, %227 : vector<4x32xf32>
    %229 = arith.mulf %228, %228 : vector<4x32xf32>
    %cst_98 = arith.constant dense<0.000000e+00> : vector<4xf32>
    %230 = vector.multi_reduction <add>, %229, %cst_98 [1] : vector<4x32xf32> to vector<4xf32>
    %231 = vector.shape_cast %230 : vector<4xf32> to vector<4x1xf32>
    %cst_99 = arith.constant 3.200000e+01 : f32
    %232 = vector.broadcast %cst_99 : f32 to vector<4x1xf32>
    %233 = arith.divf %231, %232 : vector<4x1xf32>
    %234 = vector.broadcast %226 : vector<4x1xf32> to vector<4x32xf32>
    %235 = arith.subf %218, %234 : vector<4x32xf32>
    %cst_100 = arith.constant 9.99999996E-13 : f32
    %236 = vector.broadcast %cst_100 : f32 to vector<4x1xf32>
    %237 = arith.addf %233, %236 : vector<4x1xf32>
    %238 = math.rsqrt %237 : vector<4x1xf32>
    %239 = vector.broadcast %238 : vector<4x1xf32> to vector<4x32xf32>
    %240 = arith.mulf %235, %239 : vector<4x32xf32>
    %241 = vector.broadcast %220 : vector<1x32xf32> to vector<4x32xf32>
    %242 = arith.mulf %240, %241 : vector<4x32xf32>
    %243 = vector.broadcast %222 : vector<1x32xf32> to vector<4x32xf32>
    %244 = arith.addf %242, %243 : vector<4x32xf32>
    %245 = arith.truncf %244 : vector<4x32xf32> to vector<4x32xbf16>
    %c1_101 = arith.constant 1 : index
    %c0_102 = arith.constant 0 : index
    %c0_103 = arith.constant 0 : index
    %246 = vector.load %arg10[%c1_101, %c0_102, %c0_103] : memref<2x32x64xbf16, #tpu.memory_space<vmem>>, vector<1x32x64xbf16>
    %247 = vector.shape_cast %246 : vector<1x32x64xbf16> to vector<32x64xbf16>
    %cst_104 = arith.constant dense<0.000000e+00> : vector<4x64xf32>
    %248 = tpu.matmul %245, %247, %cst_104 {dimension_numbers = #tpu.dot_dimension_numbers<[1], [0], [0], [1], [0, 0, 1, 1], [], []>} : vector<4x32xbf16>, vector<32x64xbf16>, vector<4x64xf32> -> vector<4x64xf32>
    %c1_105 = arith.constant 1 : index
    %c0_106 = arith.constant 0 : index
    %c0_107 = arith.constant 0 : index
    %249 = vector.load %arg11[%c1_105, %c0_106, %c0_107] : memref<2x1x64xf32, #tpu.memory_space<vmem>>, vector<1x1x64xf32>
    %250 = vector.shape_cast %249 : vector<1x1x64xf32> to vector<1x64xf32>
    %251 = vector.broadcast %250 : vector<1x64xf32> to vector<4x64xf32>
    %252 = arith.addf %248, %251 : vector<4x64xf32>
    %253 = arith.mulf %252, %252 : vector<4x64xf32>
    %254 = arith.mulf %252, %253 : vector<4x64xf32>
    %cst_108 = arith.constant 4.471500e-02 : f32
    %255 = vector.broadcast %cst_108 : f32 to vector<4x64xf32>
    %256 = arith.mulf %255, %254 : vector<4x64xf32>
    %257 = arith.addf %252, %256 : vector<4x64xf32>
    %cst_109 = arith.constant 0.797884583 : f32
    %258 = vector.broadcast %cst_109 : f32 to vector<4x64xf32>
    %259 = arith.mulf %258, %257 : vector<4x64xf32>
    %260 = math.tanh %259 : vector<4x64xf32>
    %cst_110 = arith.constant 1.000000e+00 : f32
    %261 = vector.broadcast %cst_110 : f32 to vector<4x64xf32>
    %262 = arith.addf %261, %260 : vector<4x64xf32>
    %cst_111 = arith.constant 5.000000e-01 : f32
    %263 = vector.broadcast %cst_111 : f32 to vector<4x64xf32>
    %264 = arith.mulf %263, %262 : vector<4x64xf32>
    %265 = arith.mulf %252, %264 : vector<4x64xf32>
    %266 = arith.truncf %265 : vector<4x64xf32> to vector<4x64xbf16>
    %c1_112 = arith.constant 1 : index
    %c0_113 = arith.constant 0 : index
    %c0_114 = arith.constant 0 : index
    %267 = vector.load %arg12[%c1_112, %c0_113, %c0_114] : memref<2x64x32xbf16, #tpu.memory_space<vmem>>, vector<1x64x32xbf16>
    %268 = vector.shape_cast %267 : vector<1x64x32xbf16> to vector<64x32xbf16>
    %cst_115 = arith.constant dense<0.000000e+00> : vector<4x32xf32>
    %269 = tpu.matmul %266, %268, %cst_115 {dimension_numbers = #tpu.dot_dimension_numbers<[1], [0], [0], [1], [0, 0, 1, 1], [], []>} : vector<4x64xbf16>, vector<64x32xbf16>, vector<4x32xf32> -> vector<4x32xf32>
    %c1_116 = arith.constant 1 : index
    %c0_117 = arith.constant 0 : index
    %c0_118 = arith.constant 0 : index
    %270 = vector.load %arg13[%c1_116, %c0_117, %c0_118] : memref<2x1x32xf32, #tpu.memory_space<vmem>>, vector<1x1x32xf32>
    %271 = vector.shape_cast %270 : vector<1x1x32xf32> to vector<1x32xf32>
    %272 = vector.broadcast %271 : vector<1x32xf32> to vector<4x32xf32>
    %273 = arith.addf %269, %272 : vector<4x32xf32>
    %274 = arith.addf %273, %244 : vector<4x32xf32>
    %c1_119 = arith.constant 1 : index
    %c0_120 = arith.constant 0 : index
    %c0_121 = arith.constant 0 : index
    %275 = vector.load %arg14[%c1_119, %c0_120, %c0_121] : memref<2x1x32xf32, #tpu.memory_space<vmem>>, vector<1x1x32xf32>
    %276 = vector.shape_cast %275 : vector<1x1x32xf32> to vector<1x32xf32>
    %c1_122 = arith.constant 1 : index
    %c0_123 = arith.constant 0 : index
    %c0_124 = arith.constant 0 : index
    %277 = vector.load %arg15[%c1_122, %c0_123, %c0_124] : memref<2x1x32xf32, #tpu.memory_space<vmem>>, vector<1x1x32xf32>
    %278 = vector.shape_cast %277 : vector<1x1x32xf32> to vector<1x32xf32>
    %cst_125 = arith.constant dense<0.000000e+00> : vector<4xf32>
    %279 = vector.multi_reduction <add>, %274, %cst_125 [1] : vector<4x32xf32> to vector<4xf32>
    %280 = vector.shape_cast %279 : vector<4xf32> to vector<4x1xf32>
    %cst_126 = arith.constant 3.200000e+01 : f32
    %281 = vector.broadcast %cst_126 : f32 to vector<4x1xf32>
    %282 = arith.divf %280, %281 : vector<4x1xf32>
    %283 = vector.broadcast %282 : vector<4x1xf32> to vector<4x32xf32>
    %284 = arith.subf %274, %283 : vector<4x32xf32>
    %285 = arith.mulf %284, %284 : vector<4x32xf32>
    %cst_127 = arith.constant dense<0.000000e+00> : vector<4xf32>
    %286 = vector.multi_reduction <add>, %285, %cst_127 [1] : vector<4x32xf32> to vector<4xf32>
    %287 = vector.shape_cast %286 : vector<4xf32> to vector<4x1xf32>
    %cst_128 = arith.constant 3.200000e+01 : f32
    %288 = vector.broadcast %cst_128 : f32 to vector<4x1xf32>
    %289 = arith.divf %287, %288 : vector<4x1xf32>
    %290 = vector.broadcast %282 : vector<4x1xf32> to vector<4x32xf32>
    %291 = arith.subf %274, %290 : vector<4x32xf32>
    %cst_129 = arith.constant 9.99999996E-13 : f32
    %292 = vector.broadcast %cst_129 : f32 to vector<4x1xf32>
    %293 = arith.addf %289, %292 : vector<4x1xf32>
    %294 = math.rsqrt %293 : vector<4x1xf32>
    %295 = vector.broadcast %294 : vector<4x1xf32> to vector<4x32xf32>
    %296 = arith.mulf %291, %295 : vector<4x32xf32>
    %297 = vector.broadcast %276 : vector<1x32xf32> to vector<4x32xf32>
    %298 = arith.mulf %296, %297 : vector<4x32xf32>
    %299 = vector.broadcast %278 : vector<1x32xf32> to vector<4x32xf32>
    %300 = arith.addf %298, %299 : vector<4x32xf32>
    %301 = arith.truncf %300 : vector<4x32xf32> to vector<4x32xbf16>
    %c0_130 = arith.constant 0 : index
    %c0_131 = arith.constant 0 : index
    %302 = vector.load %arg16[%c0_130, %c0_131] : memref<32x32xbf16, #tpu.memory_space<vmem>>, vector<32x32xbf16>
    %cst_132 = arith.constant dense<0.000000e+00> : vector<4x32xf32>
    %303 = tpu.matmul %301, %302, %cst_132 {dimension_numbers = #tpu.dot_dimension_numbers<[1], [0], [0], [1], [0, 0, 1, 1], [], []>} : vector<4x32xbf16>, vector<32x32xbf16>, vector<4x32xf32> -> vector<4x32xf32>
    %c0_133 = arith.constant 0 : index
    %c0_134 = arith.constant 0 : index
    %304 = vector.load %arg17[%c0_133, %c0_134] : memref<1x32xf32, #tpu.memory_space<vmem>>, vector<1x32xf32>
    %305 = vector.broadcast %304 : vector<1x32xf32> to vector<4x32xf32>
    %306 = arith.addf %303, %305 : vector<4x32xf32>
    %c0_135 = arith.constant 0 : index
    %c0_136 = arith.constant 0 : index
    %307 = vector.load %arg18[%c0_135, %c0_136] : memref<1x32xf32, #tpu.memory_space<vmem>>, vector<1x32xf32>
    %c0_137 = arith.constant 0 : index
    %c0_138 = arith.constant 0 : index
    %308 = vector.load %arg19[%c0_137, %c0_138] : memref<1x32xf32, #tpu.memory_space<vmem>>, vector<1x32xf32>
    %cst_139 = arith.constant dense<0.000000e+00> : vector<4xf32>
    %309 = vector.multi_reduction <add>, %306, %cst_139 [1] : vector<4x32xf32> to vector<4xf32>
    %310 = vector.shape_cast %309 : vector<4xf32> to vector<4x1xf32>
    %cst_140 = arith.constant 3.200000e+01 : f32
    %311 = vector.broadcast %cst_140 : f32 to vector<4x1xf32>
    %312 = arith.divf %310, %311 : vector<4x1xf32>
    %313 = vector.broadcast %312 : vector<4x1xf32> to vector<4x32xf32>
    %314 = arith.subf %306, %313 : vector<4x32xf32>
    %315 = arith.mulf %314, %314 : vector<4x32xf32>
    %cst_141 = arith.constant dense<0.000000e+00> : vector<4xf32>
    %316 = vector.multi_reduction <add>, %315, %cst_141 [1] : vector<4x32xf32> to vector<4xf32>
    %317 = vector.shape_cast %316 : vector<4xf32> to vector<4x1xf32>
    %cst_142 = arith.constant 3.200000e+01 : f32
    %318 = vector.broadcast %cst_142 : f32 to vector<4x1xf32>
    %319 = arith.divf %317, %318 : vector<4x1xf32>
    %320 = vector.broadcast %312 : vector<4x1xf32> to vector<4x32xf32>
    %321 = arith.subf %306, %320 : vector<4x32xf32>
    %cst_143 = arith.constant 9.99999974E-6 : f32
    %322 = vector.broadcast %cst_143 : f32 to vector<4x1xf32>
    %323 = arith.addf %319, %322 : vector<4x1xf32>
    %324 = math.rsqrt %323 : vector<4x1xf32>
    %325 = vector.broadcast %324 : vector<4x1xf32> to vector<4x32xf32>
    %326 = arith.mulf %321, %325 : vector<4x32xf32>
    %327 = vector.broadcast %307 : vector<1x32xf32> to vector<4x32xf32>
    %328 = arith.mulf %326, %327 : vector<4x32xf32>
    %329 = vector.broadcast %308 : vector<1x32xf32> to vector<4x32xf32>
    %330 = arith.addf %328, %329 : vector<4x32xf32>
    %cst_144 = arith.constant 0.000000e+00 : f32
    %331 = vector.broadcast %cst_144 : f32 to vector<4x32xf32>
    %332 = arith.maximumf %330, %331 : vector<4x32xf32>
    %333 = arith.truncf %332 : vector<4x32xf32> to vector<4x32xbf16>
    %c0_145 = arith.constant 0 : index
    %c0_146 = arith.constant 0 : index
    %334 = vector.load %arg20[%c0_145, %c0_146] : memref<32x32xbf16, #tpu.memory_space<vmem>>, vector<32x32xbf16>
    %cst_147 = arith.constant dense<0.000000e+00> : vector<4x32xf32>
    %335 = tpu.matmul %333, %334, %cst_147 {dimension_numbers = #tpu.dot_dimension_numbers<[1], [0], [0], [1], [0, 0, 1, 1], [], []>} : vector<4x32xbf16>, vector<32x32xbf16>, vector<4x32xf32> -> vector<4x32xf32>
    %c0_148 = arith.constant 0 : index
    %c0_149 = arith.constant 0 : index
    %336 = vector.load %arg21[%c0_148, %c0_149] : memref<1x32xf32, #tpu.memory_space<vmem>>, vector<1x32xf32>
    %337 = vector.broadcast %336 : vector<1x32xf32> to vector<4x32xf32>
    %338 = arith.addf %335, %337 : vector<4x32xf32>
    %c0_150 = arith.constant 0 : index
    %c0_151 = arith.constant 0 : index
    %339 = vector.load %arg22[%c0_150, %c0_151] : memref<4x32xf32, #tpu.memory_space<vmem>>, vector<4x32xf32>
    tpu.vector_store %arg22[%c0_150, %c0_151], %338 {strides = array<i32>} : memref<4x32xf32, #tpu.memory_space<vmem>>, vector<4x32xf32>,
    return
  }
}

</mosaic_0001>

<bundles_post_ra>
// kernel: siamese_forward.1
= control target key start
LH: loop header
LB: loop body
LE: loop exit
PB: predicated region body
PF: predicated region fallthrough
CT: control target
= control target key end

     0   :  { %vm78_vm0 = vcmask 261120   ;;  %s10765_s24 = smov 96   ;;  %s10767_s26 = smov 120   ;;  %vm10772_vm1 = vmmov 0   ;;  %vm2088_vm2 = vcmask 64512   ;;  %vm3036_vm3 = vcmask 1043456   ;;  %s13321_s0 = inlined_call_operand.vmem [shape: f32[32,32], index: 0, kind: input, shape index: {}]   ;;  %s13322_s4 = inlined_call_operand.vmem [shape: bf16[2,32,128], index: 4, kind: input, shape index: {}]   ;;  %s13323_s2 = inlined_call_operand.vmem [shape: f32[1,32], index: 2, kind: input, shape index: {}]   ;;  %s13324_s3 = inlined_call_operand.vmem [shape: f32[1,32], index: 3, kind: input, shape index: {}]   ;;  %s13325_s5 = inlined_call_operand.vmem [shape: f32[2,1,128], index: 5, kind: input, shape index: {}]   ;;  %s13326_s1 = inlined_call_operand.vmem [shape: f32[4,8], index: 1, kind: input, shape index: {}]   ;;  %s13327_s6 = inlined_call_operand.vmem [shape: bf16[2,32,32], index: 6, kind: input, shape index: {}]   ;;  %s13328_s7 = inlined_call_operand.vmem [shape: f32[2,1,32], index: 7, kind: input, shape index: {}]   ;;  %s13329_s10 = inlined_call_operand.vmem [shape: bf16[2,32,64], index: 10, kind: input, shape index: {}]   ;;  %s13330_s8 = inlined_call_operand.vmem [shape: f32[2,1,32], index: 8, kind: input, shape index: {}]   ;;  %s13331_s9 = inlined_call_operand.vmem [shape: f32[2,1,32], index: 9, kind: input, shape index: {}]   ;;  %s13332_s12 = inlined_call_operand.vmem [shape: bf16[2,64,32], index: 12, kind: input, shape index: {}]   ;;  %s13333_s11 = inlined_call_operand.vmem [shape: f32[2,1,64], index: 11, kind: input, shape index: {}]   ;;  %s13334_s13 = inlined_call_operand.vmem [shape: f32[2,1,32], index: 13, kind: input, shape index: {}]   ;;  %s13335_s14 = inlined_call_operand.vmem [shape: f32[2,1,32], index: 14, kind: input, shape index: {}]   ;;  %s13336_s15 = inlined_call_operand.vmem [shape: f32[2,1,32], index: 15, kind: input, shape index: {}]   ;;  %s13337_s16 = inlined_call_operand.vmem [shape: bf16[32,32], index: 16, kind: input, shape index: {}]   ;;  %s13338_s17 = inlined_call_operand.vmem [shape: f32[1,32], index: 17, kind: input, shape index: {}]   ;;  %s13339_s20 = inlined_call_operand.vmem [shape: bf16[32,32], index: 20, kind: input, shape index: {}]   ;;  %s13340_s18 = inlined_call_operand.vmem [shape: f32[1,32], index: 18, kind: input, shape index: {}]   ;;  %s13341_s19 = inlined_call_operand.vmem [shape: f32[1,32], index: 19, kind: input, shape index: {}]   ;;  %s13342_s21 = inlined_call_operand.vmem [shape: f32[1,32], index: 21, kind: input, shape index: {}]   ;;  %s13343_s22 = inlined_call_operand.vmem [shape: f32[4,32], index: 22, kind: output, shape index: {}]  }
   0x1   :  { %13368 = sst [smem:[#allocation2_spill]] %s13321_s0  ;;  %s13358_s27 = smov 104   ;;  %vm4366_vm4 = vcmask 130048   ;;  %vm4371_vm5 = vcmask 195584   ;;  %vm4691_vm6 = vcmask 523264   ;;  %vm9208_vm8 = vcmask 257024  }
   0x2   :  { %13369 = sst [smem:[#allocation3_spill]] %s13322_s4  ;;  %s10764_s4 = smov 88  }
   0x3   :  { %13370 = sst [smem:[#allocation4_spill]] %s13323_s2  ;;  %s13366_s2 = smov 72  }
   0x4   :  { %13371 = sst [smem:[#allocation5_spill]] %s13324_s3  ;;  %s13348_s3 = smov 112  }
   0x5   :  { %13372 = sst [smem:[#allocation6_spill]] %s13325_s5  ;;  %s13352_s30 = smov 48  }
   0x6   :  { %13373 = sst [smem:[#allocation7_spill]] %s13326_s1  ;;  %s13362_s0 = smov 16  }
   0x7   :  { %13374 = sst [smem:[#allocation8_spill]] %s13327_s6  ;;  %s10766_s6 = smov 80  }
   0x8   :  { %s13375_s29 = sld [smem:[#allocation2_spill]]  ;;  %s13360_s1 = smov 24  }
   0x9   :  { %s13376_s25 = sld [smem:[#allocation3_spill]] }
   0xa   :  { %s13377_s28 = sld [smem:[#allocation4_spill]] }
   0xb   :  { %s13378_s5 = sld [smem:[#allocation5_spill]] }
   0xc   :  { %s13379_s23 = sld [smem:[#allocation6_spill]] }
   0xe   :  { %v72_v0 = vld [vmem:[%s13375_s29] sm:$0xff]  ;;  %v74_v1 = vld [vmem:[%s13375_s29 + $0x10] sm:$0xff]  ;;  %v73_v2 = vld [vmem:[%s13375_s29 + $0x8] sm:$0xff] }
   0xf   :  { %v79_v3 = vsel %vm78_vm0, %v72_v0, 0.0  ;;  %v85_v4 = vsel %vm78_vm0, %v74_v1, 0.0  ;;  %v75_v5 = vld [vmem:[%s13375_s29 + $0x18] sm:$0xff]  ;;  %v82_v6 = vsel %vm78_vm0, %v73_v2, 0.0  ;;  %v10572_v28 = vld [vmem:[%s13376_s25 + $0x8] sm:$0xff]   ;;  %v10573_v29 = vld [vmem:[%s13376_s25] sm:$0xff]  }
  0x10   :  { %80 = vadd.xlane.f32.xlu0 %v79_v3  ;;  %86 = vadd.xlane.f32.xlu1 %v85_v4  ;;  %v88_v7 = vsel %vm78_vm0, %v75_v5, 0.0  ;;  %v9600_v44 = vld [vmem:[%s13377_s28] ss:$0 sm:$0xff]  ;;  %s13356_s28 = smov 64   ;;  %s13354_s29 = smov 56  }
  0x11   :  { %10029 = vmatprep.subr.bf16.mxu0 %v10572_v28  ;;  %v9601_v49 = vld [vmem:[%s13378_s5] ss:$0 sm:$0xff]  ;;  %s13350_s5 = smov 40  }
  0x12   :  { %10030 = vmatpush3.bf16.msra.mxu0 %v10572_v28  ;;  %v9603_v63 = vld [vmem:[%s13379_s23] ss:$0 sm:$0xff] }
  0x13   :  { %10031 = vmatprep.subr.bf16.mxu0 %v10573_v29 }
  0x14   :  { %83 = vadd.xlane.f32.xlu0 %v82_v6  ;;  %89 = vadd.xlane.f32.xlu1 %v88_v7 }
  0x16   :  { %10032 = vmatpush3.bf16.msra.mxu0 %v10573_v29 }
  0x99   :  { %v81_v8 = vpop.xlane.xlu0 %80  ;;  %v87_v9 = vpop.xlane.xlu1 %86 }
  0x9a   :  { %v92_v10 = vmul.f32 0.03125, %v81_v8  ;;  %v94_v11 = vmul.f32 0.03125, %v87_v9  ;;  %v159_v8 = vlaneseq  ;;  %v10777_v9 = vmov 1983009808  }
  0x9c   :  { %v96_v12 = vsub.f32 %v72_v0, %v92_v10  ;;  %v98_v13 = vsub.f32 %v74_v1, %v94_v11  ;;  %v407_v10 = vunpack.c.l.s4 %v10777_v9 }
  0x9d   :  { %v84_v14 = vpop.xlane.xlu0 %83  ;;  %v90_v15 = vpop.xlane.xlu1 %89 }
  0x9e   :  { %v93_v16 = vmul.f32 0.03125, %v84_v14  ;;  %v95_v17 = vmul.f32 0.03125, %v90_v15  ;;  %v100_v18 = vmul.f32 %v96_v12, %v96_v12  ;;  %v102_v19 = vmul.f32 %v98_v13, %v98_v13 }
  0x9f   :  { %v408_v14 = vunpack.c.0.s8 %v407_v10  ;;  %v10778_v15 = vmov 1934713408  }
  0xa0   :  { %v97_v20 = vsub.f32 %v73_v2, %v93_v16  ;;  %v99_v21 = vsub.f32 %v75_v5, %v95_v17  ;;  %v104_v22 = vsel %vm78_vm0, %v100_v18, 0.0  ;;  %v110_v23 = vsel %vm78_vm0, %v102_v19, 0.0 }
  0xa1   :  { %105 = vadd.xlane.f32.xlu0 %v104_v22  ;;  %v10771_v5 = vmov 0.0   ;;  %v471_v16 = vunpack.c.l.s4 %v10778_v15 }
  0xa2   :  { %v101_v24 = vmul.f32 %v97_v20, %v97_v20  ;;  %v103_v25 = vmul.f32 %v99_v21, %v99_v21  ;;  %10037 = vmatprep.subr.bf16.mxu1 %v10771_v5  ;;  %10043 = vmatprep.subr.bf16.mxu0 %v10771_v5 }
  0xa3   :  { %10039 = vmatprep.mubr.msk.bf16.mxu1 %vm10772_vm1, %v10771_v5 }
  0xa4   :  { %v107_v26 = vsel %vm78_vm0, %v101_v24, 0.0  ;;  %v113_v27 = vsel %vm78_vm0, %v103_v25, 0.0 }
  0xa5   :  { %111 = vadd.xlane.f32.xlu0 %v110_v23  ;;  %108 = vadd.xlane.f32.xlu1 %v107_v26 }
  0xa9   :  { %114 = vadd.xlane.f32.xlu1 %v113_v27 }
 0x12a   :  { %v106_v30 = vpop.xlane.xlu0 %105 }
 0x12b   :  { %v116_v31 = vmul.f32 0.03125, %v106_v30 }
 0x12d   :  { %v120_v32 = vadd.f32 1e-12, %v116_v31 }
 0x12e   :  { %v109_v33 = vpop.xlane.xlu1 %108  ;;  %v112_v34 = vpop.xlane.xlu0 %111 }
 0x12f   :  { %10596 = vrsqrt.f32 %v120_v32  ;;  %v117_v35 = vmul.f32 0.03125, %v109_v33  ;;  %v118_v36 = vmul.f32 0.03125, %v112_v34 }
 0x131   :  { %v121_v37 = vadd.f32 1e-12, %v117_v35  ;;  %v122_v38 = vadd.f32 1e-12, %v118_v36 }
 0x132   :  { %v115_v39 = vpop.xlane.xlu1 %114 }
 0x133   :  { %10598 = vrsqrt.f32 %v121_v37  ;;  %v119_v40 = vmul.f32 0.03125, %v115_v39 }
 0x134   :  { %10600 = vrsqrt.f32 %v122_v38 }
 0x135   :  { %v123_v41 = vadd.f32 1e-12, %v119_v40 }
 0x137   :  { %10602 = vrsqrt.f32 %v123_v41 }
 0x13c   :  { %v10597_v42 = vpop.eup %10596 }
 0x13d   :  { %v128_v43 = vmul.f32 %v10597_v42, %v96_v12 }
 0x13f   :  { %v138_v48 = vmul.f32 %v9600_v44, %v128_v43 }
 0x140   :  { %v10599_v45 = vpop.eup %10598 }
 0x141   :  { %v10601_v46 = vpop.eup %10600  ;;  %v129_v47 = vmul.f32 %v10599_v45, %v97_v20  ;;  %v10930_v53 = vadd.f32 %v9601_v49, %v138_v48 }
 0x142   :  { %v130_v50 = vmul.f32 %v10601_v46, %v98_v13  ;;  %v11034_v13 = vshrl.u32 %v159_v8, 7 }
 0x143   :  { %v139_v51 = vmul.f32 %v9600_v44, %v129_v47 }
 0x144   :  { %v10603_v52 = vpop.eup %10602  ;;  %v140_v56 = vmul.f32 %v9600_v44, %v130_v50  ;;  %v11037_v19 = vsub.s32 %v408_v14, %v11034_v13 }
 0x145   :  { %v10932_v54 = vadd.f32 %v9601_v49, %v139_v51  ;;  %v131_v55 = vmul.f32 %v10603_v52, %v99_v21  ;;  %v472_v21 = vunpack.c.0.s8 %v471_v16 }
 0x146   :  { %v10937_v59 = vadd.f32 %v9601_v49, %v140_v56 }
 0x147   :  { %v188_v57 = vpack.c.bf16 %v10932_v54, %v10930_v53  ;;  %v141_v58 = vmul.f32 %v9600_v44, %v131_v55  ;;  %v11041_v28 = vsub.s32 %v472_v21, %v11034_v13 }
 0x149   :  { %10033 = vmatprep.mubr.msk.bf16.mxu0 %vm78_vm0, %v188_v57  ;;  %v10939_v60 = vadd.f32 %v9601_v49, %v141_v58 }
 0x14b   :  { %v189_v61 = vpack.c.bf16 %v10939_v60, %v10937_v59 }
 0x14d   :  { %10034 = vmatmul.mubr.msk.bf16.vlgmr.msra.gmra.mxu0 %vm78_vm0, %v189_v61 }
 0x14e   :  { %10045 = vmatprep.mubr.msk.bf16.mxu0 %vm10772_vm1, %v10771_v5 }
 0x20d   :  { %v10035_v62 = vpop.f32.mrf.mxu0 }
 0x20e   :  { %v10977_v6 = vadd.f32 %v10035_v62, %v9603_v63 }
 0x20f   :  { %v253_v0 = vpop.f32.mrf.mxu0 }
 0x210   :  { %v10947_v1 = vadd.f32 %v9603_v63, %v253_v0 }
 0x211   :  { %v10036_v2 = vpop.f32.mrf.mxu0 }
 0x212   :  { %320 = vrot.lane.b32.xlu1 %v10947_v1, %s10764_s4  ;;  %308 = vrot.lane.b32.xlu0 %v10947_v1, %s10765_s24  ;;  %v10999_v7 = vadd.f32 %v10036_v2, %v9603_v63 }
 0x213   :  { %v256_v3 = vpop.f32.mrf.mxu0 }
 0x214   :  { %v10961_v4 = vadd.f32 %v9603_v63, %v256_v3 }
 0x216   :  { %332 = vrot.lane.b32.xlu1 %v10947_v1, %s10766_s6  ;;  %272 = vrot.lane.b32.xlu0 %v10947_v1, %s10767_s26 }
 0x21a   :  { %344 = vrot.lane.b32.xlu1 %v10947_v1, %s13366_s2  ;;  %296 = vrot.lane.b32.xlu0 %v10947_v1, %s13358_s27 }
 0x21e   :  { %284 = vrot.lane.b32.xlu1 %v10947_v1, %s13348_s3  ;;  %322 = vrot.lane.b32.xlu0 %v10961_v4, %s10764_s4 }
 0x222   :  { %310 = vrot.lane.b32.xlu1 %v10961_v4, %s10765_s24  ;;  %346 = vrot.lane.b32.xlu0 %v10961_v4, %s13366_s2 }
 0x226   :  { %334 = vrot.lane.b32.xlu1 %v10961_v4, %s10766_s6  ;;  %286 = vrot.lane.b32.xlu0 %v10961_v4, %s13348_s3 }
 0x22a   :  { %274 = vrot.lane.b32.xlu1 %v10961_v4, %s10767_s26  ;;  %312 = vrot.lane.b32.xlu0 %v10977_v6, %s10765_s24 }
 0x22e   :  { %298 = vrot.lane.b32.xlu1 %v10961_v4, %s13358_s27  ;;  %336 = vrot.lane.b32.xlu0 %v10977_v6, %s10766_s6 }
 0x232   :  { %324 = vrot.lane.b32.xlu1 %v10977_v6, %s10764_s4  ;;  %276 = vrot.lane.b32.xlu0 %v10977_v6, %s10767_s26 }
 0x236   :  { %348 = vrot.lane.b32.xlu1 %v10977_v6, %s13366_s2  ;;  %300 = vrot.lane.b32.xlu0 %v10977_v6, %s13358_s27 }
 0x23a   :  { %288 = vrot.lane.b32.xlu1 %v10977_v6, %s13348_s3  ;;  %326 = vrot.lane.b32.xlu0 %v10999_v7, %s10764_s4 }
 0x23e   :  { %314 = vrot.lane.b32.xlu1 %v10999_v7, %s10765_s24  ;;  %350 = vrot.lane.b32.xlu0 %v10999_v7, %s13366_s2 }
 0x242   :  { %338 = vrot.lane.b32.xlu1 %v10999_v7, %s10766_s6  ;;  %290 = vrot.lane.b32.xlu0 %v10999_v7, %s13348_s3  ;;  %s13380_s3 = sld [smem:[#allocation7_spill]] }
 0x246   :  { %278 = vrot.lane.b32.xlu1 %v10999_v7, %s10767_s26  ;;  %356 = vrot.lane.b32.xlu0 %v10947_v1, %s13356_s28 }
 0x24a   :  { %302 = vrot.lane.b32.xlu1 %v10999_v7, %s13358_s27  ;;  %358 = vrot.lane.b32.xlu0 %v10961_v4, %s13356_s28  ;;  %s13384_s27 = smov 112  }
 0x24e   :  { %368 = vrot.lane.b32.xlu1 %v10947_v1, %s13354_s29 }
 0x252   :  { %380 = vrot.lane.b32.xlu1 %v10947_v1, %s13352_s30 }
 0x256   :  { %392 = vrot.lane.b32.xlu1 %v10947_v1, %s13350_s5 }
 0x25a   :  { %370 = vrot.lane.b32.xlu1 %v10961_v4, %s13354_s29 }
 0x25e   :  { %382 = vrot.lane.b32.xlu1 %v10961_v4, %s13352_s30 }
 0x262   :  { %394 = vrot.lane.b32.xlu1 %v10961_v4, %s13350_s5 }
 0x284   :  { %v321_v11 = vpop.permute.xlu1 %320  ;;  %v309_v12 = vpop.permute.xlu0 %308 }
 0x288   :  { %v333_v17 = vpop.permute.xlu1 %332  ;;  %v273_v18 = vpop.permute.xlu0 %272 }
 0x289   :  { %v436_v20 = vcombine.low %v309_v12, %v333_v17  ;;  %v437_v26 = vcombine.high %v309_v12, %v333_v17 }
 0x28b   :  { %v444_v27 = vrot.slane %v436_v20, %v11037_v19  ;;  %v451_v39 = vrot.slane %v437_v26, %v11037_v19 }
 0x28c   :  { %v345_v22 = vpop.permute.xlu1 %344  ;;  %v297_v23 = vpop.permute.xlu0 %296 }
 0x28d   :  { %v452_v24 = vcombine.low %v321_v11, %v345_v22  ;;  %v453_v25 = vcombine.high %v321_v11, %v345_v22  ;;  %v420_v30 = vcombine.low %v273_v18, %v297_v23  ;;  %v421_v31 = vcombine.high %v273_v18, %v297_v23 }
 0x28f   :  { %v460_v29 = vrot.slane %v452_v24, %v11037_v19  ;;  %v467_v34 = vrot.slane %v453_v25, %v11037_v19  ;;  %v428_v42 = vrot.slane %v420_v30, %v11037_v19  ;;  %v435_v43 = vrot.slane %v421_v31, %v11037_v19 }
 0x290   :  { %v285_v32 = vpop.permute.xlu1 %284  ;;  %v323_v33 = vpop.permute.xlu0 %322 }
 0x291   :  { %v500_v35 = vcombine.low %v444_v27, %v460_v29  ;;  %v501_v36 = vcombine.high %v444_v27, %v460_v29  ;;  %v404_v37 = vcombine.low %v10947_v1, %v285_v32  ;;  %v405_v38 = vcombine.high %v10947_v1, %v285_v32 }
 0x292   :  { %v516_v48 = vcombine.low %v451_v39, %v467_v34  ;;  %v517_v49 = vcombine.high %v451_v39, %v467_v34 }
 0x293   :  { %v508_v40 = vrot.slane %v500_v35, %v11041_v28  ;;  %v515_v41 = vrot.slane %v501_v36, %v11041_v28  ;;  %v412_v44 = vrot.slane %v404_v37, %v11037_v19  ;;  %v419_v45 = vrot.slane %v405_v38, %v11037_v19 }
 0x294   :  { %v311_v46 = vpop.permute.xlu1 %310  ;;  %v347_v47 = vpop.permute.xlu0 %346  ;;  %v524_v2 = vrot.slane %v516_v48, %v11041_v28  ;;  %v531_v3 = vrot.slane %v517_v49, %v11041_v28 }
 0x295   :  { %v468_v50 = vcombine.low %v412_v44, %v428_v42  ;;  %v469_v51 = vcombine.high %v412_v44, %v428_v42  ;;  %v484_v52 = vcombine.low %v419_v45, %v435_v43  ;;  %v485_v55 = vcombine.high %v419_v45, %v435_v43 }
 0x296   :  { %v9609_v56 = vcombine.low %v508_v40, %v515_v41  ;;  %v9611_v57 = vcombine.high %v508_v40, %v515_v41  ;;  %v656_v20 = vcombine.low %v323_v33, %v347_v47  ;;  %v657_v21 = vcombine.high %v323_v33, %v347_v47 }
 0x297   :  { %v476_v58 = vrot.slane %v468_v50, %v11041_v28  ;;  %v483_v61 = vrot.slane %v469_v51, %v11041_v28  ;;  %v492_v62 = vrot.slane %v484_v52, %v11041_v28  ;;  %v499_v63 = vrot.slane %v485_v55, %v11041_v28 }
 0x298   :  { %v335_v0 = vpop.permute.xlu1 %334  ;;  %v287_v1 = vpop.permute.xlu0 %286  ;;  %v11063_v17 = vrot.slane %v9609_v56, %v11037_v19  ;;  %v11066_v18 = vrot.slane %v9611_v57, %v11037_v19  ;;  %v9613_v25 = vcombine.low %v524_v2, %v531_v3  ;;  %v9615_v26 = vcombine.high %v524_v2, %v531_v3 }
 0x299   :  { %v9608_v9 = vcombine.low %v476_v58, %v483_v61  ;;  %v9610_v10 = vcombine.high %v476_v58, %v483_v61  ;;  %v9612_v11 = vcombine.low %v492_v62, %v499_v63  ;;  %v640_v12 = vcombine.low %v311_v46, %v335_v0 }
 0x29a   :  { %v9614_v14 = vcombine.high %v492_v62, %v499_v63  ;;  %v641_v22 = vcombine.high %v311_v46, %v335_v0  ;;  %v608_v23 = vcombine.low %v10961_v4, %v287_v1  ;;  %v609_v24 = vcombine.high %v10961_v4, %v287_v1 }
 0x29b   :  { %v11071_v27 = vrot.slane %v9608_v9, %v11037_v19  ;;  %v11074_v29 = vrot.slane %v9610_v10, %v11037_v19  ;;  %v11077_v30 = vrot.slane %v9612_v11, %v11037_v19  ;;  %v648_v31 = vrot.slane %v640_v12, %v11037_v19 }
 0x29c   :  { %v275_v15 = vpop.permute.xlu1 %274  ;;  %v11060_v16 = vpop.permute.xlu0 %312  ;;  %v11081_v32 = vrot.slane %v9614_v14, %v11037_v19  ;;  %v11084_v34 = vrot.slane %v9613_v25, %v11037_v19  ;;  %v11087_v4 = vrot.slane %v9615_v26, %v11037_v19  ;;  %v1300_v35 = vcombine.low %v11063_v17, %v11066_v18 }
 0x29d   :  { %v664_v36 = vrot.slane %v656_v20, %v11037_v19  ;;  %v671_v37 = vrot.slane %v657_v21, %v11037_v19  ;;  %v655_v38 = vrot.slane %v641_v22, %v11037_v19  ;;  %v616_v39 = vrot.slane %v608_v23, %v11037_v19 }
 0x29e   :  { %v623_v40 = vrot.slane %v609_v24, %v11037_v19  ;;  %v1308_v46 = vrot.slane %v1300_v35, %v11041_v28  ;;  %v1332_v47 = vcombine.low %v11084_v34, %v11087_v4  ;;  %v1284_v51 = vcombine.low %v11071_v27, %v11074_v29 }
 0x29f   :  { %v704_v44 = vcombine.low %v648_v31, %v664_v36  ;;  %v705_v45 = vcombine.high %v648_v31, %v664_v36  ;;  %v1316_v52 = vcombine.low %v11077_v30, %v11081_v32  ;;  %v720_v55 = vcombine.low %v655_v38, %v671_v37 }
 0x2a0   :  { %v299_v33 = vpop.permute.xlu1 %298  ;;  %v11096_v43 = vpop.permute.xlu0 %336  ;;  %v1340_v56 = vrot.slane %v1332_v47, %v11041_v28  ;;  %v721_v63 = vcombine.high %v655_v38, %v671_v37  ;;  %v1292_v11 = vrot.slane %v1284_v51, %v11041_v28  ;;  %v1285_v22 = vcombine.high %v11071_v27, %v11074_v29 }
 0x2a1   :  { %v624_v41 = vcombine.low %v275_v15, %v299_v33  ;;  %v625_v42 = vcombine.high %v275_v15, %v299_v33  ;;  %v11109_v2 = vrot.slane %v704_v44, %v11041_v28  ;;  %v11112_v3 = vrot.slane %v705_v45, %v11041_v28 }
 0x2a2   :  { %v1352_v0 = vcombine.low %v1308_v46, %v1340_v56  ;;  %v1353_v1 = vcombine.high %v1308_v46, %v1340_v56  ;;  %v1324_v12 = vrot.slane %v1316_v52, %v11041_v28  ;;  %v11123_v23 = vrot.slane %v720_v55, %v11041_v28 }
 0x2a3   :  { %v632_v48 = vrot.slane %v624_v41, %v11037_v19  ;;  %v639_v49 = vrot.slane %v625_v42, %v11037_v19  ;;  %v11128_v26 = vrot.slane %v721_v63, %v11041_v28  ;;  %v1317_v36 = vcombine.high %v11077_v30, %v11081_v32 }
 0x2a4   :  { %v325_v50 = vpop.permute.xlu1 %324  ;;  %v11114_v9 = vpop.permute.xlu0 %276  ;;  %v2052_v20 = vpack.c.bf16 %v1352_v0, %v1352_v0  ;;  %v2053_v21 = vpack.c.bf16 %v1353_v1, %v1353_v1  ;;  %v844_v27 = vcombine.low %v11060_v16, %v11096_v43  ;;  %v845_v29 = vcombine.high %v11060_v16, %v11096_v43 }
 0x2a5   :  { %v672_v57 = vcombine.low %v616_v39, %v632_v48  ;;  %v673_v58 = vcombine.high %v616_v39, %v632_v48  ;;  %v688_v61 = vcombine.low %v623_v40, %v639_v49  ;;  %v689_v62 = vcombine.high %v623_v40, %v639_v49 }
 0x2a6   :  { %v2093_v31 = vsel %vm2088_vm2, %v2052_v20, 0  ;;  %v2139_v33 = vsel %vm2088_vm2, %v2053_v21, 0  ;;  %v9619_v39 = vcombine.low %v11109_v2, %v11112_v3  ;;  %v1348_v42 = vcombine.low %v1292_v11, %v1324_v12 }
 0x2a7   :  { %v680_v14 = vrot.slane %v672_v57, %v11041_v28  ;;  %v687_v15 = vrot.slane %v673_v58, %v11041_v28  ;;  %v696_v24 = vrot.slane %v688_v61, %v11041_v28  ;;  %v703_v25 = vrot.slane %v689_v62, %v11041_v28  ;;  %10038 = vmatpush3.bf16.xpose.msra.mxu1 %v2093_v31 }
 0x2a8   :  { %v349_v10 = vpop.permute.xlu1 %348  ;;  %10044 = vmatpush3.bf16.xpose.msra.mxu0 %v2139_v33  ;;  %v301_v45 = vpop.permute.xlu0 %300  ;;  %v1349_v46 = vcombine.high %v1292_v11, %v1324_v12  ;;  %10049 = vmatprep.subr.bf16.mxu1 %v10771_v5  ;;  %v1301_v30 = vcombine.high %v11063_v17, %v11066_v18  ;;  %v1333_v16 = vcombine.high %v11084_v34, %v11087_v4 }
 0x2a9   :  { %v860_v35 = vcombine.low %v325_v50, %v349_v10  ;;  %v861_v37 = vcombine.high %v325_v50, %v349_v10  ;;  %v9618_v40 = vcombine.low %v680_v14, %v687_v15  ;;  %v9620_v41 = vcombine.high %v680_v14, %v687_v15  ;;  %10055 = vmatprep.subr.bf16.mxu0 %v10771_v5 }
 0x2aa   :  { %v9622_v44 = vcombine.low %v696_v24, %v703_v25  ;;  %v9621_v32 = vcombine.high %v11109_v2, %v11112_v3  ;;  %v9623_v43 = vcombine.low %v11123_v23, %v11128_v26  ;;  %v9624_v47 = vcombine.high %v696_v24, %v703_v25 }
 0x2ab   :  { %v868_v48 = vrot.slane %v860_v35, %v11037_v19  ;;  %v9625_v49 = vcombine.high %v11123_v23, %v11128_v26  ;;  %v852_v50 = vrot.slane %v844_v27, %v11037_v19  ;;  %v859_v17 = vrot.slane %v845_v29, %v11037_v19 }
 0x2ac   :  { %v289_v38 = vpop.permute.xlu1 %288  ;;  %v875_v18 = vrot.slane %v861_v37, %v11037_v19  ;;  %v11159_v4 = vrot.slane %v9618_v40, %v11037_v19  ;;  %v11162_v51 = vrot.slane %v9620_v41, %v11037_v19  ;;  %v828_v52 = vcombine.low %v11114_v9, %v301_v45  ;;  %v11182_v20 = vpop.permute.xlu0 %326 }
 0x2ad   :  { %v2036_v55 = vpack.c.bf16 %v1348_v42, %v1348_v42  ;;  %v11166_v56 = vrot.slane %v9622_v44, %v11037_v19  ;;  %v2037_v57 = vpack.c.bf16 %v1349_v46, %v1349_v46  ;;  %v1315_v58 = vrot.slane %v1301_v30, %v11041_v28 }
 0x2ae   :  { %v1347_v61 = vrot.slane %v1333_v16, %v11041_v28  ;;  %v11171_v62 = vrot.slane %v9624_v47, %v11037_v19  ;;  %v908_v63 = vcombine.low %v852_v50, %v868_v48  ;;  %v812_v0 = vcombine.low %v10977_v6, %v289_v38 }
 0x2af   :  { %10040 = vmatmul.mubr.msk.bf16.vlgmr.msra.gmra.mxu1 %vm2088_vm2, %v2036_v55  ;;  %v813_v1 = vcombine.high %v10977_v6, %v289_v38  ;;  %v909_v2 = vcombine.high %v852_v50, %v868_v48  ;;  %10046 = vmatmul.mubr.msk.bf16.vlgmr.msra.gmra.mxu0 %vm2088_vm2, %v2037_v57  ;;  %v924_v11 = vcombine.low %v859_v17, %v875_v18 }
 0x2b0   :  { %v11156_v34 = vpop.permute.xlu1 %314  ;;  %v1354_v3 = vcombine.low %v1315_v58, %v1347_v61  ;;  %v1355_v10 = vcombine.high %v1315_v58, %v1347_v61  ;;  %10051 = vmatprep.mubr.msk.bf16.mxu1 %vm10772_vm1, %v10771_v5  ;;  %v829_v12 = vcombine.high %v11114_v9, %v301_v45  ;;  %v836_v14 = vrot.slane %v828_v52, %v11037_v19  ;;  %v351_v30 = vpop.permute.xlu0 %350 }
 0x2b1   :  { %v820_v15 = vrot.slane %v812_v0, %v11037_v19  ;;  %10057 = vmatprep.mubr.msk.bf16.mxu0 %vm10772_vm1, %v10771_v5  ;;  %v1299_v24 = vrot.slane %v1285_v22, %v11041_v28  ;;  %v1331_v25 = vrot.slane %v1317_v36, %v11041_v28  ;;  %v1488_v9 = vcombine.low %v11159_v4, %v11162_v51 }
 0x2b2   :  { %v2054_v21 = vpack.c.bf16 %v1354_v3, %v1354_v3  ;;  %v2055_v23 = vpack.c.bf16 %v1355_v10, %v1355_v10  ;;  %v1489_v31 = vcombine.high %v11159_v4, %v11162_v51  ;;  %v925_v33 = vcombine.high %v859_v17, %v875_v18 }
 0x2b3   :  { %v827_v35 = vrot.slane %v813_v1, %v11037_v19  ;;  %v876_v37 = vcombine.low %v820_v15, %v836_v14  ;;  %v877_v38 = vcombine.high %v820_v15, %v836_v14  ;;  %v1520_v22 = vcombine.low %v11166_v56, %v11171_v62 }
 0x2b4   :  { %v11188_v26 = vpop.permute.xlu1 %338  ;;  %v2185_v27 = vsel %vm2088_vm2, %v2054_v21, 0  ;;  %v2231_v29 = vsel %vm2088_vm2, %v2055_v23, 0  ;;  %v843_v36 = vrot.slane %v829_v12, %v11037_v19  ;;  %v11201_v40 = vrot.slane %v9619_v39, %v11037_v19 }
 0x2b5   :  { %10050 = vmatpush3.bf16.xpose.msra.mxu1 %v2185_v27  ;;  %10056 = vmatpush3.bf16.xpose.msra.mxu0 %v2231_v29  ;;  %v11204_v41 = vrot.slane %v908_v63, %v11041_v28  ;;  %v1350_v42 = vcombine.low %v1299_v24, %v1331_v25  ;;  %v1351_v44 = vcombine.high %v1299_v24, %v1331_v25 }
 0x2b6   :  { %10061 = vmatprep.subr.bf16.mxu1 %v10771_v5  ;;  %10067 = vmatprep.subr.bf16.mxu0 %v10771_v5  ;;  %v892_v45 = vcombine.low %v827_v35, %v843_v36  ;;  %v893_v46 = vcombine.high %v827_v35, %v843_v36  ;;  %v11209_v16 = vrot.slane %v9621_v32, %v11037_v19 }
 0x2b7   :  { %v11212_v47 = vrot.slane %v9623_v43, %v11037_v19  ;;  %v11215_v39 = vrot.slane %v909_v2, %v11041_v28  ;;  %v884_v48 = vrot.slane %v876_v37, %v11041_v28  ;;  %v891_v50 = vrot.slane %v877_v38, %v11041_v28 }
 0x2b8   :  { %v1487_v17 = vrot.slane %v9625_v49, %v11037_v19  ;;  %v11220_v18 = vpop.permute.xlu1 %278  ;;  %v11223_v52 = vrot.slane %v924_v11, %v11041_v28  ;;  %v11226_v32 = vrot.slane %v925_v33, %v11041_v28  ;;  %v1504_v43 = vcombine.low %v11201_v40, %v11209_v16  ;;  %v291_v33 = vpop.permute.xlu0 %290 }
 0x2b9   :  { %v1048_v55 = vcombine.low %v11156_v34, %v11188_v26  ;;  %v1064_v57 = vcombine.low %v11182_v20, %v351_v30  ;;  %v2038_v58 = vpack.c.bf16 %v1350_v42, %v1350_v42  ;;  %v2039_v61 = vpack.c.bf16 %v1351_v44, %v1351_v44 }
 0x2ba   :  { %v1536_v49 = vcombine.low %v11212_v47, %v1487_v17  ;;  %v900_v63 = vrot.slane %v892_v45, %v11041_v28  ;;  %v907_v0 = vrot.slane %v893_v46, %v11041_v28  ;;  %v1065_v1 = vcombine.high %v11182_v20, %v351_v30 }
 0x2bb   :  { %v1512_v2 = vrot.slane %v1504_v43, %v11041_v28  ;;  %v1521_v3 = vcombine.high %v11166_v56, %v11171_v62  ;;  %v9628_v10 = vcombine.low %v884_v48, %v891_v50  ;;  %v9629_v12 = vcombine.low %v11204_v41, %v11215_v39 }
 0x2bc   :  { %10052 = vmatmul.mubr.msk.bf16.vlgmr.msra.gmra.mxu1 %vm2088_vm2, %v2038_v58  ;;  %10058 = vmatmul.mubr.msk.bf16.vlgmr.msra.gmra.mxu0 %vm2088_vm2, %v2039_v61  ;;  %v1544_v11 = vrot.slane %v1536_v49, %v11041_v28  ;;  %v9630_v14 = vcombine.high %v884_v48, %v891_v50  ;;  %v1049_v15 = vcombine.high %v11156_v34, %v11188_v26  ;;  %v303_v35 = vpop.permute.xlu1 %302 }
 0x2bd   :  { %v11248_v20 = vrot.slane %v1048_v55, %v11037_v19  ;;  %10063 = vmatprep.mubr.msk.bf16.mxu1 %vm10772_vm1, %v10771_v5  ;;  %v9631_v21 = vcombine.high %v11204_v41, %v11215_v39  ;;  %v9633_v23 = vcombine.low %v11223_v52, %v11226_v32  ;;  %10069 = vmatprep.mubr.msk.bf16.mxu0 %vm10772_vm1, %v10771_v5 }
 0x2be   :  { %v1556_v24 = vcombine.low %v1512_v2, %v1544_v11  ;;  %v1557_v25 = vcombine.high %v1512_v2, %v1544_v11  ;;  %v9635_v34 = vcombine.high %v11223_v52, %v11226_v32  ;;  %v9632_v26 = vcombine.low %v900_v63, %v907_v0 }
 0x2bf   :  { %v1072_v27 = vrot.slane %v1064_v57, %v11037_v19  ;;  %v1079_v29 = vrot.slane %v1065_v1, %v11037_v19  ;;  %v11263_v37 = vrot.slane %v9628_v10, %v11037_v19  ;;  %v9634_v38 = vcombine.high %v900_v63, %v907_v0 }
 0x2c0   :  { %v2056_v36 = vpack.c.bf16 %v1556_v24, %v1556_v24  ;;  %v2057_v42 = vpack.c.bf16 %v1557_v25, %v1557_v25  ;;  %v11266_v44 = vrot.slane %v9630_v14, %v11037_v19  ;;  %v1063_v45 = vrot.slane %v1049_v15, %v11037_v19  ;;  %v11288_v0 = vpop.permute.xlu1 %368 }
 0x2c1   :  { %v1112_v46 = vcombine.low %v11248_v20, %v1072_v27  ;;  %v1016_v30 = vcombine.low %v10999_v7, %v291_v33  ;;  %v1496_v43 = vrot.slane %v1488_v9, %v11041_v28  ;;  %v1528_v55 = vrot.slane %v1520_v22, %v11041_v28 }
 0x2c2   :  { %v2277_v48 = vsel %vm2088_vm2, %v2056_v36, 0  ;;  %v2323_v50 = vsel %vm2088_vm2, %v2057_v42, 0  ;;  %v1505_v57 = vcombine.high %v11201_v40, %v11209_v16  ;;  %v1537_v58 = vcombine.high %v11212_v47, %v1487_v17 }
 0x2c3   :  { %10062 = vmatpush3.bf16.xpose.msra.mxu1 %v2277_v48  ;;  %10068 = vmatpush3.bf16.xpose.msra.mxu0 %v2323_v50  ;;  %v1032_v61 = vcombine.low %v11220_v18, %v303_v35  ;;  %v1552_v49 = vcombine.low %v1496_v43, %v1528_v55  ;;  %v1553_v63 = vcombine.high %v1496_v43, %v1528_v55 }
 0x2c4   :  { %10073 = vmatprep.subr.bf16.mxu1 %v10771_v5  ;;  %10079 = vmatprep.subr.bf16.mxu0 %v10771_v5  ;;  %v1033_v9 = vcombine.high %v11220_v18, %v303_v35  ;;  %v11291_v22 = vrot.slane %v9632_v26, %v11037_v19  ;;  %v11294_v1 = vrot.slane %v9634_v38, %v11037_v19 }
 0x2c5   :  { %v1519_v40 = vrot.slane %v1505_v57, %v11041_v28  ;;  %v1551_v16 = vrot.slane %v1537_v58, %v11041_v28  ;;  %v1113_v47 = vcombine.high %v11248_v20, %v1072_v27  ;;  %v1128_v17 = vcombine.low %v1063_v45, %v1079_v29 }
 0x2c6   :  { %v1017_v2 = vcombine.high %v10999_v7, %v291_v33  ;;  %v1040_v10 = vrot.slane %v1032_v61, %v11037_v19  ;;  %v11302_v18 = vrot.slane %v1112_v46, %v11041_v28  ;;  %v1129_v11 = vcombine.high %v1063_v45, %v1079_v29  ;;  %v11317_v45 = vpop.permute.xlu1 %380 }
 0x2c7   :  { %v1558_v14 = vcombine.low %v1519_v40, %v1551_v16  ;;  %v1559_v15 = vcombine.high %v1519_v40, %v1551_v16  ;;  %v1024_v24 = vrot.slane %v1016_v30, %v11037_v19  ;;  %v2040_v25 = vpack.c.bf16 %v1552_v49, %v1552_v49 }
 0x2c8   :  { %v2041_v35 = vpack.c.bf16 %v1553_v63, %v1553_v63  ;;  %v1047_v26 = vrot.slane %v1033_v9, %v11037_v19  ;;  %v1503_v20 = vrot.slane %v1489_v31, %v11041_v28  ;;  %v1535_v33 = vrot.slane %v1521_v3, %v11041_v28 }
 0x2c9   :  { %v2058_v38 = vpack.c.bf16 %v1558_v14, %v1558_v14  ;;  %v2059_v36 = vpack.c.bf16 %v1559_v15, %v1559_v15  ;;  %v1031_v27 = vrot.slane %v1017_v2, %v11037_v19  ;;  %v1080_v29 = vcombine.low %v1024_v24, %v1040_v10  ;;  %v357_v15 = vpop.permute.xlu0 %356 }
 0x2ca   :  { %10064 = vmatmul.mubr.msk.bf16.vlgmr.msra.gmra.mxu1 %vm2088_vm2, %v2040_v25  ;;  %10070 = vmatmul.mubr.msk.bf16.vlgmr.msra.gmra.mxu0 %vm2088_vm2, %v2041_v35  ;;  %v1081_v42 = vcombine.high %v1024_v24, %v1040_v10  ;;  %v11320_v46 = vrot.slane %v1113_v47, %v11041_v28  ;;  %v11323_v4 = vrot.slane %v1128_v17, %v11041_v28  ;;  %v393_v9 = vpop.permute.xlu1 %392 }
 0x2cb   :  { %v2369_v51 = vsel %vm2088_vm2, %v2058_v38, 0  ;;  %v2415_v56 = vsel %vm2088_vm2, %v2059_v36, 0  ;;  %10075 = vmatprep.mubr.msk.bf16.mxu1 %vm10772_vm1, %v10771_v5  ;;  %10081 = vmatprep.mubr.msk.bf16.mxu0 %vm10772_vm1, %v10771_v5  ;;  %v11332_v62 = vrot.slane %v1129_v11, %v11041_v28  ;;  %v1096_v31 = vcombine.low %v1031_v27, %v1047_v26 }
 0x2cc   :  { %10074 = vmatpush3.bf16.xpose.msra.mxu1 %v2369_v51  ;;  %10080 = vmatpush3.bf16.xpose.msra.mxu0 %v2415_v56  ;;  %v1097_v3 = vcombine.high %v1031_v27, %v1047_v26  ;;  %v1554_v30 = vcombine.low %v1503_v20, %v1535_v33  ;;  %v1555_v48 = vcombine.high %v1503_v20, %v1535_v33 }
 0x2cd   :  { %10085 = vmatprep.subr.bf16.mxu1 %v10771_v5  ;;  %10091 = vmatprep.subr.bf16.mxu0 %v10771_v5  ;;  %v1643_v50 = vrot.slane %v9629_v12, %v11037_v19  ;;  %v1088_v43 = vrot.slane %v1080_v29, %v11041_v28  ;;  %v1095_v55 = vrot.slane %v1081_v42, %v11041_v28 }
 0x2ce   :  { %v1659_v57 = vrot.slane %v9631_v21, %v11037_v19  ;;  %v1675_v58 = vrot.slane %v9633_v23, %v11037_v19  ;;  %v1692_v61 = vcombine.low %v11263_v37, %v11266_v44  ;;  %v1693_v12 = vcombine.high %v11263_v37, %v11266_v44 }
 0x2cf   :  { %v1724_v49 = vcombine.low %v11291_v22, %v11294_v1  ;;  %v1691_v41 = vrot.slane %v9635_v34, %v11037_v19  ;;  %v1725_v39 = vcombine.high %v11291_v22, %v11294_v1  ;;  %v1104_v21 = vrot.slane %v1096_v31, %v11041_v28 }
 0x2d0   :  { %v1111_v23 = vrot.slane %v1097_v3, %v11041_v28  ;;  %v1708_v63 = vcombine.low %v1643_v50, %v1659_v57  ;;  %v9639_v40 = vcombine.low %v11302_v18, %v11320_v46  ;;  %v2042_v16 = vpack.c.bf16 %v1554_v30, %v1554_v30 }
 0x2d1   :  { %v2043_v47 = vpack.c.bf16 %v1555_v48, %v1555_v48  ;;  %v1740_v17 = vcombine.low %v1675_v58, %v1691_v41  ;;  %v9641_v2 = vcombine.high %v11302_v18, %v11320_v46  ;;  %v9643_v52 = vcombine.low %v11323_v4, %v11332_v62 }
 0x2d2   :  { %v9638_v32 = vcombine.low %v1088_v43, %v1095_v55  ;;  %v1716_v34 = vrot.slane %v1708_v63, %v11041_v28  ;;  %v9645_v10 = vcombine.high %v11323_v4, %v11332_v62  ;;  %v556_v14 = vcombine.low %v11288_v0, %v393_v9 }
 0x2d3   :  { %10076 = vmatmul.mubr.msk.bf16.vlgmr.msra.gmra.mxu1 %vm2088_vm2, %v2042_v16  ;;  %10082 = vmatmul.mubr.msk.bf16.vlgmr.msra.gmra.mxu0 %vm2088_vm2, %v2043_v47  ;;  %v1748_v11 = vrot.slane %v1740_v17, %v11041_v28  ;;  %v9640_v24 = vcombine.high %v1088_v43, %v1095_v55  ;;  %v9642_v18 = vcombine.low %v1104_v21, %v1111_v23 }
 0x2d4   :  { %10087 = vmatprep.mubr.msk.bf16.mxu1 %vm10772_vm1, %v10771_v5  ;;  %10093 = vmatprep.mubr.msk.bf16.mxu0 %vm10772_vm1, %v10771_v5  ;;  %v1709_v25 = vcombine.high %v1643_v50, %v1659_v57  ;;  %v540_v38 = vcombine.low %v357_v15, %v11317_v45  ;;  %v557_v36 = vcombine.high %v11288_v0, %v393_v9 }
 0x2d5   :  { %v1760_v35 = vcombine.low %v1716_v34, %v1748_v11  ;;  %v1761_v26 = vcombine.high %v1716_v34, %v1748_v11  ;;  %v11384_v20 = vrot.slane %v9638_v32, %v11037_v19  ;;  %v9644_v33 = vcombine.high %v1104_v21, %v1111_v23 }
 0x2d6   :  { %v1700_v27 = vrot.slane %v1692_v61, %v11041_v28  ;;  %v1732_v29 = vrot.slane %v1724_v49, %v11041_v28  ;;  %v541_v4 = vcombine.high %v357_v15, %v11317_v45  ;;  %v564_v51 = vrot.slane %v556_v14, %v11037_v19 }
 0x2d7   :  { %v2060_v42 = vpack.c.bf16 %v1760_v35, %v1760_v35  ;;  %v2061_v46 = vpack.c.bf16 %v1761_v26, %v1761_v26  ;;  %v11391_v56 = vrot.slane %v9640_v24, %v11037_v19  ;;  %v11394_v62 = vrot.slane %v9642_v18, %v11037_v19 }
 0x2d8   :  { %v1723_v0 = vrot.slane %v1709_v25, %v11041_v28  ;;  %v1741_v31 = vcombine.high %v1675_v58, %v1691_v41  ;;  %v548_v48 = vrot.slane %v540_v38, %v11037_v19  ;;  %v571_v50 = vrot.slane %v557_v36, %v11037_v19 }
 0x2d9   :  { %v2461_v3 = vsel %vm2088_vm2, %v2060_v42, 0  ;;  %v2507_v30 = vsel %vm2088_vm2, %v2061_v46, 0  ;;  %v1756_v45 = vcombine.low %v1700_v27, %v1732_v29  ;;  %v1757_v43 = vcombine.high %v1700_v27, %v1732_v29 }
 0x2da   :  { %10086 = vmatpush3.bf16.xpose.msra.mxu1 %v2461_v3  ;;  %10092 = vmatpush3.bf16.xpose.msra.mxu0 %v2507_v30  ;;  %v1755_v55 = vrot.slane %v1741_v31, %v11041_v28  ;;  %v11403_v57 = vrot.slane %v9644_v33, %v11037_v19  ;;  %v555_v61 = vrot.slane %v541_v4, %v11037_v19 }
 0x2db   :  { %v572_v58 = vcombine.low %v548_v48, %v564_v51  ;;  %10097 = vmatprep.subr.bf16.mxu1 %v10771_v5  ;;  %10103 = vmatprep.subr.bf16.mxu0 %v10771_v5  ;;  %v573_v49 = vcombine.high %v548_v48, %v564_v51  ;;  %v1847_v23 = vrot.slane %v9639_v40, %v11037_v19 }
 0x2dc   :  { %v1762_v41 = vcombine.low %v1723_v0, %v1755_v55  ;;  %v1763_v21 = vcombine.high %v1723_v0, %v1755_v55  ;;  %v588_v63 = vcombine.low %v555_v61, %v571_v50  ;;  %v589_v9 = vcombine.high %v555_v61, %v571_v50 }
 0x2dd   :  { %v1863_v16 = vrot.slane %v9641_v2, %v11037_v19  ;;  %v1879_v47 = vrot.slane %v9643_v52, %v11037_v19  ;;  %v2044_v17 = vpack.c.bf16 %v1756_v45, %v1756_v45  ;;  %v2045_v32 = vpack.c.bf16 %v1757_v43, %v1757_v43 }
 0x2de   :  { %v2062_v34 = vpack.c.bf16 %v1762_v41, %v1762_v41  ;;  %v2063_v11 = vpack.c.bf16 %v1763_v21, %v1763_v21  ;;  %v1707_v14 = vrot.slane %v1693_v12, %v11041_v28  ;;  %v1739_v40 = vrot.slane %v1725_v39, %v11041_v28 }
 0x2df   :  { %v1895_v15 = vrot.slane %v9645_v10, %v11037_v19  ;;  %v1912_v24 = vcombine.low %v1847_v23, %v1863_v16  ;;  %v1896_v2 = vcombine.low %v11384_v20, %v11391_v56  ;;  %v1928_v52 = vcombine.low %v11394_v62, %v11403_v57 }
 0x2e0   :  { %v580_v18 = vrot.slane %v572_v58, %v11041_v28  ;;  %v2553_v37 = vsel %vm2088_vm2, %v2062_v34, 0  ;;  %v2599_v44 = vsel %vm2088_vm2, %v2063_v11, 0  ;;  %v587_v12 = vrot.slane %v573_v49, %v11041_v28 }
 0x2e1   :  { %10088 = vmatmul.mubr.msk.bf16.vlgmr.msra.gmra.mxu1 %vm2088_vm2, %v2044_v17  ;;  %10094 = vmatmul.mubr.msk.bf16.vlgmr.msra.gmra.mxu0 %vm2088_vm2, %v2045_v32  ;;  %v1920_v22 = vrot.slane %v1912_v24, %v11041_v28  ;;  %v1944_v1 = vcombine.low %v1879_v47, %v1895_v15  ;;  %v596_v39 = vrot.slane %v588_v63, %v11041_v28 }
 0x2e2   :  { %v603_v10 = vrot.slane %v589_v9, %v11041_v28  ;;  %10098 = vmatpush3.bf16.xpose.msra.mxu1 %v2553_v37  ;;  %10104 = vmatpush3.bf16.xpose.msra.mxu0 %v2599_v44  ;;  %v1758_v25 = vcombine.low %v1707_v14, %v1739_v40  ;;  %v1759_v35 = vcombine.high %v1707_v14, %v1739_v40 }
 0x2e3   :  { %10099 = vmatprep.mubr.msk.bf16.mxu1 %vm10772_vm1, %v10771_v5  ;;  %10105 = vmatprep.mubr.msk.bf16.mxu0 %vm10772_vm1, %v10771_v5  ;;  %v1952_v26 = vrot.slane %v1944_v1, %v11041_v28  ;;  %v1904_v38 = vrot.slane %v1896_v2, %v11041_v28  ;;  %v1936_v36 = vrot.slane %v1928_v52, %v11041_v28 }
 0x2e4   :  { %10109 = vmatprep.subr.bf16.mxu1 %v10771_v5  ;;  %10115 = vmatprep.subr.bf16.mxu0 %v10771_v5  ;;  %v1356_v29 = vcombine.low %v580_v18, %v587_v12  ;;  %v9616_v42 = vcombine.high %v580_v18, %v587_v12  ;;  %v1372_v46 = vcombine.low %v596_v39, %v603_v10 }
 0x2e5   :  { %v1964_v33 = vcombine.low %v1920_v22, %v1952_v26  ;;  %v1965_v27 = vcombine.high %v1920_v22, %v1952_v26  ;;  %v2046_v4 = vpack.c.bf16 %v1758_v25, %v1758_v25  ;;  %v2047_v51 = vpack.c.bf16 %v1759_v35, %v1759_v35 }
 0x2e6   :  { %v9617_v3 = vcombine.high %v596_v39, %v603_v10  ;;  %v1960_v30 = vcombine.low %v1904_v38, %v1936_v36  ;;  %v1961_v48 = vcombine.high %v1904_v38, %v1936_v36  ;;  %v1913_v50 = vcombine.high %v1847_v23, %v1863_v16 }
 0x2e7   :  { %v2064_v0 = vpack.c.bf16 %v1964_v33, %v1964_v33  ;;  %v2065_v31 = vpack.c.bf16 %v1965_v27, %v1965_v27  ;;  %v1897_v45 = vcombine.high %v11384_v20, %v11391_v56  ;;  %v1945_v61 = vcombine.high %v1879_v47, %v1895_v15 }
 0x2e8   :  { %v1929_v58 = vcombine.high %v11394_v62, %v11403_v57  ;;  %v1927_v49 = vrot.slane %v1913_v50, %v11041_v28  ;;  %v1363_v41 = vrot.slane %v1356_v29, %v11037_v19  ;;  %v1371_v56 = vrot.slane %v9616_v42, %v11037_v19  ;;  %v152_v42 = vld [vmem:[%s13380_s3] sm:$0xf]  ;;  %s13364_s3 = smov 8  }
 0x2e9   :  { %10100 = vmatmul.mubr.msk.bf16.vlgmr.msra.gmra.mxu1 %vm2088_vm2, %v2046_v4  ;;  %10106 = vmatmul.mubr.msk.bf16.vlgmr.msra.gmra.mxu0 %vm2088_vm2, %v2047_v51  ;;  %v2645_v43 = vsel %vm2088_vm2, %v2064_v0, 0  ;;  %v2691_v55 = vsel %vm2088_vm2, %v2065_v31, 0  ;;  %v1959_v20 = vrot.slane %v1945_v61, %v11041_v28  ;;  %v1379_v21 = vrot.slane %v1372_v46, %v11037_v19 }
 0x2ea   :  { %10110 = vmatpush3.bf16.xpose.msra.mxu1 %v2645_v43  ;;  %10116 = vmatpush3.bf16.xpose.msra.mxu0 %v2691_v55  ;;  %v2048_v23 = vpack.c.bf16 %v1960_v30, %v1960_v30  ;;  %v2049_v62 = vpack.c.bf16 %v1961_v48, %v1961_v48  ;;  %v1387_v57 = vrot.slane %v9617_v3, %v11037_v19  ;;  %v10779_v27 = vmov 1966171168  }
 0x2eb   :  { %10111 = vmatprep.mubr.msk.bf16.mxu1 %vm10772_vm1, %v10771_v5  ;;  %10117 = vmatprep.mubr.msk.bf16.mxu0 %vm10772_vm1, %v10771_v5  ;;  %v1966_v63 = vcombine.low %v1927_v49, %v1959_v20  ;;  %v1967_v9 = vcombine.high %v1927_v49, %v1959_v20  ;;  %v1388_v16 = vcombine.low %v1363_v41, %v1371_v56  ;;  %v157_v29 = vunpack.c.l.s4 %v10779_v27 }
 0x2ec   :  { %10121 = vmatprep.subr.bf16.mxu1 %v10771_v5  ;;  %10127 = vmatprep.subr.bf16.mxu0 %v10771_v5  ;;  %v1389_v47 = vcombine.high %v1363_v41, %v1371_v56  ;;  %v1911_v17 = vrot.slane %v1897_v45, %v11041_v28  ;;  %v1943_v32 = vrot.slane %v1929_v58, %v11041_v28  ;;  %v153_v46 = vsub.f32 1.0, %v152_v42 }
 0x2ed   :  { %v1404_v34 = vcombine.low %v1379_v21, %v1387_v57  ;;  %v1405_v11 = vcombine.high %v1379_v21, %v1387_v57  ;;  %v2066_v14 = vpack.c.bf16 %v1966_v63, %v1966_v63  ;;  %v2067_v40 = vpack.c.bf16 %v1967_v9, %v1967_v9 }
 0x2ee   :  { %v1396_v15 = vrot.slane %v1388_v16, %v11041_v28  ;;  %v1403_v24 = vrot.slane %v1389_v47, %v11041_v28  ;;  %v1962_v12 = vcombine.low %v1911_v17, %v1943_v32  ;;  %v1963_v39 = vcombine.high %v1911_v17, %v1943_v32 }
 0x2ef   :  { %v1412_v2 = vrot.slane %v1404_v34, %v11041_v28  ;;  %v1419_v52 = vrot.slane %v1405_v11, %v11041_v28  ;;  %v2737_v18 = vsel %vm2088_vm2, %v2066_v14, 0  ;;  %v2783_v37 = vsel %vm2088_vm2, %v2067_v40, 0 }
 0x2f0   :  { %v2050_v26 = vpack.c.bf16 %v1962_v12, %v1962_v12  ;;  %v2051_v38 = vpack.c.bf16 %v1963_v39, %v1963_v39  ;;  %v158_v4 = vunpack.c.0.s8 %v157_v29  ;;  %v154_v51 = vmul.f32 -1e+09, %v153_v46 }
 0x2f1   :  { %10112 = vmatmul.mubr.msk.bf16.vlgmr.msra.gmra.mxu1 %vm2088_vm2, %v2048_v23  ;;  %10118 = vmatmul.mubr.msk.bf16.vlgmr.msra.gmra.mxu0 %vm2088_vm2, %v2049_v62  ;;  %v1420_v44 = vcombine.low %v1396_v15, %v1412_v2  ;;  %v1421_v22 = vcombine.high %v1396_v15, %v1412_v2  ;;  %v11472_v1 = vcombine.low %v1403_v24, %v1419_v52  ;;  %v11499_v30 = vsub.s32 0, %v11034_v13 }
 0x2f2   :  { %10122 = vmatpush3.bf16.xpose.msra.mxu1 %v2737_v18  ;;  %10128 = vmatpush3.bf16.xpose.msra.mxu0 %v2783_v37  ;;  %v11478_v10 = vcombine.high %v1403_v24, %v1419_v52  ;;  %v161_v0 = vsub.s32 %v158_v4, %v11034_v13 }
 0x2f3   :  { %10123 = vmatprep.mubr.msk.bf16.mxu1 %vm10772_vm1, %v10771_v5  ;;  %10129 = vmatprep.mubr.msk.bf16.mxu0 %vm10772_vm1, %v10771_v5  ;;  %v3017_v25 = vpack.c.bf16 %v1420_v44, %v1420_v44  ;;  %v3018_v35 = vpack.c.bf16 %v1421_v22, %v1421_v22 }
 0x2f4   :  { %10133 = vmatprep.subr.bf16.mxu1 %v10771_v5  ;;  %10139 = vmatprep.subr.bf16.mxu0 %v10771_v5  ;;  %v162_v31 = vrot.slane %v154_v51, %v161_v0 }
 0x2f5   :  { %v3038_v36 = vsel %vm3036_vm3, %v3017_v25, 0  ;;  %v3084_v33 = vsel %vm3036_vm3, %v3018_v35, 0 }
 0x2f6   :  { %v11496_v3 = vrot.slane %v162_v31, %v161_v0  ;;  %v163_v32 = vcombine.high %v162_v31, %v162_v31 }
 0x2f8   :  { %v11503_v48 = vrot.slane %v11496_v3, %v11499_v30  ;;  %v11525_v24 = vrot.slane %v163_v32, %v161_v0 }
 0x2f9   :  { %10124 = vmatmul.mubr.msk.bf16.vlgmr.msra.gmra.mxu1 %vm2088_vm2, %v2050_v26  ;;  %10130 = vmatmul.mubr.msk.bf16.vlgmr.msra.gmra.mxu0 %vm2088_vm2, %v2051_v38 }
 0x2fa   :  { %10134 = vmatpush3.bf16.msra.mxu1 %v3038_v36  ;;  %10140 = vmatpush3.bf16.msra.mxu0 %v3084_v33  ;;  %v11529_v2 = vrot.slane %v11525_v24, %v11499_v30 }
 0x2fb   :  { %10135 = vmatprep.mubr.msk.bf16.mxu1 %vm10772_vm1, %v10771_v5  ;;  %10141 = vmatprep.mubr.msk.bf16.mxu0 %vm10772_vm1, %v10771_v5 }
 0x2fc   :  { %10145 = vmatprep.subr.bf16.mxu1 %v10771_v5  ;;  %10151 = vmatprep.subr.bf16.mxu0 %v10771_v5 }
 0x36f   :  { %v2129_v50 = vpop.f32.mrf.mxu1  ;;  %v2175_v43 = vpop.f32.mrf.mxu0 }
 0x370   :  { %v11506_v45 = vadd.f32 %v2129_v50, %v11503_v48  ;;  %v11509_v55 = vadd.f32 %v2175_v43, %v11503_v48 }
 0x371   :  { %v10041_v61 = vpop.f32.mrf.mxu1  ;;  %v10047_v58 = vpop.f32.mrf.mxu0 }
 0x372   :  { %v2825_v49 = vsel %vm2088_vm2, %v11506_v45, -inf  ;;  %v2828_v41 = vsel %vm2088_vm2, %v11509_v55, -inf  ;;  %v178_v58 = vcombine.high %v11496_v3, %v11496_v3 }
 0x373   :  { %2826 = vmax.xlane.f32.xlu0 %v2825_v49  ;;  %v2132_v20 = vpop.f32.mrf.mxu1  ;;  %2829 = vmax.xlane.f32.xlu1 %v2828_v41  ;;  %v2178_v56 = vpop.f32.mrf.mxu0 }
 0x374   :  { %v11554_v49 = vrot.slane %v178_v58, %v11499_v30 }
 0x375   :  { %v10042_v21 = vpop.f32.mrf.mxu1  ;;  %v10048_v23 = vpop.f32.mrf.mxu0 }
 0x37c   :  { %v2221_v62 = vpop.f32.mrf.mxu1  ;;  %v2267_v57 = vpop.f32.mrf.mxu0 }
 0x37d   :  { %v11516_v63 = vadd.f32 %v2221_v62, %v11503_v48  ;;  %v11519_v47 = vadd.f32 %v2267_v57, %v11503_v48 }
 0x37e   :  { %v10053_v9 = vpop.f32.mrf.mxu1  ;;  %v10059_v16 = vpop.f32.mrf.mxu0 }
 0x37f   :  { %v2831_v17 = vsel %vm2088_vm2, %v11516_v63, -inf  ;;  %v2834_v15 = vsel %vm2088_vm2, %v11519_v47, -inf }
 0x380   :  { %v2270_v34 = vpop.f32.mrf.mxu0  ;;  %2832 = vmax.xlane.f32.xlu0 %v2831_v17  ;;  %v2224_v11 = vpop.f32.mrf.mxu1 }
 0x382   :  { %v10054_v14 = vpop.f32.mrf.mxu1  ;;  %v10060_v40 = vpop.f32.mrf.mxu0 }
 0x384   :  { %2835 = vmax.xlane.f32.xlu0 %v2834_v15 }
 0x38a   :  { %v2313_v52 = vpop.f32.mrf.mxu1  ;;  %v2359_v18 = vpop.f32.mrf.mxu0 }
 0x38b   :  { %v11532_v37 = vadd.f32 %v2313_v52, %v11529_v2  ;;  %v11535_v44 = vadd.f32 %v2359_v18, %v11529_v2 }
 0x38c   :  { %v10065_v22 = vpop.f32.mrf.mxu1  ;;  %v10071_v12 = vpop.f32.mrf.mxu0 }
 0x38d   :  { %v2840_v39 = vsel %vm2088_vm2, %v11535_v44, -inf  ;;  %v2837_v25 = vsel %vm2088_vm2, %v11532_v37, -inf }
 0x38e   :  { %2841 = vmax.xlane.f32.xlu1 %v2840_v39  ;;  %v2362_v35 = vpop.f32.mrf.mxu0  ;;  %2838 = vmax.xlane.f32.xlu0 %v2837_v25  ;;  %v2316_v26 = vpop.f32.mrf.mxu1 }
 0x390   :  { %v10066_v38 = vpop.f32.mrf.mxu1  ;;  %v10072_v36 = vpop.f32.mrf.mxu0 }
 0x393   :  { %v2405_v33 = vpop.f32.mrf.mxu1  ;;  %v2451_v27 = vpop.f32.mrf.mxu0 }
 0x394   :  { %v11542_v29 = vadd.f32 %v2405_v33, %v11529_v2  ;;  %v11545_v42 = vadd.f32 %v2451_v27, %v11529_v2 }
 0x395   :  { %v10077_v46 = vpop.f32.mrf.mxu1  ;;  %v10083_v4 = vpop.f32.mrf.mxu0 }
 0x396   :  { %v2846_v51 = vsel %vm2088_vm2, %v11545_v42, -inf  ;;  %v2843_v0 = vsel %vm2088_vm2, %v11542_v29, -inf }
 0x397   :  { %2847 = vmax.xlane.f32.xlu1 %v2846_v51  ;;  %v2454_v31 = vpop.f32.mrf.mxu0  ;;  %2844 = vmax.xlane.f32.xlu0 %v2843_v0  ;;  %v2408_v50 = vpop.f32.mrf.mxu1 }
 0x399   :  { %v10078_v43 = vpop.f32.mrf.mxu1  ;;  %v10084_v61 = vpop.f32.mrf.mxu0 }
 0x3a1   :  { %v2497_v41 = vpop.f32.mrf.mxu1  ;;  %v2543_v20 = vpop.f32.mrf.mxu0 }
 0x3a2   :  { %v11557_v56 = vadd.f32 %v2497_v41, %v11554_v49  ;;  %v11560_v21 = vadd.f32 %v2543_v20, %v11554_v49  ;;  %v179_v41 = vcombine.high %v11525_v24, %v11525_v24 }
 0x3a3   :  { %v10089_v23 = vpop.f32.mrf.mxu1  ;;  %v10095_v62 = vpop.f32.mrf.mxu0 }
 0x3a4   :  { %v2852_v57 = vsel %vm2088_vm2, %v11560_v21, -inf  ;;  %v2849_v9 = vsel %vm2088_vm2, %v11557_v56, -inf  ;;  %v11583_v23 = vrot.slane %v179_v41, %v11499_v30 }
 0x3a5   :  { %2853 = vmax.xlane.f32.xlu1 %v2852_v57  ;;  %v2546_v3 = vpop.f32.mrf.mxu0  ;;  %2850 = vmax.xlane.f32.xlu0 %v2849_v9  ;;  %v2500_v16 = vpop.f32.mrf.mxu1 }
 0x3a7   :  { %v10090_v17 = vpop.f32.mrf.mxu1  ;;  %v10096_v32 = vpop.f32.mrf.mxu0 }
 0x3a9   :  { %v2589_v34 = vpop.f32.mrf.mxu1  ;;  %v2635_v11 = vpop.f32.mrf.mxu0 }
 0x3aa   :  { %v11567_v14 = vadd.f32 %v2589_v34, %v11554_v49  ;;  %v11580_v20 = vadd.f32 %v2635_v11, %v11554_v49  ;;  %v11607_v34 = vpop.permute.xlu1 %370 }
 0x3ab   :  { %v10101_v40 = vpop.f32.mrf.mxu1  ;;  %v10107_v15 = vpop.f32.mrf.mxu0 }
 0x3ac   :  { %v2855_v52 = vsel %vm2088_vm2, %v11567_v14, -inf  ;;  %v2858_v9 = vsel %vm2088_vm2, %v11580_v20, -inf  ;;  %v11613_v40 = vpop.permute.xlu0 %358 }
 0x3ad   :  { %v2638_v18 = vpop.f32.mrf.mxu0  ;;  %2856 = vmax.xlane.f32.xlu0 %v2855_v52  ;;  %v2592_v22 = vpop.f32.mrf.mxu1 }
 0x3ae   :  { %v11609_v11 = vpop.permute.xlu1 %382 }
 0x3af   :  { %v10102_v12 = vpop.f32.mrf.mxu1  ;;  %v10108_v39 = vpop.f32.mrf.mxu0 }
 0x3b1   :  { %v2681_v25 = vpop.f32.mrf.mxu1  ;;  %v2727_v35 = vpop.f32.mrf.mxu0 }
 0x3b2   :  { %v11586_v62 = vadd.f32 %v2681_v25, %v11583_v23  ;;  %v11589_v57 = vadd.f32 %v2727_v35, %v11583_v23  ;;  %v11615_v15 = vpop.permute.xlu1 %394 }
 0x3b3   :  { %v10113_v26 = vpop.f32.mrf.mxu1  ;;  %v10119_v38 = vpop.f32.mrf.mxu0 }
 0x3b4   :  { %v2864_v30 = vsel %vm2088_vm2, %v11589_v57, -inf  ;;  %v2861_v16 = vsel %vm2088_vm2, %v11586_v62, -inf }
 0x3b5   :  { %v2684_v36 = vpop.f32.mrf.mxu1  ;;  %v2730_v33 = vpop.f32.mrf.mxu0 }
 0x3b6   :  { %372 = vrot.lane.b32.xlu1 %v10977_v6, %s13354_s29 }
 0x3b7   :  { %v10114_v27 = vpop.f32.mrf.mxu1  ;;  %v10120_v46 = vpop.f32.mrf.mxu0 }
 0x3b9   :  { %v2773_v4 = vpop.f32.mrf.mxu1  ;;  %v2819_v51 = vpop.f32.mrf.mxu0 }
 0x3ba   :  { %384 = vrot.lane.b32.xlu1 %v10977_v6, %s13352_s30  ;;  %v11594_v3 = vadd.f32 %v2773_v4, %v11583_v23  ;;  %v11597_v24 = vadd.f32 %v2819_v51, %v11583_v23 }
 0x3bb   :  { %v10125_v0 = vpop.f32.mrf.mxu1  ;;  %v10131_v31 = vpop.f32.mrf.mxu0 }
 0x3bc   :  { %v2870_v17 = vsel %vm2088_vm2, %v11597_v24, -inf  ;;  %v2867_v32 = vsel %vm2088_vm2, %v11594_v3, -inf }
 0x3bd   :  { %v2776_v50 = vpop.f32.mrf.mxu1  ;;  %v2822_v43 = vpop.f32.mrf.mxu0 }
 0x3bf   :  { %v10126_v61 = vpop.f32.mrf.mxu1  ;;  %v10132_v58 = vpop.f32.mrf.mxu0 }
 0x3c3   :  { %360 = vrot.lane.b32.xlu0 %v10977_v6, %s13356_s28 }
 0x3de   :  { %2859 = vmax.xlane.f32.xlu1 %v2858_v9 }
 0x3e2   :  { %2865 = vmax.xlane.f32.xlu1 %v2864_v30  ;;  %2862 = vmax.xlane.f32.xlu0 %v2861_v16 }
 0x3e6   :  { %2871 = vmax.xlane.f32.xlu1 %v2870_v17  ;;  %2868 = vmax.xlane.f32.xlu0 %v2867_v32 }
 0x3f7   :  { %396 = vrot.lane.b32.xlu1 %v10977_v6, %s13350_s5 }
 0x3fc   :  { %v2827_v52 = vpop.xlane.xlu0 %2826  ;;  %v2830_v18 = vpop.xlane.xlu1 %2829 }
 0x3fd   :  { %v2873_v22 = vsub.f32 %v11506_v45, %v2827_v52  ;;  %v2874_v39 = vsub.f32 %v11509_v55, %v2830_v18 }
 0x3ff   :  { %v2889_v12 = vmul.f32 1.442695, %v2873_v22  ;;  %v2891_v25 = vmul.f32 1.442695, %v2874_v39 }
 0x401   :  { %10604 = vpow2.f32 %v2889_v12 }
 0x402   :  { %10606 = vpow2.f32 %v2891_v25 }
 0x409   :  { %v2833_v35 = vpop.xlane.xlu0 %2832 }
 0x40a   :  { %v2875_v26 = vsub.f32 %v11516_v63, %v2833_v35 }
 0x40c   :  { %v2893_v38 = vmul.f32 1.442695, %v2875_v26 }
 0x40d   :  { %v2836_v36 = vpop.xlane.xlu0 %2835 }
 0x40e   :  { %v11620_v6 = vpop.eup %10604  ;;  %10608 = vpow2.f32 %v2893_v38  ;;  %v2876_v33 = vsub.f32 %v11519_v47, %v2836_v36 }
 0x40f   :  { %v2921_v27 = vsel %vm2088_vm2, %v11620_v6, 0.0  ;;  %v11625_v55 = vpop.eup %10606 }
 0x410   :  { %v2895_v45 = vmul.f32 1.442695, %v2876_v33  ;;  %2922 = vadd.xlane.f32.xlu0 %v2921_v27  ;;  %v2924_v0 = vsel %vm2088_vm2, %v11625_v55, 0.0 }
 0x412   :  { %10610 = vpow2.f32 %v2895_v45 }
 0x417   :  { %v2842_v46 = vpop.xlane.xlu1 %2841  ;;  %v2839_v4 = vpop.xlane.xlu0 %2838 }
 0x418   :  { %v2878_v51 = vsub.f32 %v11535_v44, %v2842_v46  ;;  %v2877_v63 = vsub.f32 %v11532_v37, %v2839_v4 }
 0x41a   :  { %v2897_v31 = vmul.f32 1.442695, %v2877_v63  ;;  %v2899_v47 = vmul.f32 1.442695, %v2878_v51 }
 0x41b   :  { %v11631_v50 = vpop.eup %10608  ;;  %2925 = vadd.xlane.f32.xlu1 %v2924_v0 }
 0x41c   :  { %v2927_v43 = vsel %vm2088_vm2, %v11631_v50, 0.0  ;;  %10612 = vpow2.f32 %v2897_v31 }
 0x41d   :  { %2928 = vadd.xlane.f32.xlu0 %v2927_v43  ;;  %10614 = vpow2.f32 %v2899_v47 }
 0x41f   :  { %v11635_v61 = vpop.eup %10610 }
 0x420   :  { %v2848_v58 = vpop.xlane.xlu1 %2847  ;;  %v2845_v44 = vpop.xlane.xlu0 %2844  ;;  %v2930_v37 = vsel %vm2088_vm2, %v11635_v61, 0.0 }
 0x421   :  { %v2880_v41 = vsub.f32 %v11545_v42, %v2848_v58  ;;  %v2879_v9 = vsub.f32 %v11542_v29, %v2845_v44  ;;  %2931 = vadd.xlane.f32.xlu1 %v2930_v37 }
 0x423   :  { %v2903_v30 = vmul.f32 1.442695, %v2880_v41  ;;  %v2901_v16 = vmul.f32 1.442695, %v2879_v9 }
 0x425   :  { %10616 = vpow2.f32 %v2903_v30 }
 0x426   :  { %10618 = vpow2.f32 %v2901_v16 }
 0x429   :  { %v11641_v17 = vpop.eup %10612 }
 0x42a   :  { %v2933_v32 = vsel %vm2088_vm2, %v11641_v17, 0.0  ;;  %v11645_v52 = vpop.eup %10614 }
 0x42b   :  { %2934 = vadd.xlane.f32.xlu0 %v2933_v32  ;;  %v2936_v29 = vsel %vm2088_vm2, %v11645_v52, 0.0 }
 0x42e   :  { %v2854_v18 = vpop.xlane.xlu1 %2853  ;;  %v2851_v22 = vpop.xlane.xlu0 %2850 }
 0x42f   :  { %v2882_v12 = vsub.f32 %v11560_v21, %v2854_v18  ;;  %v2881_v42 = vsub.f32 %v11557_v56, %v2851_v22  ;;  %2937 = vadd.xlane.f32.xlu0 %v2936_v29  ;;  %v744_v29 = vcombine.low %v11613_v40, %v11609_v11 }
 0x431   :  { %v2905_v39 = vmul.f32 1.442695, %v2881_v42  ;;  %v2907_v35 = vmul.f32 1.442695, %v2882_v12  ;;  %v761_v42 = vcombine.high %v11607_v34, %v11615_v15 }
 0x432   :  { %v11651_v25 = vpop.eup %10616 }
 0x433   :  { %v11653_v26 = vpop.eup %10618  ;;  %v2942_v38 = vsel %vm2088_vm2, %v11651_v25, 0.0  ;;  %10620 = vpow2.f32 %v2905_v39  ;;  %v745_v39 = vcombine.high %v11613_v40, %v11609_v11 }
 0x434   :  { %2943 = vadd.xlane.f32.xlu1 %v2942_v38  ;;  %v2939_v21 = vsel %vm2088_vm2, %v11653_v26, 0.0  ;;  %10622 = vpow2.f32 %v2907_v35 }
 0x435   :  { %2940 = vadd.xlane.f32.xlu0 %v2939_v21  ;;  %v775_v21 = vrot.slane %v761_v42, %v11037_v19 }
 0x436   :  { %v2857_v56 = vpop.xlane.xlu0 %2856 }
 0x437   :  { %v2883_v36 = vsub.f32 %v11567_v14, %v2857_v56  ;;  %v11672_v14 = vpop.permute.xlu1 %372  ;;  %v752_v56 = vrot.slane %v744_v29, %v11037_v19 }
 0x439   :  { %v2909_v33 = vmul.f32 1.442695, %v2883_v36  ;;  %v759_v36 = vrot.slane %v745_v39, %v11037_v19 }
 0x43a   :  { %v11676_v31 = vpop.permute.xlu0 %360 }
 0x43b   :  { %10624 = vpow2.f32 %v2909_v33  ;;  %v11674_v0 = vpop.permute.xlu1 %384 }
 0x440   :  { %v11660_v27 = vpop.eup %10620 }
 0x441   :  { %v2945_v45 = vsel %vm2088_vm2, %v11660_v27, 0.0  ;;  %v11664_v46 = vpop.eup %10622 }
 0x442   :  { %2946 = vadd.xlane.f32.xlu0 %v2945_v45  ;;  %v2948_v4 = vsel %vm2088_vm2, %v11664_v46, 0.0  ;;  %v792_v45 = vcombine.low %v759_v36, %v775_v21 }
 0x446   :  { %2949 = vadd.xlane.f32.xlu0 %v2948_v4  ;;  %v793_v4 = vcombine.high %v759_v36, %v775_v21 }
 0x448   :  { %v11668_v51 = vpop.eup %10624 }
 0x449   :  { %v2951_v63 = vsel %vm2088_vm2, %v11668_v51, 0.0 }
 0x44a   :  { %2952 = vadd.xlane.f32.xlu0 %v2951_v63 }
 0x467   :  { %v2860_v47 = vpop.xlane.xlu1 %2859 }
 0x468   :  { %v2884_v43 = vsub.f32 %v11580_v20, %v2860_v47  ;;  %v800_v47 = vrot.slane %v792_v45, %v11041_v28  ;;  %v949_v45 = vcombine.high %v11676_v31, %v11674_v0 }
 0x46a   :  { %v2911_v58 = vmul.f32 1.442695, %v2884_v43  ;;  %v807_v43 = vrot.slane %v793_v4, %v11041_v28 }
 0x46b   :  { %v2866_v44 = vpop.xlane.xlu1 %2865  ;;  %v2863_v37 = vpop.xlane.xlu0 %2862 }
 0x46c   :  { %10626 = vpow2.f32 %v2911_v58  ;;  %v2886_v41 = vsub.f32 %v11589_v57, %v2866_v44  ;;  %v2885_v9 = vsub.f32 %v11586_v62, %v2863_v37  ;;  %v760_v57 = vcombine.low %v11607_v34, %v11615_v15 }
 0x46e   :  { %v2913_v30 = vmul.f32 1.442695, %v2885_v9  ;;  %v2915_v16 = vmul.f32 1.442695, %v2886_v41  ;;  %v768_v35 = vrot.slane %v760_v57, %v11037_v19 }
 0x46f   :  { %v2869_v38 = vpop.xlane.xlu0 %2868  ;;  %v2872_v63 = vpop.xlane.xlu1 %2871 }
 0x470   :  { %10628 = vpow2.f32 %v2913_v30  ;;  %v776_v33 = vcombine.low %v752_v56, %v768_v35  ;;  %v777_v34 = vcombine.high %v752_v56, %v768_v35  ;;  %v2888_v58 = vsub.f32 %v11597_v24, %v2872_v63 }
 0x471   :  { %10630 = vpow2.f32 %v2915_v16  ;;  %v2887_v44 = vsub.f32 %v11594_v3, %v2869_v38  ;;  %v1576_v30 = vcombine.low %v800_v47, %v807_v43  ;;  %v9627_v16 = vcombine.high %v800_v47, %v807_v43 }
 0x472   :  { %v784_v11 = vrot.slane %v776_v33, %v11041_v28  ;;  %v791_v40 = vrot.slane %v777_v34, %v11041_v28  ;;  %v3019_v38 = vpack.c.bf16 %v11472_v1, %v11472_v1  ;;  %v948_v56 = vcombine.low %v11676_v31, %v11674_v0 }
 0x473   :  { %v397_v37 = vpop.permute.xlu1 %396  ;;  %v11726_v24 = vrot.slane %v1576_v30, %v11037_v19  ;;  %v11729_v3 = vrot.slane %v9627_v16, %v11037_v19  ;;  %v963_v31 = vrot.slane %v949_v45, %v11037_v19 }
 0x474   :  { %v1560_v41 = vcombine.low %v784_v11, %v791_v40  ;;  %v9626_v9 = vcombine.high %v784_v11, %v791_v40  ;;  %v964_v39 = vcombine.low %v11672_v14, %v397_v37  ;;  %v965_v21 = vcombine.high %v11672_v14, %v397_v37 }
 0x475   :  { %v3130_v1 = vsel %vm3036_vm3, %v3019_v38, 0  ;;  %v956_v4 = vrot.slane %v948_v56, %v11037_v19 }
 0x476   :  { %v11723_v42 = vrot.slane %v9626_v9, %v11037_v19  ;;  %v979_v14 = vrot.slane %v965_v21, %v11037_v19  ;;  %v3020_v9 = vpack.c.bf16 %v11478_v10, %v11478_v10 }
 0x478   :  { %v996_v47 = vcombine.low %v963_v31, %v979_v14  ;;  %v997_v43 = vcombine.high %v963_v31, %v979_v14  ;;  %v3176_v38 = vsel %vm3036_vm3, %v3020_v9, 0 }
 0x479   :  { %v11681_v32 = vpop.eup %10626 }
 0x47a   :  { %v2954_v18 = vsel %vm2088_vm2, %v11681_v32, 0.0 }
 0x47b   :  { %2955 = vadd.xlane.f32.xlu1 %v2954_v18  ;;  %v2919_v18 = vmul.f32 1.442695, %v2888_v58 }
 0x47d   :  { %v11685_v22 = vpop.eup %10628 }
 0x47e   :  { %v2957_v20 = vsel %vm2088_vm2, %v11685_v22, 0.0  ;;  %v11689_v12 = vpop.eup %10630 }
 0x47f   :  { %2958 = vadd.xlane.f32.xlu0 %v2957_v20  ;;  %v2960_v62 = vsel %vm2088_vm2, %v11689_v12, 0.0 }
 0x483   :  { %2961 = vadd.xlane.f32.xlu0 %v2960_v62  ;;  %v11720_v62 = vrot.slane %v1560_v41, %v11037_v19 }
 0x485   :  { %v1592_v34 = vcombine.low %v11720_v62, %v11723_v42  ;;  %v1593_v10 = vcombine.high %v11720_v62, %v11723_v42 }
 0x487   :  { %v1600_v63 = vrot.slane %v1592_v34, %v11041_v28 }
 0x48c   :  { %374 = vrot.lane.b32.xlu1 %v10999_v7, %s13354_s29  ;;  %s13381_s29 = sld [smem:[#allocation8_spill]] }
 0x490   :  { %386 = vrot.lane.b32.xlu1 %v10999_v7, %s13352_s30  ;;  %s13391_s30 = smov 24  }
 0x494   :  { %398 = vrot.lane.b32.xlu1 %v10999_v7, %s13350_s5 }
 0x499   :  { %v2923_v15 = vpop.xlane.xlu0 %2922  ;;  %362 = vrot.lane.b32.xlu0 %v10999_v7, %s13356_s28  ;;  %v2917_v7 = vmul.f32 1.442695, %v2887_v44  ;;  %s13385_s28 = smov 64  }
 0x49a   :  { %10632 = vrcp.f32 %v2923_v15  ;;  %v1608_v15 = vcombine.low %v11726_v24, %v11729_v3 }
 0x49c   :  { %v1616_v0 = vrot.slane %v1608_v15, %v11041_v28 }
 0x49e   :  { %v1624_v44 = vcombine.low %v1600_v63, %v1616_v0  ;;  %v1625_v56 = vcombine.high %v1600_v63, %v1616_v0 }
 0x4a0   :  { %v3022_v14 = vpack.c.bf16 %v1625_v56, %v1625_v56 }
 0x4a4   :  { %v2926_v20 = vpop.xlane.xlu1 %2925 }
 0x4a5   :  { %10634 = vrcp.f32 %v2926_v20  ;;  %v1004_v20 = vrot.slane %v996_v47, %v11041_v28 }
 0x4a6   :  { %10636 = vpow2.f32 %v2919_v18  ;;  %v2929_v57 = vpop.xlane.xlu0 %2928 }
 0x4a7   :  { %v10633_v29 = vpop.eup %10632  ;;  %10638 = vrcp.f32 %v2929_v57  ;;  %v1011_v57 = vrot.slane %v997_v43, %v11041_v28  ;;  %v3268_v43 = vsel %vm3036_vm3, %v3022_v14, 0 }
 0x4a8   :  { %10640 = vpow2.f32 %v2917_v7  ;;  %v2985_v35 = vmul.f32 %v10633_v29, %v11620_v6  ;;  %v972_v6 = vrot.slane %v964_v39, %v11037_v19 }
 0x4a9   :  { %v1780_v62 = vcombine.low %v1004_v20, %v1011_v57  ;;  %v9637_v42 = vcombine.high %v1004_v20, %v1011_v57 }
 0x4aa   :  { %v2932_v36 = vpop.xlane.xlu1 %2931  ;;  %v3001_v33 = vpack.c.bf16 %v2985_v35, %v2985_v35  ;;  %v980_v11 = vcombine.low %v956_v4, %v972_v6  ;;  %v981_v40 = vcombine.high %v956_v4, %v972_v6  ;;  %v1607_v4 = vrot.slane %v1593_v10, %v11041_v28 }
 0x4ab   :  { %10642 = vrcp.f32 %v2932_v36  ;;  %v1609_v36 = vcombine.high %v11726_v24, %v11729_v3 }
 0x4ac   :  { %10136 = vmatmul.mubr.msk.bf16.vlgmr.msra.gmra.mxu1 %vm2088_vm2, %v3001_v33  ;;  %v988_v16 = vrot.slane %v980_v11, %v11041_v28  ;;  %v995_v18 = vrot.slane %v981_v40, %v11041_v28  ;;  %v1787_v11 = vrot.slane %v1780_v62, %v11037_v19  ;;  %v1795_v40 = vrot.slane %v9637_v42, %v11037_v19 }
 0x4ad   :  { %10146 = vmatpush3.bf16.msra.mxu1 %v3130_v1  ;;  %10147 = vmatprep.mubr.msk.bf16.mxu1 %vm10772_vm1, %v10771_v5  ;;  %v1623_v63 = vrot.slane %v1609_v36, %v11041_v28 }
 0x4ae   :  { %10157 = vmatprep.subr.bf16.mxu1 %v10771_v5  ;;  %v1764_v34 = vcombine.low %v988_v16, %v995_v18  ;;  %v9636_v15 = vcombine.high %v988_v16, %v995_v18  ;;  %v1813_v42 = vcombine.high %v1787_v11, %v1795_v40 }
 0x4af   :  { %v1627_v18 = vcombine.high %v1607_v4, %v1623_v63 }
 0x4b0   :  { %v1771_v0 = vrot.slane %v1764_v34, %v11037_v19  ;;  %v1779_v31 = vrot.slane %v9636_v15, %v11037_v19 }
 0x4b1   :  { %v3024_v10 = vpack.c.bf16 %v1627_v18, %v1627_v18 }
 0x4b2   :  { %v10635_v58 = vpop.eup %10634  ;;  %v1797_v62 = vcombine.high %v1771_v0, %v1779_v31 }
 0x4b3   :  { %v11755_v37 = vpop.eup %10636  ;;  %v2986_v41 = vmul.f32 %v10635_v58, %v11625_v55  ;;  %v3021_v55 = vpack.c.bf16 %v1624_v44, %v1624_v44  ;;  %v1626_v58 = vcombine.low %v1607_v4, %v1623_v63  ;;  %v1796_v44 = vcombine.low %v1771_v0, %v1779_v31 }
 0x4b4   :  { %v10639_v30 = vpop.eup %10638  ;;  %v2935_v29 = vpop.xlane.xlu0 %2934 }
 0x4b5   :  { %v11762_v7 = vpop.eup %10640  ;;  %v3002_v39 = vpack.c.bf16 %v2986_v41, %v2986_v41  ;;  %v2987_v35 = vmul.f32 %v10639_v30, %v11631_v50  ;;  %10644 = vrcp.f32 %v2935_v29  ;;  %v2966_v50 = vsel %vm2088_vm2, %v11755_v37, 0.0 }
 0x4b6   :  { %v2963_v45 = vsel %vm2088_vm2, %v11762_v7, 0.0  ;;  %v3222_v3 = vsel %vm3036_vm3, %v3021_v55, 0  ;;  %v1812_v41 = vcombine.low %v1787_v11, %v1795_v40  ;;  %v3023_v16 = vpack.c.bf16 %v1626_v58, %v1626_v58 }
 0x4b7   :  { %10142 = vmatmul.mubr.msk.bf16.vlgmr.msra.gmra.mxu0 %vm2088_vm2, %v3002_v39  ;;  %v3003_v21 = vpack.c.bf16 %v2987_v35, %v2987_v35  ;;  %v1804_v20 = vrot.slane %v1796_v44, %v11041_v28 }
 0x4b8   :  { %v10643_v33 = vpop.eup %10642  ;;  %10152 = vmatpush3.bf16.msra.mxu0 %v3176_v38  ;;  %10153 = vmatprep.mubr.msk.bf16.mxu0 %vm10772_vm1, %v10771_v5  ;;  %v2938_v6 = vpop.xlane.xlu0 %2937  ;;  %v1820_v57 = vrot.slane %v1812_v41, %v11041_v28  ;;  %v3314_v35 = vsel %vm3036_vm3, %v3023_v16, 0 }
 0x4b9   :  { %2967 = vadd.xlane.f32.xlu1 %v2966_v50  ;;  %2964 = vadd.xlane.f32.xlu0 %v2963_v45  ;;  %v2988_v24 = vmul.f32 %v10643_v33, %v11635_v61  ;;  %10646 = vrcp.f32 %v2938_v6  ;;  %v3360_v33 = vsel %vm3036_vm3, %v3024_v10, 0 }
 0x4ba   :  { %10148 = vmatmul.mubr.msk.bf16.vlgmr.msra.gmra.mxu1 %vm2088_vm2, %v3003_v21  ;;  %10163 = vmatprep.subr.bf16.mxu0 %v10771_v5  ;;  %v1829_v34 = vcombine.high %v1804_v20, %v1820_v57 }
 0x4bb   :  { %10158 = vmatpush3.bf16.msra.mxu1 %v3222_v3  ;;  %v3004_v1 = vpack.c.bf16 %v2988_v24, %v2988_v24  ;;  %10159 = vmatprep.mubr.msk.bf16.mxu1 %vm10772_vm1, %v10771_v5 }
 0x4bc   :  { %10169 = vmatprep.subr.bf16.mxu1 %v10771_v5  ;;  %v3026_v24 = vpack.c.bf16 %v1829_v34, %v1829_v34 }
 0x4bd   :  { %v2944_v61 = vpop.xlane.xlu1 %2943 }
 0x4be   :  { %10648 = vrcp.f32 %v2944_v61  ;;  %v2941_v47 = vpop.xlane.xlu0 %2940  ;;  %v3452_v4 = vsel %vm3036_vm3, %v3026_v24, 0 }
 0x4bf   :  { %10650 = vrcp.f32 %v2941_v47  ;;  %10154 = vmatmul.mubr.msk.bf16.vlgmr.msra.gmra.mxu0 %vm2088_vm2, %v3004_v1  ;;  %v1811_v1 = vrot.slane %v1797_v62, %v11041_v28 }
 0x4c0   :  { %10164 = vmatpush3.bf16.msra.mxu0 %v3268_v43  ;;  %10165 = vmatprep.mubr.msk.bf16.mxu0 %vm10772_vm1, %v10771_v5 }
 0x4c1   :  { %10175 = vmatprep.subr.bf16.mxu0 %v10771_v5 }
 0x4c2   :  { %v10645_v9 = vpop.eup %10644 }
 0x4c3   :  { %v2989_v30 = vmul.f32 %v10645_v9, %v11641_v17  ;;  %v1828_v17 = vcombine.low %v1804_v20, %v1820_v57 }
 0x4c5   :  { %v3005_v29 = vpack.c.bf16 %v2989_v30, %v2989_v30  ;;  %v3025_v15 = vpack.c.bf16 %v1828_v17, %v1828_v17 }
 0x4c6   :  { %v10647_v39 = vpop.eup %10646 }
 0x4c7   :  { %10160 = vmatmul.mubr.msk.bf16.vlgmr.msra.gmra.mxu1 %vm2088_vm2, %v3005_v29  ;;  %v2990_v55 = vmul.f32 %v10647_v39, %v11645_v52  ;;  %v3406_v3 = vsel %vm3036_vm3, %v3025_v15, 0 }
 0x4c8   :  { %10170 = vmatpush3.bf16.msra.mxu1 %v3314_v35  ;;  %10171 = vmatprep.mubr.msk.bf16.mxu1 %vm10772_vm1, %v10771_v5 }
 0x4c9   :  { %v3006_v38 = vpack.c.bf16 %v2990_v55, %v2990_v55  ;;  %10181 = vmatprep.subr.bf16.mxu1 %v10771_v5 }
 0x4cb   :  { %v10649_v21 = vpop.eup %10648  ;;  %v2947_v36 = vpop.xlane.xlu0 %2946  ;;  %10166 = vmatmul.mubr.msk.bf16.vlgmr.msra.gmra.mxu0 %vm2088_vm2, %v3006_v38 }
 0x4cc   :  { %v10651_v56 = vpop.eup %10650  ;;  %10652 = vrcp.f32 %v2947_v36  ;;  %10176 = vmatpush3.bf16.msra.mxu0 %v3360_v33  ;;  %10177 = vmatprep.mubr.msk.bf16.mxu0 %vm10772_vm1, %v10771_v5  ;;  %v2992_v50 = vmul.f32 %v10649_v21, %v11651_v25  ;;  %v1827_v25 = vrot.slane %v1813_v42, %v11041_v28 }
 0x4cd   :  { %v2991_v52 = vmul.f32 %v10651_v56, %v11653_v26  ;;  %10187 = vmatprep.subr.bf16.mxu0 %v10771_v5 }
 0x4ce   :  { %v3008_v26 = vpack.c.bf16 %v2992_v50, %v2992_v50  ;;  %v1830_v63 = vcombine.low %v1811_v1, %v1827_v25  ;;  %v1831_v11 = vcombine.high %v1811_v1, %v1827_v25 }
 0x4cf   :  { %v3007_v45 = vpack.c.bf16 %v2991_v52, %v2991_v52  ;;  %v2950_v6 = vpop.xlane.xlu0 %2949 }
 0x4d0   :  { %10654 = vrcp.f32 %v2950_v6  ;;  %v3027_v31 = vpack.c.bf16 %v1830_v63, %v1830_v63  ;;  %v3028_v44 = vpack.c.bf16 %v1831_v11, %v1831_v11 }
 0x4d1   :  { %10172 = vmatmul.mubr.msk.bf16.vlgmr.msra.gmra.mxu1 %vm2088_vm2, %v3007_v45 }
 0x4d2   :  { %10182 = vmatpush3.bf16.msra.mxu1 %v3406_v3  ;;  %10183 = vmatprep.mubr.msk.bf16.mxu1 %vm10772_vm1, %v10771_v5  ;;  %v3498_v43 = vsel %vm3036_vm3, %v3027_v31, 0 }
 0x4d3   :  { %10193 = vmatprep.subr.bf16.mxu1 %v10771_v5  ;;  %v2953_v14 = vpop.xlane.xlu0 %2952  ;;  %10178 = vmatmul.mubr.msk.bf16.vlgmr.msra.gmra.mxu0 %vm2088_vm2, %v3008_v26 }
 0x4d4   :  { %10656 = vrcp.f32 %v2953_v14  ;;  %10188 = vmatpush3.bf16.msra.mxu0 %v3452_v4  ;;  %10189 = vmatprep.mubr.msk.bf16.mxu0 %vm10772_vm1, %v10771_v5 }
 0x4d5   :  { %10199 = vmatprep.subr.bf16.mxu0 %v10771_v5 }
 0x4d9   :  { %v10653_v61 = vpop.eup %10652 }
 0x4da   :  { %v2993_v0 = vmul.f32 %v10653_v61, %v11660_v27  ;;  %v3544_v27 = vsel %vm3036_vm3, %v3028_v44, 0 }
 0x4dc   :  { %v3009_v40 = vpack.c.bf16 %v2993_v0, %v2993_v0 }
 0x4dd   :  { %v10655_v47 = vpop.eup %10654 }
 0x4de   :  { %10184 = vmatmul.mubr.msk.bf16.vlgmr.msra.gmra.mxu1 %vm2088_vm2, %v3009_v40  ;;  %v2994_v58 = vmul.f32 %v10655_v47, %v11664_v46 }
 0x4df   :  { %10194 = vmatpush3.bf16.msra.mxu1 %v3498_v43  ;;  %10195 = vmatprep.mubr.msk.bf16.mxu1 %vm10772_vm1, %v10771_v5 }
 0x4e0   :  { %v3010_v41 = vpack.c.bf16 %v2994_v58, %v2994_v58  ;;  %10205 = vmatprep.subr.bf16.mxu1 %v10771_v5 }
 0x4e1   :  { %v10657_v9 = vpop.eup %10656 }
 0x4e2   :  { %10190 = vmatmul.mubr.msk.bf16.vlgmr.msra.gmra.mxu0 %vm2088_vm2, %v3010_v41  ;;  %v2995_v30 = vmul.f32 %v10657_v9, %v11668_v51 }
 0x4e3   :  { %10200 = vmatpush3.bf16.msra.mxu0 %v3544_v27  ;;  %10201 = vmatprep.mubr.msk.bf16.mxu0 %vm10772_vm1, %v10771_v5 }
 0x4e4   :  { %v3011_v46 = vpack.c.bf16 %v2995_v30, %v2995_v30  ;;  %10211 = vmatprep.subr.bf16.mxu0 %v10771_v5 }
 0x4e6   :  { %10196 = vmatmul.mubr.msk.bf16.vlgmr.msra.gmra.mxu1 %vm2088_vm2, %v3011_v46 }
 0x4e7   :  { %10207 = vmatprep.mubr.msk.bf16.mxu1 %vm10772_vm1, %v10771_v5 }
 0x504   :  { %v2956_v16 = vpop.xlane.xlu1 %2955 }
 0x505   :  { %10658 = vrcp.f32 %v2956_v16 }
 0x508   :  { %v375_v18 = vpop.permute.xlu1 %374  ;;  %v2959_v20 = vpop.xlane.xlu0 %2958 }
 0x509   :  { %10660 = vrcp.f32 %v2959_v20 }
 0x50c   :  { %v387_v57 = vpop.permute.xlu1 %386  ;;  %v2962_v29 = vpop.xlane.xlu0 %2961 }
 0x50d   :  { %10662 = vrcp.f32 %v2962_v29 }
 0x510   :  { %v399_v51 = vpop.permute.xlu1 %398  ;;  %v363_v39 = vpop.permute.xlu0 %362 }
 0x511   :  { %v1168_v35 = vcombine.low %v375_v18, %v399_v51  ;;  %v1169_v55 = vcombine.high %v375_v18, %v399_v51  ;;  %v1152_v10 = vcombine.low %v363_v39, %v387_v57  ;;  %v1153_v17 = vcombine.high %v363_v39, %v387_v57 }
 0x512   :  { %v10659_v38 = vpop.eup %10658 }
 0x513   :  { %v1176_v21 = vrot.slane %v1168_v35, %v11037_v19  ;;  %v1183_v56 = vrot.slane %v1169_v55, %v11037_v19  ;;  %v1160_v36 = vrot.slane %v1152_v10, %v11037_v19  ;;  %v1167_v33 = vrot.slane %v1153_v17, %v11037_v19 }
 0x514   :  { %v2996_v34 = vmul.f32 %v10659_v38, %v11681_v32 }
 0x515   :  { %v1184_v52 = vcombine.low %v1160_v36, %v1176_v21  ;;  %v1185_v15 = vcombine.high %v1160_v36, %v1176_v21  ;;  %v1200_v50 = vcombine.low %v1167_v33, %v1183_v56  ;;  %v1201_v45 = vcombine.high %v1167_v33, %v1183_v56 }
 0x516   :  { %v3012_v62 = vpack.c.bf16 %v2996_v34, %v2996_v34  ;;  %v10661_v0 = vpop.eup %10660 }
 0x517   :  { %v1192_v42 = vrot.slane %v1184_v52, %v11041_v28  ;;  %v1199_v6 = vrot.slane %v1185_v15, %v11041_v28  ;;  %v1208_v24 = vrot.slane %v1200_v50, %v11041_v28  ;;  %v1215_v3 = vrot.slane %v1201_v45, %v11041_v28 }
 0x518   :  { %10202 = vmatmul.mubr.msk.bf16.vlgmr.msra.gmra.mxu0 %vm2088_vm2, %v3012_v62  ;;  %v2997_v57 = vmul.f32 %v10661_v0, %v11685_v22 }
 0x519   :  { %v1968_v26 = vcombine.low %v1192_v42, %v1199_v6  ;;  %v9646_v1 = vcombine.high %v1192_v42, %v1199_v6  ;;  %v1984_v25 = vcombine.low %v1208_v24, %v1215_v3  ;;  %v9647_v14 = vcombine.high %v1208_v24, %v1215_v3  ;;  %10213 = vmatprep.mubr.msk.bf16.mxu0 %vm10772_vm1, %v10771_v5 }
 0x51a   :  { %v10663_v43 = vpop.eup %10662  ;;  %v3013_v10 = vpack.c.bf16 %v2997_v57, %v2997_v57 }
 0x51b   :  { %v1975_v32 = vrot.slane %v1968_v26, %v11037_v19  ;;  %v1983_v4 = vrot.slane %v9646_v1, %v11037_v19  ;;  %v1991_v63 = vrot.slane %v1984_v25, %v11037_v19  ;;  %v1999_v61 = vrot.slane %v9647_v14, %v11037_v19 }
 0x51c   :  { %v2998_v29 = vmul.f32 %v10663_v43, %v11689_v12 }
 0x51d   :  { %v2000_v31 = vcombine.low %v1975_v32, %v1983_v4  ;;  %v2016_v11 = vcombine.low %v1991_v63, %v1999_v61  ;;  %v2001_v40 = vcombine.high %v1975_v32, %v1983_v4  ;;  %v2017_v47 = vcombine.high %v1991_v63, %v1999_v61 }
 0x51e   :  { %v3014_v17 = vpack.c.bf16 %v2998_v29, %v2998_v29 }
 0x51f   :  { %v2008_v58 = vrot.slane %v2000_v31, %v11041_v28  ;;  %v2024_v44 = vrot.slane %v2016_v11, %v11041_v28  ;;  %v2015_v41 = vrot.slane %v2001_v40, %v11041_v28  ;;  %v2031_v9 = vrot.slane %v2017_v47, %v11041_v28 }
 0x521   :  { %v2032_v27 = vcombine.low %v2008_v58, %v2024_v44  ;;  %v2033_v30 = vcombine.high %v2008_v58, %v2024_v44  ;;  %v2034_v46 = vcombine.low %v2015_v41, %v2031_v9  ;;  %v2035_v16 = vcombine.high %v2015_v41, %v2031_v9 }
 0x523   :  { %v3029_v18 = vpack.c.bf16 %v2032_v27, %v2032_v27  ;;  %v3030_v20 = vpack.c.bf16 %v2033_v30, %v2033_v30  ;;  %v3031_v35 = vpack.c.bf16 %v2034_v46, %v2034_v46  ;;  %v3032_v55 = vpack.c.bf16 %v2035_v16, %v2035_v16 }
 0x525   :  { %v3590_v51 = vsel %vm3036_vm3, %v3029_v18, 0  ;;  %v3636_v39 = vsel %vm3036_vm3, %v3030_v20, 0  ;;  %v3682_v22 = vsel %vm3036_vm3, %v3031_v35, 0  ;;  %v3728_v12 = vsel %vm3036_vm3, %v3032_v55, 0 }
 0x526   :  { %10206 = vmatpush3.bf16.msra.mxu1 %v3590_v51  ;;  %10212 = vmatpush3.bf16.msra.mxu0 %v3636_v39 }
 0x527   :  { %10217 = vmatprep.subr.bf16.mxu1 %v10771_v5  ;;  %10223 = vmatprep.subr.bf16.mxu0 %v10771_v5 }
 0x529   :  { %10208 = vmatmul.mubr.msk.bf16.vlgmr.msra.gmra.mxu1 %vm2088_vm2, %v3013_v10  ;;  %10214 = vmatmul.mubr.msk.bf16.vlgmr.msra.gmra.mxu0 %vm2088_vm2, %v3014_v17 }
 0x52a   :  { %10218 = vmatpush3.bf16.msra.mxu1 %v3682_v22  ;;  %10224 = vmatpush3.bf16.msra.mxu0 %v3728_v12 }
 0x52b   :  { %10219 = vmatprep.mubr.msk.bf16.mxu1 %vm10772_vm1, %v10771_v5  ;;  %10225 = vmatprep.mubr.msk.bf16.mxu0 %vm10772_vm1, %v10771_v5 }
 0x542   :  { %v2968_v38 = vpop.xlane.xlu1 %2967  ;;  %v2965_v21 = vpop.xlane.xlu0 %2964 }
 0x543   :  { %10664 = vrcp.f32 %v2968_v38 }
 0x544   :  { %10666 = vrcp.f32 %v2965_v21 }
 0x550   :  { %v10665_v56 = vpop.eup %10664 }
 0x551   :  { %v10667_v36 = vpop.eup %10666  ;;  %v3000_v33 = vmul.f32 %v10665_v56, %v11755_v37 }
 0x552   :  { %v2999_v34 = vmul.f32 %v10667_v36, %v11762_v7 }
 0x553   :  { %v3016_v52 = vpack.c.bf16 %v3000_v33, %v3000_v33 }
 0x554   :  { %v3015_v15 = vpack.c.bf16 %v2999_v34, %v2999_v34 }
 0x555   :  { %10226 = vmatmul.mubr.msk.bf16.vlgmr.msra.gmra.mxu0 %vm2088_vm2, %v3016_v52 }
 0x556   :  { %10220 = vmatmul.mubr.msk.bf16.vlgmr.msra.gmra.mxu1 %vm2088_vm2, %v3015_v15 }
 0x56c   :  { %v3074_v50 = vpop.f32.mrf.mxu1 }
 0x56e   :  { %v10137_v45 = vpop.f32.mrf.mxu1 }
 0x570   :  { %v3077_v62 = vpop.f32.mrf.mxu1 }
 0x572   :  { %v10138_v42 = vpop.f32.mrf.mxu1 }
 0x577   :  { %v3120_v6 = vpop.f32.mrf.mxu0 }
 0x579   :  { %v10143_v24 = vpop.f32.mrf.mxu0 }
 0x57a   :  { %v3166_v3 = vpop.f32.mrf.mxu1 }
 0x57b   :  { %v3123_v26 = vpop.f32.mrf.mxu0  ;;  %v3770_v14 = vcombine.low %v3074_v50, %v3166_v3  ;;  %v3771_v37 = vcombine.high %v3074_v50, %v3166_v3 }
 0x57c   :  { %v10149_v1 = vpop.f32.mrf.mxu1 }
 0x57d   :  { %v10144_v25 = vpop.f32.mrf.mxu0  ;;  %v3778_v31 = vrot.slane %v3770_v14, %v11037_v19  ;;  %v3785_v11 = vrot.slane %v3771_v37, %v11037_v19 }
 0x57e   :  { %v3169_v32 = vpop.f32.mrf.mxu1 }
 0x57f   :  { %v3212_v7 = vpop.f32.mrf.mxu0 }
 0x580   :  { %v3786_v4 = vcombine.low %v3120_v6, %v3212_v7  ;;  %v3787_v63 = vcombine.high %v3120_v6, %v3212_v7  ;;  %v10150_v61 = vpop.f32.mrf.mxu1 }
 0x581   :  { %v10155_v0 = vpop.f32.mrf.mxu0 }
 0x582   :  { %v3794_v40 = vrot.slane %v3786_v4, %v11037_v19  ;;  %v3801_v47 = vrot.slane %v3787_v63, %v11037_v19 }
 0x583   :  { %v3215_v43 = vpop.f32.mrf.mxu0 }
 0x584   :  { %v3802_v58 = vcombine.low %v3778_v31, %v3794_v40  ;;  %v3803_v44 = vcombine.high %v3778_v31, %v3794_v40  ;;  %v3818_v41 = vcombine.low %v3785_v11, %v3801_v47  ;;  %v3819_v9 = vcombine.high %v3785_v11, %v3801_v47 }
 0x585   :  { %v10156_v27 = vpop.f32.mrf.mxu0 }
 0x586   :  { %v3810_v30 = vrot.slane %v3802_v58, %v11041_v28  ;;  %v3817_v46 = vrot.slane %v3803_v44, %v11041_v28  ;;  %v3826_v16 = vrot.slane %v3818_v41, %v11041_v28  ;;  %v3833_v18 = vrot.slane %v3819_v9, %v11041_v28 }
 0x587   :  { %v3258_v39 = vpop.f32.mrf.mxu1 }
 0x588   :  { %v4042_v20 = vcombine.low %v3810_v30, %v3817_v46  ;;  %v9680_v57 = vcombine.high %v3810_v30, %v3817_v46  ;;  %v4058_v29 = vcombine.low %v3826_v16, %v3833_v18  ;;  %v9681_v51 = vcombine.high %v3826_v16, %v3833_v18 }
 0x589   :  { %v10161_v22 = vpop.f32.mrf.mxu1 }
 0x58a   :  { %v11888_v35 = vrot.slane %v4042_v20, %v11037_v19  ;;  %v4057_v55 = vrot.slane %v9680_v57, %v11037_v19  ;;  %v11892_v10 = vrot.slane %v4058_v29, %v11037_v19  ;;  %v11895_v17 = vrot.slane %v9681_v51, %v11037_v19 }
 0x58b   :  { %v3261_v12 = vpop.f32.mrf.mxu1  ;;  %v3304_v38 = vpop.f32.mrf.mxu0 }
 0x58c   :  { %v4074_v21 = vcombine.low %v11888_v35, %v4057_v55  ;;  %v4090_v56 = vcombine.low %v11892_v10, %v11895_v17  ;;  %v4075_v51 = vcombine.high %v11888_v35, %v4057_v55 }
 0x58d   :  { %v10162_v36 = vpop.f32.mrf.mxu1  ;;  %v10167_v33 = vpop.f32.mrf.mxu0 }
 0x58e   :  { %v11901_v34 = vrot.slane %v4074_v21, %v11041_v28  ;;  %v11904_v52 = vrot.slane %v4090_v56, %v11041_v28  ;;  %v4089_v55 = vrot.slane %v4075_v51, %v11041_v28 }
 0x58f   :  { %v3307_v15 = vpop.f32.mrf.mxu0 }
 0x590   :  { %v4106_v50 = vcombine.low %v11901_v34, %v11904_v52 }
 0x591   :  { %v3350_v45 = vpop.f32.mrf.mxu1  ;;  %v10168_v62 = vpop.f32.mrf.mxu0 }
 0x592   :  { %v3838_v42 = vcombine.low %v3258_v39, %v3350_v45  ;;  %v3839_v6 = vcombine.high %v3258_v39, %v3350_v45  ;;  %v4091_v39 = vcombine.high %v11892_v10, %v11895_v17 }
 0x593   :  { %v10173_v24 = vpop.f32.mrf.mxu1  ;;  %v3396_v3 = vpop.f32.mrf.mxu0 }
 0x594   :  { %v3854_v1 = vcombine.low %v3304_v38, %v3396_v3  ;;  %v3855_v25 = vcombine.high %v3304_v38, %v3396_v3  ;;  %v3846_v37 = vrot.slane %v3838_v42, %v11037_v19  ;;  %v3853_v32 = vrot.slane %v3839_v6, %v11037_v19 }
 0x595   :  { %v3353_v26 = vpop.f32.mrf.mxu1  ;;  %v10179_v14 = vpop.f32.mrf.mxu0  ;;  %v4107_v42 = vcombine.high %v11901_v34, %v11904_v52  ;;  %v4105_v3 = vrot.slane %v4091_v39, %v11041_v28 }
 0x596   :  { %v3862_v7 = vrot.slane %v3854_v1, %v11037_v19  ;;  %v3869_v4 = vrot.slane %v3855_v25, %v11037_v19 }
 0x597   :  { %v10174_v63 = vpop.f32.mrf.mxu1  ;;  %v3399_v61 = vpop.f32.mrf.mxu0 }
 0x598   :  { %v3870_v0 = vcombine.low %v3846_v37, %v3862_v7  ;;  %v3871_v31 = vcombine.high %v3846_v37, %v3862_v7  ;;  %v3886_v11 = vcombine.low %v3853_v32, %v3869_v4  ;;  %v3887_v40 = vcombine.high %v3853_v32, %v3869_v4 }
 0x599   :  { %v10180_v47 = vpop.f32.mrf.mxu0  ;;  %v4108_v63 = vcombine.low %v4089_v55, %v4105_v3 }
 0x59a   :  { %v3878_v43 = vrot.slane %v3870_v0, %v11041_v28  ;;  %v3885_v58 = vrot.slane %v3871_v31, %v11041_v28  ;;  %v3894_v44 = vrot.slane %v3886_v11, %v11041_v28  ;;  %v3901_v41 = vrot.slane %v3887_v40, %v11041_v28 }
 0x59b   :  { %v4109_v40 = vcombine.high %v4089_v55, %v4105_v3 }
 0x59c   :  { %v4110_v9 = vcombine.low %v3878_v43, %v3885_v58  ;;  %v9682_v27 = vcombine.high %v3878_v43, %v3885_v58  ;;  %v4126_v30 = vcombine.low %v3894_v44, %v3901_v41  ;;  %v9683_v46 = vcombine.high %v3894_v44, %v3901_v41 }
 0x59e   :  { %v4117_v16 = vrot.slane %v4110_v9, %v11037_v19  ;;  %v4125_v18 = vrot.slane %v9682_v27, %v11037_v19  ;;  %v4133_v20 = vrot.slane %v4126_v30, %v11037_v19  ;;  %v4141_v57 = vrot.slane %v9683_v46, %v11037_v19  ;;  %v3442_v29 = vpop.f32.mrf.mxu1 }
 0x5a0   :  { %v10185_v22 = vpop.f32.mrf.mxu1  ;;  %v4142_v12 = vcombine.low %v4117_v16, %v4125_v18  ;;  %v4158_v38 = vcombine.low %v4133_v20, %v4141_v57  ;;  %v4143_v21 = vcombine.high %v4117_v16, %v4125_v18  ;;  %v4159_v56 = vcombine.high %v4133_v20, %v4141_v57 }
 0x5a2   :  { %v3445_v36 = vpop.f32.mrf.mxu1  ;;  %v3488_v33 = vpop.f32.mrf.mxu0  ;;  %v11924_v15 = vrot.slane %v4142_v12, %v11041_v28  ;;  %v11927_v45 = vrot.slane %v4158_v38, %v11041_v28  ;;  %v4157_v62 = vrot.slane %v4143_v21, %v11041_v28  ;;  %v4173_v35 = vrot.slane %v4159_v56, %v11041_v28 }
 0x5a4   :  { %v10186_v10 = vpop.f32.mrf.mxu1  ;;  %v10191_v17 = vpop.f32.mrf.mxu0  ;;  %v4175_v6 = vcombine.high %v11924_v15, %v11927_v45  ;;  %v4174_v24 = vcombine.low %v11924_v15, %v11927_v45  ;;  %v4176_v14 = vcombine.low %v4157_v62, %v4173_v35  ;;  %v4177_v31 = vcombine.high %v4157_v62, %v4173_v35 }
 0x5a6   :  { %v3491_v26 = vpop.f32.mrf.mxu0  ;;  %v3534_v1 = vpop.f32.mrf.mxu1  ;;  %v10542_v25 = vpack.i.bf16 %v4175_v6, %v4107_v42  ;;  %v10547_v0 = vpack.i.bf16 %v4176_v14, %v4108_v63  ;;  %v10552_v47 = vpack.i.bf16 %v4177_v31, %v4109_v40 }
 0x5a7   :  { %v3906_v37 = vcombine.low %v3442_v29, %v3534_v1  ;;  %v3907_v32 = vcombine.high %v3442_v29, %v3534_v1 }
 0x5a8   :  { %v10192_v7 = vpop.f32.mrf.mxu0  ;;  %v10197_v4 = vpop.f32.mrf.mxu1  ;;  %10543 = vrot.lane.b32.xlu0 %v10542_v25, %s13364_s3 }
 0x5a9   :  { %v3914_v9 = vrot.slane %v3906_v37, %v11037_v19  ;;  %v3921_v27 = vrot.slane %v3907_v32, %v11037_v19 }
 0x5aa   :  { %v3537_v61 = vpop.f32.mrf.mxu1 }
 0x5ac   :  { %v10198_v11 = vpop.f32.mrf.mxu1  ;;  %10548 = vrot.lane.b32.xlu0 %v10547_v0, %s13362_s0 }
 0x5b0   :  { %10553 = vrot.lane.b32.xlu0 %v10552_v47, %s13360_s1 }
 0x5d8   :  { %v3580_v43 = vpop.f32.mrf.mxu0 }
 0x5d9   :  { %v3922_v58 = vcombine.low %v3488_v33, %v3580_v43  ;;  %v3923_v44 = vcombine.high %v3488_v33, %v3580_v43 }
 0x5da   :  { %v10203_v41 = vpop.f32.mrf.mxu0 }
 0x5db   :  { %v3930_v30 = vrot.slane %v3922_v58, %v11037_v19  ;;  %v3937_v46 = vrot.slane %v3923_v44, %v11037_v19 }
 0x5dc   :  { %v3583_v16 = vpop.f32.mrf.mxu0 }
 0x5dd   :  { %v3938_v18 = vcombine.low %v3914_v9, %v3930_v30  ;;  %v3939_v20 = vcombine.high %v3914_v9, %v3930_v30  ;;  %v3954_v57 = vcombine.low %v3921_v27, %v3937_v46  ;;  %v3955_v29 = vcombine.high %v3921_v27, %v3937_v46 }
 0x5de   :  { %v10204_v51 = vpop.f32.mrf.mxu0 }
 0x5df   :  { %v3946_v39 = vrot.slane %v3938_v18, %v11041_v28  ;;  %v3953_v22 = vrot.slane %v3939_v20, %v11041_v28  ;;  %v3962_v12 = vrot.slane %v3954_v57, %v11041_v28  ;;  %v3969_v38 = vrot.slane %v3955_v29, %v11041_v28 }
 0x5e1   :  { %v4178_v21 = vcombine.low %v3946_v39, %v3953_v22  ;;  %v9684_v56 = vcombine.high %v3946_v39, %v3953_v22  ;;  %v4194_v36 = vcombine.low %v3962_v12, %v3969_v38  ;;  %v9685_v33 = vcombine.high %v3962_v12, %v3969_v38 }
 0x5e3   :  { %v4185_v62 = vrot.slane %v4178_v21, %v11037_v19  ;;  %v4193_v35 = vrot.slane %v9684_v56, %v11037_v19  ;;  %v4201_v55 = vrot.slane %v4194_v36, %v11037_v19  ;;  %v4209_v10 = vrot.slane %v9685_v33, %v11037_v19 }
 0x5e5   :  { %v4210_v17 = vcombine.low %v4185_v62, %v4193_v35  ;;  %v4226_v42 = vcombine.low %v4201_v55, %v4209_v10  ;;  %v4211_v6 = vcombine.high %v4185_v62, %v4193_v35  ;;  %v4227_v3 = vcombine.high %v4201_v55, %v4209_v10 }
 0x5e7   :  { %v11955_v26 = vrot.slane %v4210_v17, %v11041_v28  ;;  %v11958_v1 = vrot.slane %v4226_v42, %v11041_v28  ;;  %v11961_v25 = vrot.slane %v4211_v6, %v11041_v28  ;;  %v11964_v14 = vrot.slane %v4227_v3, %v11041_v28 }
 0x5e9   :  { %v3626_v37 = vpop.f32.mrf.mxu1  ;;  %v3672_v32 = vpop.f32.mrf.mxu0  ;;  %v4242_v7 = vcombine.low %v11955_v26, %v11958_v1  ;;  %v4243_v4 = vcombine.high %v11955_v26, %v11958_v1  ;;  %v4244_v63 = vcombine.low %v11961_v25, %v11964_v14  ;;  %v4245_v61 = vcombine.high %v11961_v25, %v11964_v14  ;;  %v9688_v26 = vld [vmem:[%s13328_s7] ss:$0 sm:$0xff] }
 0x5eb   :  { %v10209_v0 = vpop.f32.mrf.mxu1  ;;  %v10215_v31 = vpop.f32.mrf.mxu0 }
 0x5ed   :  { %v3629_v11 = vpop.f32.mrf.mxu1  ;;  %v3675_v40 = vpop.f32.mrf.mxu0 }
 0x5ef   :  { %v10210_v47 = vpop.f32.mrf.mxu1  ;;  %v10216_v43 = vpop.f32.mrf.mxu0 }
 0x615   :  { %v3764_v58 = vpop.f32.mrf.mxu0 }
 0x616   :  { %v3718_v44 = vpop.f32.mrf.mxu1  ;;  %v3990_v41 = vcombine.low %v3672_v32, %v3764_v58  ;;  %v3991_v9 = vcombine.high %v3672_v32, %v3764_v58 }
 0x617   :  { %v3974_v27 = vcombine.low %v3626_v37, %v3718_v44  ;;  %v3975_v30 = vcombine.high %v3626_v37, %v3718_v44  ;;  %v10227_v46 = vpop.f32.mrf.mxu0 }
 0x618   :  { %v3998_v16 = vrot.slane %v3990_v41, %v11037_v19  ;;  %v4005_v18 = vrot.slane %v3991_v9, %v11037_v19  ;;  %v10221_v20 = vpop.f32.mrf.mxu1 }
 0x619   :  { %v3982_v57 = vrot.slane %v3974_v27, %v11037_v19  ;;  %v3989_v29 = vrot.slane %v3975_v30, %v11037_v19  ;;  %v3767_v51 = vpop.f32.mrf.mxu0 }
 0x61a   :  { %v3721_v39 = vpop.f32.mrf.mxu1  ;;  %v10544_v36 = vpop.permute.xlu0 %10543 }
 0x61b   :  { %v4006_v22 = vcombine.low %v3982_v57, %v3998_v16  ;;  %v4007_v12 = vcombine.high %v3982_v57, %v3998_v16  ;;  %v4022_v38 = vcombine.low %v3989_v29, %v4005_v18  ;;  %v4023_v21 = vcombine.high %v3989_v29, %v4005_v18  ;;  %v10228_v56 = vpop.f32.mrf.mxu0 }
 0x61c   :  { %v10222_v33 = vpop.f32.mrf.mxu1  ;;  %v10546_v17 = vunpack.i.h.bf16 %v10544_v36  ;;  %v10545_v42 = vunpack.i.l.bf16 %v10544_v36  ;;  %v10575_v56 = vld [vmem:[%s13381_s29] sm:$0xff]  }
 0x61d   :  { %v4014_v62 = vrot.slane %v4006_v22, %v11041_v28  ;;  %v4021_v35 = vrot.slane %v4007_v12, %v11041_v28  ;;  %v4030_v55 = vrot.slane %v4022_v38, %v11041_v28  ;;  %v4037_v10 = vrot.slane %v4023_v21, %v11041_v28 }
 0x61e   :  { %v10549_v0 = vpop.permute.xlu0 %10548  ;;  %v4363_v44 = vsel %vm2088_vm2, %v4174_v24, %v10546_v17  ;;  %v4362_v41 = vsel %vm2088_vm2, %v4106_v50, %v10545_v42  ;;  %v10574_v50 = vld [vmem:[%s13381_s29 + $0x8] sm:$0xff]  }
 0x61f   :  { %v4246_v6 = vcombine.low %v4014_v62, %v4021_v35  ;;  %v9686_v3 = vcombine.high %v4014_v62, %v4021_v35  ;;  %v4262_v37 = vcombine.low %v4030_v55, %v4037_v10  ;;  %v9687_v32 = vcombine.high %v4030_v55, %v4037_v10  ;;  %10229 = vmatprep.subr.bf16.mxu1 %v10574_v50 }
 0x620   :  { %v10551_v31 = vunpack.i.h.bf16 %v10549_v0  ;;  %v10550_v11 = vunpack.i.l.bf16 %v10549_v0  ;;  %10230 = vmatpush3.bf16.msra.mxu1 %v10574_v50 }
 0x621   :  { %v4253_v40 = vrot.slane %v4246_v6, %v11037_v19  ;;  %v4261_v47 = vrot.slane %v9686_v3, %v11037_v19  ;;  %v4269_v43 = vrot.slane %v4262_v37, %v11037_v19  ;;  %v4277_v58 = vrot.slane %v9687_v32, %v11037_v19  ;;  %10231 = vmatprep.subr.bf16.mxu1 %v10575_v56 }
 0x622   :  { %v10554_v30 = vpop.permute.xlu0 %10553  ;;  %v4367_v18 = vsel %vm4366_vm4, %v4362_v41, %v10550_v11  ;;  %v4368_v20 = vsel %vm4366_vm4, %v4363_v44, %v10551_v31 }
 0x623   :  { %v4278_v9 = vcombine.low %v4253_v40, %v4261_v47  ;;  %v4294_v27 = vcombine.low %v4269_v43, %v4277_v58  ;;  %v4279_v46 = vcombine.high %v4253_v40, %v4261_v47  ;;  %v4295_v16 = vcombine.high %v4269_v43, %v4277_v58 }
 0x624   :  { %v10556_v57 = vunpack.i.h.bf16 %v10554_v30  ;;  %v10555_v29 = vunpack.i.l.bf16 %v10554_v30  ;;  %10232 = vmatpush3.bf16.msra.mxu1 %v10575_v56 }
 0x625   :  { %v4286_v15 = vrot.slane %v4278_v9, %v11041_v28  ;;  %v4302_v45 = vrot.slane %v4294_v27, %v11041_v28  ;;  %v4293_v34 = vrot.slane %v4279_v46, %v11041_v28  ;;  %v4309_v52 = vrot.slane %v4295_v16, %v11041_v28 }
 0x626   :  { %v4372_v24 = vsel %vm4371_vm5, %v4367_v18, %v10555_v29  ;;  %v4373_v51 = vsel %vm4371_vm5, %v4368_v20, %v10556_v57 }
 0x627   :  { %v4311_v39 = vcombine.high %v4286_v15, %v4302_v45  ;;  %v4310_v22 = vcombine.low %v4286_v15, %v4302_v45  ;;  %v4376_v12 = vpack.c.bf16 %v4373_v51, %v4372_v24  ;;  %v4312_v21 = vcombine.low %v4293_v34, %v4309_v52 }
 0x628   :  { %v4313_v33 = vcombine.high %v4293_v34, %v4309_v52 }
 0x629   :  { %v10557_v38 = vpack.i.bf16 %v4311_v39, %v4243_v4  ;;  %10233 = vmatprep.mubr.msk.bf16.mxu1 %vm78_vm0, %v4376_v12  ;;  %v10562_v36 = vpack.i.bf16 %v4312_v21, %v4244_v63 }
 0x62a   :  { %v10567_v4 = vpack.i.bf16 %v4313_v33, %v4245_v61  ;;  %v10576_v33 = vld [vmem:[%s13329_s10 + $0x8] sm:$0xff]  }
 0x62b   :  { %10558 = vrot.lane.b32.xlu1 %v10557_v38, %s13364_s3  ;;  %10237 = vmatprep.subr.bf16.mxu0 %v10576_v33 }
 0x62c   :  { %10238 = vmatpush3.bf16.msra.mxu0 %v10576_v33 }
 0x62f   :  { %10563 = vrot.lane.b32.xlu1 %v10562_v36, %s13362_s0 }
 0x633   :  { %10568 = vrot.lane.b32.xlu1 %v10567_v4, %s13360_s1  ;;  %v10577_v4 = vld [vmem:[%s13329_s10] sm:$0xff]   ;;  %s13382_s1 = smov 72  }
 0x634   :  { %10239 = vmatprep.subr.bf16.mxu0 %v10577_v4 }
 0x635   :  { %10240 = vmatpush3.bf16.msra.mxu0 %v10577_v4 }
 0x69d   :  { %v10559_v62 = vpop.permute.xlu1 %10558 }
 0x69e   :  { %v10561_v55 = vunpack.i.h.bf16 %v10559_v62  ;;  %v10560_v10 = vunpack.i.l.bf16 %v10559_v62 }
 0x6a0   :  { %v4364_v63 = vsel %vm2088_vm2, %v4242_v7, %v10560_v10  ;;  %v4365_v3 = vsel %vm2088_vm2, %v4310_v22, %v10561_v55 }
 0x6a1   :  { %v10564_v35 = vpop.permute.xlu1 %10563 }
 0x6a2   :  { %v10566_v17 = vunpack.i.h.bf16 %v10564_v35  ;;  %v10565_v42 = vunpack.i.l.bf16 %v10564_v35 }
 0x6a4   :  { %v4369_v25 = vsel %vm4366_vm4, %v4364_v63, %v10565_v42  ;;  %v4370_v14 = vsel %vm4366_vm4, %v4365_v3, %v10566_v17 }
 0x6a5   :  { %v10569_v6 = vpop.permute.xlu1 %10568 }
 0x6a6   :  { %v10571_v37 = vunpack.i.h.bf16 %v10569_v6  ;;  %v10570_v32 = vunpack.i.l.bf16 %v10569_v6 }
 0x6a8   :  { %v4374_v61 = vsel %vm4371_vm5, %v4369_v25, %v10570_v32  ;;  %v4375_v0 = vsel %vm4371_vm5, %v4370_v14, %v10571_v37 }
 0x6a9   :  { %v4377_v31 = vpack.c.bf16 %v4375_v0, %v4374_v61  ;;  %v9693_v0 = vld [vmem:[%s13330_s8] ss:$0 sm:$0xff] }
 0x6ab   :  { %10234 = vmatmul.mubr.msk.bf16.vlgmr.msra.gmra.mxu1 %vm78_vm0, %v4377_v31 }
 0x76b   :  { %v10235_v11 = vpop.f32.mrf.mxu1 }
 0x76c   :  { %v4450_v7 = vadd.f32 %v10235_v11, %v9688_v26 }
 0x76d   :  { %v4441_v1 = vpop.f32.mrf.mxu1 }
 0x76e   :  { %v4442_v40 = vadd.f32 %v9688_v26, %v4441_v1  ;;  %v4458_v27 = vadd.f32 %v4450_v7, %v10937_v59 }
 0x76f   :  { %v10236_v47 = vpop.f32.mrf.mxu1 }
 0x770   :  { %v4456_v43 = vadd.f32 %v4442_v40, %v10930_v53  ;;  %v4453_v44 = vadd.f32 %v10236_v47, %v9688_v26  ;;  %v4468_v16 = vsel %vm78_vm0, %v4458_v27, 0.0  ;;  %v9694_v40 = vld [vmem:[%s13331_s9] ss:$0 sm:$0xff] }
 0x771   :  { %v4444_v58 = vpop.f32.mrf.mxu1 }
 0x772   :  { %v4445_v41 = vadd.f32 %v9688_v26, %v4444_v58  ;;  %v4462_v9 = vsel %vm78_vm0, %v4456_v43, 0.0  ;;  %v4459_v18 = vadd.f32 %v4453_v44, %v10939_v60 }
 0x773   :  { %4463 = vadd.xlane.f32.xlu0 %v4462_v9 }
 0x774   :  { %v4457_v30 = vadd.f32 %v4445_v41, %v10932_v54  ;;  %v4471_v53 = vsel %vm78_vm0, %v4459_v18, 0.0 }
 0x776   :  { %v4465_v46 = vsel %vm78_vm0, %v4457_v30, 0.0 }
 0x777   :  { %4466 = vadd.xlane.f32.xlu1 %v4465_v46  ;;  %4469 = vadd.xlane.f32.xlu0 %v4468_v16 }
 0x77b   :  { %4472 = vadd.xlane.f32.xlu0 %v4471_v53  ;;  %v10578_v53 = vld [vmem:[%s13332_s12 + $0x18] sm:$0xff]  }
 0x77c   :  { %10245 = vmatprep.subr.bf16.mxu1 %v10578_v53 }
 0x77d   :  { %10246 = vmatpush3.bf16.msra.mxu1 %v10578_v53 }
 0x7fc   :  { %v4464_v20 = vpop.xlane.xlu0 %4463 }
 0x7fd   :  { %v4474_v57 = vmul.f32 0.03125, %v4464_v20  ;;  %v10579_v20 = vld [vmem:[%s13332_s12 + $0x10] sm:$0xff]  }
 0x7fe   :  { %10247 = vmatprep.subr.bf16.mxu1 %v10579_v20 }
 0x7ff   :  { %v4478_v29 = vsub.f32 %v4456_v43, %v4474_v57  ;;  %v10580_v57 = vld [vmem:[%s13332_s12 + $0x8] sm:$0xff]   ;;  %10248 = vmatpush3.bf16.msra.mxu1 %v10579_v20  ;;  %v9700_v20 = vld [vmem:[%s13334_s13] ss:$0 sm:$0xff] }
 0x800   :  { %v4467_v15 = vpop.xlane.xlu1 %4466  ;;  %v4470_v45 = vpop.xlane.xlu0 %4469  ;;  %10249 = vmatprep.subr.bf16.mxu1 %v10580_v57 }
 0x801   :  { %v4475_v59 = vmul.f32 0.03125, %v4467_v15  ;;  %v4476_v34 = vmul.f32 0.03125, %v4470_v45  ;;  %v4482_v52 = vmul.f32 %v4478_v29, %v4478_v29  ;;  %v9695_v15 = vld [vmem:[%s13333_s11] ss:$0 sm:$0xff] }
 0x803   :  { %v4479_v54 = vsub.f32 %v4457_v30, %v4475_v59  ;;  %v4480_v50 = vsub.f32 %v4458_v27, %v4476_v34  ;;  %v4486_v24 = vsel %vm78_vm0, %v4482_v52, 0.0  ;;  %10250 = vmatpush3.bf16.msra.mxu1 %v10580_v57 }
 0x804   :  { %4487 = vadd.xlane.f32.xlu0 %v4486_v24  ;;  %v4473_v51 = vpop.xlane.xlu0 %4472 }
 0x805   :  { %v4477_v60 = vmul.f32 0.03125, %v4473_v51  ;;  %v4483_v39 = vmul.f32 %v4479_v54, %v4479_v54  ;;  %v4484_v22 = vmul.f32 %v4480_v50, %v4480_v50 }
 0x807   :  { %v4481_v12 = vsub.f32 %v4459_v18, %v4477_v60  ;;  %v4489_v38 = vsel %vm78_vm0, %v4483_v39, 0.0  ;;  %v4492_v21 = vsel %vm78_vm0, %v4484_v22, 0.0 }
 0x808   :  { %4490 = vadd.xlane.f32.xlu1 %v4489_v38  ;;  %4493 = vadd.xlane.f32.xlu0 %v4492_v21 }
 0x809   :  { %v4485_v56 = vmul.f32 %v4481_v12, %v4481_v12 }
 0x80b   :  { %v4495_v36 = vsel %vm78_vm0, %v4485_v56, 0.0 }
 0x80c   :  { %4496 = vadd.xlane.f32.xlu1 %v4495_v36 }
 0x88d   :  { %v4488_v62 = vpop.xlane.xlu0 %4487 }
 0x88e   :  { %v4498_v35 = vmul.f32 0.03125, %v4488_v62 }
 0x890   :  { %v4502_v55 = vadd.f32 1e-12, %v4498_v35 }
 0x891   :  { %v4491_v10 = vpop.xlane.xlu1 %4490  ;;  %v4494_v17 = vpop.xlane.xlu0 %4493 }
 0x892   :  { %10668 = vrsqrt.f32 %v4502_v55  ;;  %v4499_v42 = vmul.f32 0.03125, %v4491_v10  ;;  %v4500_v6 = vmul.f32 0.03125, %v4494_v17 }
 0x894   :  { %v4503_v63 = vadd.f32 1e-12, %v4499_v42  ;;  %v4504_v3 = vadd.f32 1e-12, %v4500_v6 }
 0x895   :  { %v4497_v37 = vpop.xlane.xlu1 %4496 }
 0x896   :  { %10670 = vrsqrt.f32 %v4503_v63  ;;  %v4501_v32 = vmul.f32 0.03125, %v4497_v37 }
 0x897   :  { %10672 = vrsqrt.f32 %v4504_v3 }
 0x898   :  { %v4505_v25 = vadd.f32 1e-12, %v4501_v32 }
 0x89a   :  { %10674 = vrsqrt.f32 %v4505_v25 }
 0x89f   :  { %v10669_v14 = vpop.eup %10668 }
 0x8a0   :  { %v4510_v61 = vmul.f32 %v10669_v14, %v4478_v29  ;;  %v10581_v29 = vld [vmem:[%s13332_s12] sm:$0xff]  }
 0x8a1   :  { %10251 = vmatprep.subr.bf16.mxu1 %v10581_v29 }
 0x8a2   :  { %v4520_v1 = vmul.f32 %v9693_v0, %v4510_v61  ;;  %10252 = vmatpush3.bf16.msra.mxu1 %v10581_v29 }
 0x8a3   :  { %v10671_v31 = vpop.eup %10670  ;;  %10271 = vmatprep.subr.bf16.mxu1 %v10771_v5 }
 0x8a4   :  { %v10673_v11 = vpop.eup %10672  ;;  %v4511_v26 = vmul.f32 %v10671_v31, %v4479_v54  ;;  %v12058_v44 = vadd.f32 %v9694_v40, %v4520_v1 }
 0x8a5   :  { %v4512_v7 = vmul.f32 %v10673_v11, %v4480_v50 }
 0x8a6   :  { %v4521_v47 = vmul.f32 %v9693_v0, %v4511_v26 }
 0x8a7   :  { %v10675_v43 = vpop.eup %10674  ;;  %v4522_v9 = vmul.f32 %v9693_v0, %v4512_v7 }
 0x8a8   :  { %v4513_v58 = vmul.f32 %v10675_v43, %v4481_v12  ;;  %v12060_v41 = vadd.f32 %v9694_v40, %v4521_v47 }
 0x8a9   :  { %v12065_v46 = vadd.f32 %v9694_v40, %v4522_v9 }
 0x8aa   :  { %v4534_v27 = vpack.c.bf16 %v12060_v41, %v12058_v44  ;;  %v4523_v30 = vmul.f32 %v9693_v0, %v4513_v58 }
 0x8ac   :  { %10241 = vmatprep.mubr.msk.bf16.mxu0 %vm78_vm0, %v4534_v27  ;;  %v12067_v16 = vadd.f32 %v9694_v40, %v4523_v30 }
 0x8ae   :  { %v4535_v18 = vpack.c.bf16 %v12067_v16, %v12065_v46 }
 0x8b0   :  { %10242 = vmatmul.mubr.msk.bf16.vlgmr.msra.gmra.mxu0 %vm78_vm0, %v4535_v18 }
 0x970   :  { %v10243_v45 = vpop.f32.mrf.mxu0 }
 0x971   :  { %v4608_v59 = vadd.f32 %v10243_v45, %v9695_v15 }
 0x972   :  { %v4599_v34 = vpop.f32.mrf.mxu0 }
 0x973   :  { %v4616_v52 = vmul.f32 %v4608_v59, %v4608_v59  ;;  %v4600_v54 = vadd.f32 %v9695_v15, %v4599_v34 }
 0x974   :  { %v10244_v50 = vpop.f32.mrf.mxu0 }
 0x975   :  { %v4620_v24 = vmul.f32 %v4616_v52, %v4608_v59  ;;  %v4614_v51 = vmul.f32 %v4600_v54, %v4600_v54  ;;  %v4611_v60 = vadd.f32 %v10244_v50, %v9695_v15 }
 0x976   :  { %v4602_v39 = vpop.f32.mrf.mxu0 }
 0x977   :  { %v4624_v22 = vmul.f32 0.044715, %v4620_v24  ;;  %v4618_v12 = vmul.f32 %v4614_v51, %v4600_v54  ;;  %v4617_v38 = vmul.f32 %v4611_v60, %v4611_v60  ;;  %v4603_v21 = vadd.f32 %v9695_v15, %v4602_v39 }
 0x979   :  { %v4628_v56 = vadd.f32 %v4624_v22, %v4608_v59  ;;  %v4622_v36 = vmul.f32 0.044715, %v4618_v12  ;;  %v4621_v33 = vmul.f32 %v4617_v38, %v4611_v60  ;;  %v4615_v4 = vmul.f32 %v4603_v21, %v4603_v21 }
 0x97b   :  { %v4632_v62 = vmul.f32 0.7978846, %v4628_v56  ;;  %v4626_v35 = vadd.f32 %v4622_v36, %v4600_v54  ;;  %v4625_v55 = vmul.f32 0.044715, %v4621_v33  ;;  %v4619_v10 = vmul.f32 %v4615_v4, %v4603_v21 }
 0x97d   :  { %v4630_v17 = vmul.f32 0.7978846, %v4626_v35  ;;  %v4629_v42 = vadd.f32 %v4625_v55, %v4611_v60  ;;  %v4623_v6 = vmul.f32 0.044715, %v4619_v10  ;;  %10676 = vtanh.f32 %v4632_v62 }
 0x97f   :  { %10678 = vtanh.f32 %v4630_v17  ;;  %v4633_v63 = vmul.f32 0.7978846, %v4629_v42  ;;  %v4627_v3 = vadd.f32 %v4623_v6, %v4603_v21 }
 0x981   :  { %10680 = vtanh.f32 %v4633_v63  ;;  %v4631_v37 = vmul.f32 0.7978846, %v4627_v3 }
 0x983   :  { %10682 = vtanh.f32 %v4631_v37 }
 0x98a   :  { %v10677_v32 = vpop.eup %10676 }
 0x98b   :  { %v4640_v0 = vadd.f32 1.0, %v10677_v32  ;;  %v10582_v32 = vld [vmem:[%s13376_s25 + $0x18] sm:$0xff]  }
 0x98c   :  { %v10679_v25 = vpop.eup %10678  ;;  %10257 = vmatprep.subr.bf16.mxu0 %v10582_v32 }
 0x98d   :  { %v4638_v14 = vadd.f32 1.0, %v10679_v25  ;;  %v4644_v40 = vmul.f32 0.5, %v4640_v0  ;;  %v10583_v25 = vld [vmem:[%s13376_s25 + $0x10] sm:$0xff]   ;;  %10258 = vmatpush3.bf16.msra.mxu0 %v10582_v32  ;;  %s13390_s25 = smov 16  }
 0x98e   :  { %v10681_v61 = vpop.eup %10680  ;;  %10259 = vmatprep.subr.bf16.mxu0 %v10583_v25 }
 0x98f   :  { %v4641_v31 = vadd.f32 1.0, %v10681_v61  ;;  %v4642_v26 = vmul.f32 0.5, %v4638_v14  ;;  %v4648_v27 = vmul.f32 %v4644_v40, %v4608_v59 }
 0x990   :  { %v10683_v11 = vpop.eup %10682 }
 0x991   :  { %v4645_v1 = vmul.f32 0.5, %v4641_v31  ;;  %v4639_v7 = vadd.f32 1.0, %v10683_v11  ;;  %v4646_v58 = vmul.f32 %v4642_v26, %v4600_v54  ;;  %10260 = vmatpush3.bf16.msra.mxu0 %v10583_v25 }
 0x992   :  { %10265 = vmatprep.subr.bf16.mxu0 %v10771_v5 }
 0x993   :  { %v4643_v47 = vmul.f32 0.5, %v4639_v7  ;;  %v4649_v43 = vmul.f32 %v4645_v1, %v4611_v60 }
 0x995   :  { %v4647_v9 = vmul.f32 %v4643_v47, %v4603_v21  ;;  %v4651_v18 = vpack.c.bf16 %v4649_v43, %v4648_v27 }
 0x997   :  { %v4650_v30 = vpack.c.bf16 %v4647_v9, %v4646_v58 }
 0x999   :  { %10253 = vmatprep.mubr.msk.bf16.mxu1 %vm4691_vm6, %v4650_v30  ;;  %v9707_v30 = vld [vmem:[%s13335_s14] ss:$0 sm:$0xff] }
 0x99a   :  { %10254 = vmatmul.mubr.msk.bf16.vlgmr.msra.gmra.mxu1 %vm4691_vm6, %v4651_v18 }
 0x99b   :  { %10273 = vmatprep.mubr.msk.bf16.mxu1 %vm10772_vm1, %v10771_v5 }
 0xa5a   :  { %v10255_v53 = vpop.f32.mrf.mxu1 }
 0xa5b   :  { %v4741_v29 = vadd.f32 %v10255_v53, %v9700_v20 }
 0xa5c   :  { %v4732_v57 = vpop.f32.mrf.mxu1 }
 0xa5d   :  { %v4733_v15 = vadd.f32 %v9700_v20, %v4732_v57  ;;  %v4749_v52 = vadd.f32 %v4741_v29, %v12065_v46 }
 0xa5e   :  { %v10256_v45 = vpop.f32.mrf.mxu1 }
 0xa5f   :  { %v4747_v59 = vadd.f32 %v4733_v15, %v12058_v44  ;;  %v4744_v54 = vadd.f32 %v10256_v45, %v9700_v20  ;;  %v4759_v22 = vsel %vm78_vm0, %v4749_v52, 0.0  ;;  %v9708_v15 = vld [vmem:[%s13336_s15] ss:$0 sm:$0xff] }
 0xa60   :  { %v4735_v34 = vpop.f32.mrf.mxu1 }
 0xa61   :  { %v4736_v50 = vadd.f32 %v9700_v20, %v4735_v34  ;;  %v4753_v24 = vsel %vm78_vm0, %v4747_v59, 0.0  ;;  %v4750_v60 = vadd.f32 %v4744_v54, %v12067_v16 }
 0xa62   :  { %4754 = vadd.xlane.f32.xlu0 %v4753_v24 }
 0xa63   :  { %v4748_v51 = vadd.f32 %v4736_v50, %v12060_v41  ;;  %v4762_v44 = vsel %vm78_vm0, %v4750_v60, 0.0 }
 0xa65   :  { %v4756_v39 = vsel %vm78_vm0, %v4748_v51, 0.0 }
 0xa66   :  { %4757 = vadd.xlane.f32.xlu1 %v4756_v39  ;;  %4760 = vadd.xlane.f32.xlu0 %v4759_v22 }
 0xa6a   :  { %4763 = vadd.xlane.f32.xlu1 %v4762_v44 }
 0xaeb   :  { %v4755_v12 = vpop.xlane.xlu0 %4754 }
 0xaec   :  { %v4765_v46 = vmul.f32 0.03125, %v4755_v12  ;;  %v9714_v12 = vld [vmem:[%s13379_s23 + $0x1] ss:$0 sm:$0xff]  ;;  %s13383_s23 = smov 104  }
 0xaee   :  { %v4769_v38 = vsub.f32 %v4747_v59, %v4765_v46 }
 0xaef   :  { %v4758_v21 = vpop.xlane.xlu1 %4757  ;;  %v4761_v56 = vpop.xlane.xlu0 %4760 }
 0xaf0   :  { %v4766_v36 = vmul.f32 0.03125, %v4758_v21  ;;  %v4767_v33 = vmul.f32 0.03125, %v4761_v56  ;;  %v4773_v4 = vmul.f32 %v4769_v38, %v4769_v38 }
 0xaf2   :  { %v4770_v41 = vsub.f32 %v4748_v51, %v4766_v36  ;;  %v4771_v62 = vsub.f32 %v4749_v52, %v4767_v33  ;;  %v4777_v16 = vsel %vm78_vm0, %v4773_v4, 0.0 }
 0xaf3   :  { %v4764_v35 = vpop.xlane.xlu1 %4763  ;;  %4778 = vadd.xlane.f32.xlu0 %v4777_v16 }
 0xaf4   :  { %v4768_v55 = vmul.f32 0.03125, %v4764_v35  ;;  %v4774_v10 = vmul.f32 %v4770_v41, %v4770_v41  ;;  %v4775_v17 = vmul.f32 %v4771_v62, %v4771_v62 }
 0xaf6   :  { %v4772_v42 = vsub.f32 %v4750_v60, %v4768_v55  ;;  %v4780_v6 = vsel %vm78_vm0, %v4774_v10, 0.0  ;;  %v4783_v63 = vsel %vm78_vm0, %v4775_v17, 0.0 }
 0xaf7   :  { %4781 = vadd.xlane.f32.xlu1 %v4780_v6  ;;  %4784 = vadd.xlane.f32.xlu0 %v4783_v63 }
 0xaf8   :  { %v4776_v3 = vmul.f32 %v4772_v42, %v4772_v42 }
 0xafa   :  { %v4786_v37 = vsel %vm78_vm0, %v4776_v3, 0.0 }
 0xafb   :  { %4787 = vadd.xlane.f32.xlu1 %v4786_v37 }
 0xb7c   :  { %v4779_v14 = vpop.xlane.xlu0 %4778 }
 0xb7d   :  { %v4789_v61 = vmul.f32 0.03125, %v4779_v14 }
 0xb7f   :  { %v4793_v0 = vadd.f32 1e-12, %v4789_v61 }
 0xb80   :  { %v4782_v31 = vpop.xlane.xlu1 %4781  ;;  %v4785_v11 = vpop.xlane.xlu0 %4784 }
 0xb81   :  { %10684 = vrsqrt.f32 %v4793_v0  ;;  %v4790_v26 = vmul.f32 0.03125, %v4782_v31  ;;  %v4791_v1 = vmul.f32 0.03125, %v4785_v11 }
 0xb83   :  { %v4794_v7 = vadd.f32 1e-12, %v4790_v26  ;;  %v4795_v40 = vadd.f32 1e-12, %v4791_v1 }
 0xb84   :  { %v4788_v47 = vpop.xlane.xlu1 %4787 }
 0xb85   :  { %10686 = vrsqrt.f32 %v4794_v7  ;;  %v4792_v43 = vmul.f32 0.03125, %v4788_v47 }
 0xb86   :  { %10688 = vrsqrt.f32 %v4795_v40 }
 0xb87   :  { %v4796_v58 = vadd.f32 1e-12, %v4792_v43 }
 0xb89   :  { %10690 = vrsqrt.f32 %v4796_v58 }
 0xb8e   :  { %v10685_v9 = vpop.eup %10684 }
 0xb8f   :  { %v4801_v27 = vmul.f32 %v10685_v9, %v4769_v38 }
 0xb91   :  { %v4811_v57 = vmul.f32 %v9707_v30, %v4801_v27 }
 0xb92   :  { %v10687_v18 = vpop.eup %10686 }
 0xb93   :  { %v10689_v53 = vpop.eup %10688  ;;  %v4802_v20 = vmul.f32 %v10687_v18, %v4770_v41  ;;  %v12120_v52 = vadd.f32 %v9708_v15, %v4811_v57 }
 0xb94   :  { %v4803_v29 = vmul.f32 %v10689_v53, %v4771_v62 }
 0xb95   :  { %v4812_v45 = vmul.f32 %v9707_v30, %v4802_v20 }
 0xb96   :  { %v10691_v59 = vpop.eup %10690  ;;  %v4813_v50 = vmul.f32 %v9707_v30, %v4803_v29 }
 0xb97   :  { %v4804_v34 = vmul.f32 %v10691_v59, %v4772_v42  ;;  %v12122_v54 = vadd.f32 %v9708_v15, %v4812_v45 }
 0xb98   :  { %v12127_v60 = vadd.f32 %v9708_v15, %v4813_v50 }
 0xb99   :  { %v4825_v24 = vpack.c.bf16 %v12122_v54, %v12120_v52  ;;  %v4814_v51 = vmul.f32 %v9707_v30, %v4804_v34 }
 0xb9b   :  { %10261 = vmatprep.mubr.msk.bf16.mxu0 %vm78_vm0, %v4825_v24  ;;  %v12129_v39 = vadd.f32 %v9708_v15, %v4814_v51 }
 0xb9d   :  { %v4826_v22 = vpack.c.bf16 %v12129_v39, %v12127_v60 }
 0xb9f   :  { %10262 = vmatmul.mubr.msk.bf16.vlgmr.msra.gmra.mxu0 %vm78_vm0, %v4826_v22 }
 0xba0   :  { %10267 = vmatprep.mubr.msk.bf16.mxu0 %vm10772_vm1, %v10771_v5 }
 0xc5f   :  { %v10263_v44 = vpop.f32.mrf.mxu0 }
 0xc60   :  { %v12167_v33 = vadd.f32 %v10263_v44, %v9714_v12 }
 0xc61   :  { %v4892_v46 = vpop.f32.mrf.mxu0 }
 0xc62   :  { %v12139_v38 = vadd.f32 %v9714_v12, %v4892_v46 }
 0xc63   :  { %v10264_v21 = vpop.f32.mrf.mxu0 }
 0xc64   :  { %4959 = vrot.lane.b32.xlu1 %v12139_v38, %s10764_s4  ;;  %4947 = vrot.lane.b32.xlu0 %v12139_v38, %s10765_s24  ;;  %v12185_v4 = vadd.f32 %v10264_v21, %v9714_v12 }
 0xc65   :  { %v4895_v56 = vpop.f32.mrf.mxu0 }
 0xc66   :  { %v12153_v36 = vadd.f32 %v9714_v12, %v4895_v56 }
 0xc68   :  { %4971 = vrot.lane.b32.xlu1 %v12139_v38, %s10766_s6  ;;  %4911 = vrot.lane.b32.xlu0 %v12139_v38, %s10767_s26 }
 0xc6c   :  { %4983 = vrot.lane.b32.xlu1 %v12139_v38, %s13382_s1  ;;  %4935 = vrot.lane.b32.xlu0 %v12139_v38, %s13383_s23 }
 0xc70   :  { %4923 = vrot.lane.b32.xlu1 %v12139_v38, %s13384_s27  ;;  %4961 = vrot.lane.b32.xlu0 %v12153_v36, %s10764_s4 }
 0xc74   :  { %4949 = vrot.lane.b32.xlu1 %v12153_v36, %s10765_s24  ;;  %4985 = vrot.lane.b32.xlu0 %v12153_v36, %s13382_s1 }
 0xc78   :  { %4973 = vrot.lane.b32.xlu1 %v12153_v36, %s10766_s6  ;;  %4925 = vrot.lane.b32.xlu0 %v12153_v36, %s13384_s27 }
 0xc7c   :  { %4913 = vrot.lane.b32.xlu1 %v12153_v36, %s10767_s26  ;;  %4951 = vrot.lane.b32.xlu0 %v12167_v33, %s10765_s24 }
 0xc80   :  { %4937 = vrot.lane.b32.xlu1 %v12153_v36, %s13383_s23  ;;  %4975 = vrot.lane.b32.xlu0 %v12167_v33, %s10766_s6 }
 0xc84   :  { %4963 = vrot.lane.b32.xlu1 %v12167_v33, %s10764_s4  ;;  %4915 = vrot.lane.b32.xlu0 %v12167_v33, %s10767_s26 }
 0xc88   :  { %4987 = vrot.lane.b32.xlu1 %v12167_v33, %s13382_s1  ;;  %4939 = vrot.lane.b32.xlu0 %v12167_v33, %s13383_s23 }
 0xc8c   :  { %4927 = vrot.lane.b32.xlu1 %v12167_v33, %s13384_s27  ;;  %4965 = vrot.lane.b32.xlu0 %v12185_v4, %s10764_s4  ;;  %s13386_s4 = smov 56  }
 0xc90   :  { %4953 = vrot.lane.b32.xlu1 %v12185_v4, %s10765_s24  ;;  %4989 = vrot.lane.b32.xlu0 %v12185_v4, %s13382_s1  ;;  %s13387_s24 = smov 48  }
 0xc94   :  { %4977 = vrot.lane.b32.xlu1 %v12185_v4, %s10766_s6  ;;  %4929 = vrot.lane.b32.xlu0 %v12185_v4, %s13384_s27  ;;  %s13388_s6 = smov 40  }
 0xc98   :  { %4917 = vrot.lane.b32.xlu1 %v12185_v4, %s10767_s26  ;;  %4995 = vrot.lane.b32.xlu0 %v12139_v38, %s13385_s28  ;;  %s13389_s26 = smov 8  }
 0xc9c   :  { %4941 = vrot.lane.b32.xlu1 %v12185_v4, %s13383_s23  ;;  %4997 = vrot.lane.b32.xlu0 %v12153_v36, %s13385_s28 }
 0xca0   :  { %5007 = vrot.lane.b32.xlu1 %v12139_v38, %s13386_s4 }
 0xca4   :  { %5019 = vrot.lane.b32.xlu1 %v12139_v38, %s13387_s24 }
 0xca8   :  { %5031 = vrot.lane.b32.xlu1 %v12139_v38, %s13388_s6 }
 0xcac   :  { %5009 = vrot.lane.b32.xlu1 %v12153_v36, %s13386_s4 }
 0xcb0   :  { %5021 = vrot.lane.b32.xlu1 %v12153_v36, %s13387_s24 }
 0xcb4   :  { %5033 = vrot.lane.b32.xlu1 %v12153_v36, %s13388_s6 }
 0xcd6   :  { %v4960_v41 = vpop.permute.xlu1 %4959  ;;  %v4948_v62 = vpop.permute.xlu0 %4947 }
 0xcda   :  { %v4972_v16 = vpop.permute.xlu1 %4971  ;;  %v4912_v35 = vpop.permute.xlu0 %4911 }
 0xcdb   :  { %v5075_v55 = vcombine.low %v4948_v62, %v4972_v16  ;;  %v5076_v10 = vcombine.high %v4948_v62, %v4972_v16 }
 0xcdd   :  { %v5083_v3 = vrot.slane %v5075_v55, %v11037_v19  ;;  %v5090_v37 = vrot.slane %v5076_v10, %v11037_v19 }
 0xcde   :  { %v4984_v17 = vpop.permute.xlu1 %4983  ;;  %v4936_v42 = vpop.permute.xlu0 %4935 }
 0xcdf   :  { %v5091_v6 = vcombine.low %v4960_v41, %v4984_v17  ;;  %v5092_v63 = vcombine.high %v4960_v41, %v4984_v17  ;;  %v5059_v14 = vcombine.low %v4912_v35, %v4936_v42  ;;  %v5060_v61 = vcombine.high %v4912_v35, %v4936_v42 }
 0xce1   :  { %v5099_v32 = vrot.slane %v5091_v6, %v11037_v19  ;;  %v5106_v25 = vrot.slane %v5092_v63, %v11037_v19  ;;  %v5067_v30 = vrot.slane %v5059_v14, %v11037_v19  ;;  %v5074_v18 = vrot.slane %v5060_v61, %v11037_v19 }
 0xce2   :  { %v4924_v0 = vpop.permute.xlu1 %4923  ;;  %v4962_v31 = vpop.permute.xlu0 %4961 }
 0xce3   :  { %v5139_v11 = vcombine.low %v5083_v3, %v5099_v32  ;;  %v5140_v26 = vcombine.high %v5083_v3, %v5099_v32  ;;  %v5155_v1 = vcombine.low %v5090_v37, %v5106_v25  ;;  %v5156_v7 = vcombine.high %v5090_v37, %v5106_v25 }
 0xce4   :  { %v5043_v40 = vcombine.low %v12139_v38, %v4924_v0  ;;  %v5044_v47 = vcombine.high %v12139_v38, %v4924_v0 }
 0xce5   :  { %v5147_v43 = vrot.slane %v5139_v11, %v11041_v28  ;;  %v5154_v58 = vrot.slane %v5140_v26, %v11041_v28  ;;  %v5163_v9 = vrot.slane %v5155_v1, %v11041_v28  ;;  %v5170_v27 = vrot.slane %v5156_v7, %v11041_v28 }
 0xce6   :  { %v5051_v53 = vrot.slane %v5043_v40, %v11037_v19  ;;  %v5058_v20 = vrot.slane %v5044_v47, %v11037_v19  ;;  %v4950_v57 = vpop.permute.xlu1 %4949  ;;  %v4986_v29 = vpop.permute.xlu0 %4985 }
 0xce7   :  { %v9720_v15 = vcombine.low %v5147_v43, %v5154_v58  ;;  %v9722_v45 = vcombine.high %v5147_v43, %v5154_v58  ;;  %v9724_v59 = vcombine.low %v5163_v9, %v5170_v27  ;;  %v9726_v34 = vcombine.high %v5163_v9, %v5170_v27 }
 0xce8   :  { %v5107_v50 = vcombine.low %v5051_v53, %v5067_v30  ;;  %v5108_v24 = vcombine.high %v5051_v53, %v5067_v30  ;;  %v5123_v51 = vcombine.low %v5058_v20, %v5074_v18  ;;  %v5124_v22 = vcombine.high %v5058_v20, %v5074_v18 }
 0xce9   :  { %v12234_v44 = vrot.slane %v9720_v15, %v11037_v19  ;;  %v12237_v12 = vrot.slane %v9722_v45, %v11037_v19  ;;  %v12240_v46 = vrot.slane %v9724_v59, %v11037_v19  ;;  %v12243_v38 = vrot.slane %v9726_v34, %v11037_v19 }
 0xcea   :  { %v5115_v21 = vrot.slane %v5107_v50, %v11041_v28  ;;  %v5122_v56 = vrot.slane %v5108_v24, %v11041_v28  ;;  %v5131_v41 = vrot.slane %v5123_v51, %v11041_v28  ;;  %v5138_v62 = vrot.slane %v5124_v22, %v11041_v28  ;;  %v4974_v16 = vpop.permute.xlu1 %4973  ;;  %v4926_v35 = vpop.permute.xlu0 %4925 }
 0xceb   :  { %v5295_v55 = vcombine.low %v4962_v31, %v4986_v29  ;;  %v5296_v10 = vcombine.high %v4962_v31, %v4986_v29  ;;  %v5279_v17 = vcombine.low %v4950_v57, %v4974_v16  ;;  %v5280_v42 = vcombine.high %v4950_v57, %v4974_v16 }
 0xcec   :  { %v9719_v6 = vcombine.low %v5115_v21, %v5122_v56  ;;  %v9721_v63 = vcombine.high %v5115_v21, %v5122_v56  ;;  %v9723_v3 = vcombine.low %v5131_v41, %v5138_v62  ;;  %v9725_v37 = vcombine.high %v5131_v41, %v5138_v62 }
 0xced   :  { %v5303_v32 = vrot.slane %v5295_v55, %v11037_v19  ;;  %v5310_v25 = vrot.slane %v5296_v10, %v11037_v19  ;;  %v5287_v14 = vrot.slane %v5279_v17, %v11037_v19  ;;  %v5294_v61 = vrot.slane %v5280_v42, %v11037_v19 }
 0xcee   :  { %v12254_v0 = vrot.slane %v9719_v6, %v11037_v19  ;;  %v12257_v11 = vrot.slane %v9721_v63, %v11037_v19  ;;  %v12260_v31 = vrot.slane %v9723_v3, %v11037_v19  ;;  %v12263_v26 = vrot.slane %v9725_v37, %v11037_v19  ;;  %v4914_v1 = vpop.permute.xlu1 %4913  ;;  %v4952_v7 = vpop.permute.xlu0 %4951 }
 0xcef   :  { %v5343_v40 = vcombine.low %v5287_v14, %v5303_v32  ;;  %v5344_v47 = vcombine.high %v5287_v14, %v5303_v32  ;;  %v5359_v43 = vcombine.low %v5294_v61, %v5310_v25  ;;  %v5360_v58 = vcombine.high %v5294_v61, %v5310_v25 }
 0xcf0   :  { %v5923_v9 = vcombine.low %v12254_v0, %v12257_v11  ;;  %v5924_v20 = vcombine.high %v12254_v0, %v12257_v11  ;;  %v5955_v57 = vcombine.low %v12260_v31, %v12263_v26  ;;  %v5247_v29 = vcombine.low %v12153_v36, %v4926_v35 }
 0xcf1   :  { %v12268_v27 = vrot.slane %v5343_v40, %v11041_v28  ;;  %v12271_v30 = vrot.slane %v5344_v47, %v11041_v28  ;;  %v12274_v18 = vrot.slane %v5359_v43, %v11041_v28  ;;  %v12277_v53 = vrot.slane %v5360_v58, %v11041_v28 }
 0xcf2   :  { %v5248_v15 = vcombine.high %v12153_v36, %v4926_v35  ;;  %v4938_v45 = vpop.permute.xlu1 %4937  ;;  %v4976_v59 = vpop.permute.xlu0 %4975  ;;  %v5956_v34 = vcombine.high %v12260_v31, %v12263_v26  ;;  %v5939_v24 = vcombine.low %v12234_v44, %v12237_v12  ;;  %v5971_v51 = vcombine.low %v12240_v46, %v12243_v38 }
 0xcf3   :  { %v9730_v50 = vcombine.low %v12268_v27, %v12271_v30  ;;  %v9732_v22 = vcombine.high %v12268_v27, %v12271_v30  ;;  %v9734_v36 = vcombine.low %v12274_v18, %v12277_v53  ;;  %v5263_v21 = vcombine.low %v4914_v1, %v4938_v45 }
 0xcf4   :  { %v5264_v56 = vcombine.high %v4914_v1, %v4938_v45  ;;  %v9736_v62 = vcombine.high %v12274_v18, %v12277_v53  ;;  %v5255_v16 = vrot.slane %v5247_v29, %v11037_v19  ;;  %v5262_v35 = vrot.slane %v5248_v15, %v11037_v19 }
 0xcf5   :  { %v12298_v41 = vrot.slane %v9730_v50, %v11037_v19  ;;  %v5271_v55 = vrot.slane %v5263_v21, %v11037_v19  ;;  %v5483_v17 = vcombine.low %v4952_v7, %v4976_v59  ;;  %v5484_v42 = vcombine.high %v4952_v7, %v4976_v59 }
 0xcf6   :  { %v5278_v10 = vrot.slane %v5264_v56, %v11037_v19  ;;  %v4964_v6 = vpop.permute.xlu1 %4963  ;;  %v12306_v63 = vpop.permute.xlu0 %4915  ;;  %v5947_v3 = vrot.slane %v5939_v24, %v11041_v28  ;;  %v5979_v37 = vrot.slane %v5971_v51, %v11041_v28  ;;  %v5931_v32 = vrot.slane %v5923_v9, %v11041_v28 }
 0xcf7   :  { %v5963_v25 = vrot.slane %v5955_v57, %v11041_v28  ;;  %v5311_v14 = vcombine.low %v5255_v16, %v5271_v55  ;;  %v5312_v61 = vcombine.high %v5255_v16, %v5271_v55  ;;  %v5491_v47 = vrot.slane %v5483_v17, %v11037_v19 }
 0xcf8   :  { %v5327_v1 = vcombine.low %v5262_v35, %v5278_v10  ;;  %v5328_v40 = vcombine.high %v5262_v35, %v5278_v10  ;;  %v5498_v43 = vrot.slane %v5484_v42, %v11037_v19  ;;  %v5991_v7 = vcombine.low %v5947_v3, %v5979_v37 }
 0xcf9   :  { %v5992_v58 = vcombine.high %v5947_v3, %v5979_v37  ;;  %v5319_v27 = vrot.slane %v5311_v14, %v11041_v28  ;;  %v5326_v30 = vrot.slane %v5312_v61, %v11041_v28 }
 0xcfa   :  { %v5335_v18 = vrot.slane %v5327_v1, %v11041_v28  ;;  %v5342_v9 = vrot.slane %v5328_v40, %v11041_v28  ;;  %v4988_v53 = vpop.permute.xlu1 %4987  ;;  %v4940_v57 = vpop.permute.xlu0 %4939  ;;  %v6691_v29 = vpack.c.bf16 %v5991_v7, %v5991_v7  ;;  %v12337_v7 = vrot.slane %v9732_v22, %v11037_v19 }
 0xcfb   :  { %v6692_v15 = vpack.c.bf16 %v5992_v58, %v5992_v58  ;;  %v5499_v45 = vcombine.low %v4964_v6, %v4988_v53  ;;  %v5500_v59 = vcombine.high %v4964_v6, %v4988_v53  ;;  %v9729_v50 = vcombine.low %v5319_v27, %v5326_v30 }
 0xcfc   :  { %v9731_v24 = vcombine.high %v5319_v27, %v5326_v30  ;;  %v9733_v51 = vcombine.low %v5335_v18, %v5342_v9  ;;  %v9735_v21 = vcombine.high %v5335_v18, %v5342_v9  ;;  %v6711_v56 = vsel %vm2088_vm2, %v6691_v29, 0 }
 0xcfd   :  { %v6757_v16 = vsel %vm2088_vm2, %v6692_v15, 0  ;;  %v5507_v35 = vrot.slane %v5499_v45, %v11037_v19  ;;  %v5514_v55 = vrot.slane %v5500_v59, %v11037_v19  ;;  %v12323_v10 = vrot.slane %v9729_v50, %v11037_v19  ;;  %10266 = vmatpush3.bf16.xpose.msra.mxu0 %v6711_v56 }
 0xcfe   :  { %v12326_v17 = vrot.slane %v9731_v24, %v11037_v19  ;;  %v12329_v42 = vrot.slane %v9733_v51, %v11037_v19  ;;  %v12332_v6 = vrot.slane %v9735_v21, %v11037_v19  ;;  %v4928_v3 = vpop.permute.xlu1 %4927  ;;  %v12334_v37 = vpop.permute.xlu0 %4965  ;;  %10272 = vmatpush3.bf16.xpose.msra.mxu1 %v6757_v16  ;;  %v12340_v58 = vrot.slane %v9734_v36, %v11037_v19 }
 0xcff   :  { %v5547_v14 = vcombine.low %v5491_v47, %v5507_v35  ;;  %v5548_v61 = vcombine.high %v5491_v47, %v5507_v35  ;;  %v5563_v1 = vcombine.low %v5498_v43, %v5514_v55  ;;  %v5564_v40 = vcombine.high %v5498_v43, %v5514_v55  ;;  %10277 = vmatprep.subr.bf16.mxu0 %v10771_v5 }
 0xd00   :  { %v12343_v27 = vrot.slane %v9736_v62, %v11037_v19  ;;  %v6127_v30 = vcombine.low %v12323_v10, %v12326_v17  ;;  %10283 = vmatprep.subr.bf16.mxu1 %v10771_v5  ;;  %v5467_v36 = vcombine.low %v12306_v63, %v4940_v57  ;;  %v5468_v62 = vcombine.high %v12306_v63, %v4940_v57 }
 0xd01   :  { %v5555_v18 = vrot.slane %v5547_v14, %v11041_v28  ;;  %v5562_v47 = vrot.slane %v5548_v61, %v11041_v28  ;;  %v5571_v43 = vrot.slane %v5563_v1, %v11041_v28  ;;  %v5578_v22 = vrot.slane %v5564_v40, %v11041_v28 }
 0xd02   :  { %v5987_v9 = vcombine.low %v5931_v32, %v5963_v25  ;;  %v5988_v53 = vcombine.high %v5931_v32, %v5963_v25  ;;  %v12355_v29 = vpop.permute.xlu1 %4953  ;;  %v6128_v15 = vcombine.high %v12323_v10, %v12326_v17  ;;  %v6159_v45 = vcombine.low %v12329_v42, %v12332_v6  ;;  %v4990_v16 = vpop.permute.xlu0 %4989 }
 0xd03   :  { %v9740_v59 = vcombine.low %v5555_v18, %v5562_v47  ;;  %v9742_v50 = vcombine.high %v5555_v18, %v5562_v47  ;;  %v6160_v24 = vcombine.high %v12329_v42, %v12332_v6  ;;  %v9744_v51 = vcombine.low %v5571_v43, %v5578_v22 }
 0xd04   :  { %v6675_v21 = vpack.c.bf16 %v5987_v9, %v5987_v9  ;;  %v6676_v56 = vpack.c.bf16 %v5988_v53, %v5988_v53  ;;  %v9746_v32 = vcombine.high %v5571_v43, %v5578_v22  ;;  %v5475_v25 = vrot.slane %v5467_v36, %v11037_v19 }
 0xd05   :  { %v12364_v63 = vrot.slane %v9740_v59, %v11037_v19  ;;  %v5482_v57 = vrot.slane %v5468_v62, %v11037_v19  ;;  %v5940_v35 = vcombine.high %v12234_v44, %v12237_v12  ;;  %v5972_v55 = vcombine.high %v12240_v46, %v12243_v38 }
 0xd06   :  { %10268 = vmatmul.mubr.msk.bf16.vlgmr.msra.gmra.mxu0 %vm2088_vm2, %v6675_v21  ;;  %10274 = vmatmul.mubr.msk.bf16.vlgmr.msra.gmra.mxu1 %vm2088_vm2, %v6676_v56  ;;  %v5451_v14 = vcombine.low %v12167_v33, %v4928_v3  ;;  %v12375_v61 = vpop.permute.xlu1 %4977  ;;  %v12378_v1 = vrot.slane %v9742_v50, %v11037_v19  ;;  %v5452_v40 = vcombine.high %v12167_v33, %v4928_v3 }
 0xd07   :  { %10279 = vmatprep.mubr.msk.bf16.mxu0 %vm10772_vm1, %v10771_v5  ;;  %10285 = vmatprep.mubr.msk.bf16.mxu1 %vm10772_vm1, %v10771_v5  ;;  %v5703_v44 = vcombine.low %v12334_v37, %v4990_v16  ;;  %v12387_v12 = vrot.slane %v9744_v51, %v11037_v19  ;;  %v5954_v46 = vrot.slane %v5940_v35, %v11041_v28 }
 0xd08   :  { %v5986_v38 = vrot.slane %v5972_v55, %v11041_v28  ;;  %v5459_v18 = vrot.slane %v5451_v14, %v11037_v19  ;;  %v12393_v47 = vrot.slane %v9746_v32, %v11037_v19  ;;  %v5466_v3 = vrot.slane %v5452_v40, %v11037_v19 }
 0xd09   :  { %v5938_v43 = vrot.slane %v5924_v20, %v11041_v28  ;;  %v5970_v22 = vrot.slane %v5956_v34, %v11041_v28  ;;  %v5704_v21 = vcombine.high %v12334_v37, %v4990_v16  ;;  %v5711_v56 = vrot.slane %v5703_v44, %v11037_v19 }
 0xd0a   :  { %v5993_v36 = vcombine.low %v5954_v46, %v5986_v38  ;;  %v5994_v62 = vcombine.high %v5954_v46, %v5986_v38  ;;  %v5515_v9 = vcombine.low %v5459_v18, %v5475_v25  ;;  %v5516_v53 = vcombine.high %v5459_v18, %v5475_v25  ;;  %v12404_v59 = vpop.permute.xlu1 %4917 }
 0xd0b   :  { %v5531_v50 = vcombine.low %v5466_v3, %v5482_v57  ;;  %v5532_v51 = vcombine.high %v5466_v3, %v5482_v57  ;;  %v5989_v34 = vcombine.low %v5938_v43, %v5970_v22  ;;  %v5990_v25 = vcombine.high %v5938_v43, %v5970_v22 }
 0xd0c   :  { %v6693_v32 = vpack.c.bf16 %v5993_v36, %v5993_v36  ;;  %v6694_v0 = vpack.c.bf16 %v5994_v62, %v5994_v62  ;;  %v5523_v11 = vrot.slane %v5515_v9, %v11041_v28  ;;  %v5530_v20 = vrot.slane %v5516_v53, %v11041_v28 }
 0xd0d   :  { %v5539_v31 = vrot.slane %v5531_v50, %v11041_v28  ;;  %v5546_v26 = vrot.slane %v5532_v51, %v11041_v28  ;;  %v6143_v40 = vcombine.low %v12298_v41, %v12337_v7  ;;  %v6175_v18 = vcombine.low %v12340_v58, %v12343_v27  ;;  %v4930_v51 = vpop.permute.xlu0 %4929 }
 0xd0e   :  { %v6803_v35 = vsel %vm2088_vm2, %v6693_v32, 0  ;;  %v6849_v57 = vsel %vm2088_vm2, %v6694_v0, 0  ;;  %v9739_v55 = vcombine.low %v5523_v11, %v5530_v20  ;;  %v9741_v37 = vcombine.high %v5523_v11, %v5530_v20  ;;  %v12416_v44 = vpop.permute.xlu1 %4941 }
 0xd0f   :  { %10278 = vmatpush3.bf16.xpose.msra.mxu0 %v6803_v35  ;;  %10284 = vmatpush3.bf16.xpose.msra.mxu1 %v6849_v57  ;;  %v9743_v16 = vcombine.low %v5539_v31, %v5546_v26  ;;  %v9745_v14 = vcombine.high %v5539_v31, %v5546_v26  ;;  %v6151_v22 = vrot.slane %v6143_v40, %v11041_v28 }
 0xd10   :  { %v12419_v46 = vrot.slane %v9739_v55, %v11037_v19  ;;  %v12422_v38 = vrot.slane %v9741_v37, %v11037_v19  ;;  %10289 = vmatprep.subr.bf16.mxu0 %v10771_v5  ;;  %10295 = vmatprep.subr.bf16.mxu1 %v10771_v5  ;;  %v5687_v36 = vcombine.low %v12355_v29, %v12375_v61 }
 0xd11   :  { %v12429_v3 = vrot.slane %v9743_v16, %v11037_v19  ;;  %v12432_v43 = vrot.slane %v9745_v14, %v11037_v19  ;;  %v5718_v62 = vrot.slane %v5704_v21, %v11037_v19  ;;  %v6677_v9 = vpack.c.bf16 %v5989_v34, %v5989_v34  ;;  %v4996_v6 = vpop.permute.xlu0 %4995 }
 0xd12   :  { %v6183_v53 = vrot.slane %v6175_v18, %v11041_v28  ;;  %v5688_v50 = vcombine.high %v12355_v29, %v12375_v61  ;;  %v6331_v32 = vcombine.low %v12419_v46, %v12422_v38  ;;  %v6332_v0 = vcombine.high %v12419_v46, %v12422_v38  ;;  %v12454_v55 = vpop.permute.xlu1 %5007 }
 0xd13   :  { %v6678_v11 = vpack.c.bf16 %v5990_v25, %v5990_v25  ;;  %v5695_v20 = vrot.slane %v5687_v36, %v11037_v19  ;;  %v6363_v31 = vcombine.low %v12429_v3, %v12432_v43  ;;  %v5655_v29 = vcombine.low %v12185_v4, %v4930_v51 }
 0xd14   :  { %v6195_v21 = vcombine.low %v6151_v22, %v6183_v53  ;;  %v6196_v26 = vcombine.high %v6151_v22, %v6183_v53  ;;  %v5702_v34 = vrot.slane %v5688_v50, %v11037_v19  ;;  %v6135_v61 = vrot.slane %v6127_v30, %v11041_v28 }
 0xd15   :  { %v5751_v35 = vcombine.low %v5695_v20, %v5711_v56  ;;  %v5752_v57 = vcombine.high %v5695_v20, %v5711_v56  ;;  %v5656_v18 = vcombine.high %v12185_v4, %v4930_v51  ;;  %v6144_v20 = vcombine.high %v12298_v41, %v12337_v7 }
 0xd16   :  { %10280 = vmatmul.mubr.msk.bf16.vlgmr.msra.gmra.mxu0 %vm2088_vm2, %v6677_v9  ;;  %10286 = vmatmul.mubr.msk.bf16.vlgmr.msra.gmra.mxu1 %vm2088_vm2, %v6678_v11  ;;  %v6695_v25 = vpack.c.bf16 %v6195_v21, %v6195_v21  ;;  %v6696_v37 = vpack.c.bf16 %v6196_v26, %v6196_v26  ;;  %v5767_v16 = vcombine.low %v5702_v34, %v5718_v62 }
 0xd17   :  { %v5759_v14 = vrot.slane %v5751_v35, %v11041_v28  ;;  %v5766_v56 = vrot.slane %v5752_v57, %v11041_v28  ;;  %v5768_v40 = vcombine.high %v5702_v34, %v5718_v62  ;;  %10291 = vmatprep.mubr.msk.bf16.mxu0 %vm10772_vm1, %v10771_v5  ;;  %10297 = vmatprep.mubr.msk.bf16.mxu1 %vm10772_vm1, %v10771_v5  ;;  %v12487_v35 = vpop.permute.xlu1 %5019 }
 0xd18   :  { %v6895_v30 = vsel %vm2088_vm2, %v6695_v25, 0  ;;  %v6941_v22 = vsel %vm2088_vm2, %v6696_v37, 0  ;;  %v12466_v36 = vrot.slane %v5767_v16, %v11041_v28  ;;  %v6167_v62 = vrot.slane %v6159_v45, %v11041_v28 }
 0xd19   :  { %10290 = vmatpush3.bf16.xpose.msra.mxu0 %v6895_v30  ;;  %10296 = vmatpush3.bf16.xpose.msra.mxu1 %v6941_v22  ;;  %v12475_v9 = vrot.slane %v5768_v40, %v11041_v28  ;;  %v9750_v53 = vcombine.low %v5759_v14, %v5766_v56  ;;  %v9752_v50 = vcombine.high %v5759_v14, %v5766_v56 }
 0xd1a   :  { %v6191_v51 = vcombine.low %v6135_v61, %v6167_v62  ;;  %v6192_v11 = vcombine.high %v6135_v61, %v6167_v62  ;;  %10301 = vmatprep.subr.bf16.mxu0 %v10771_v5  ;;  %10307 = vmatprep.subr.bf16.mxu1 %v10771_v5  ;;  %v6364_v21 = vcombine.high %v12429_v3, %v12432_v43 }
 0xd1b   :  { %v9754_v45 = vcombine.low %v12466_v36, %v12475_v9  ;;  %v5663_v26 = vrot.slane %v5655_v29, %v11037_v19  ;;  %v5670_v34 = vrot.slane %v5656_v18, %v11037_v19  ;;  %v12490_v57 = vrot.slane %v9750_v53, %v11037_v19 }
 0xd1c   :  { %v12493_v61 = vrot.slane %v9752_v50, %v11037_v19  ;;  %v6158_v41 = vrot.slane %v6144_v20, %v11041_v28  ;;  %v6176_v7 = vcombine.high %v12340_v58, %v12343_v27  ;;  %v9756_v25 = vcombine.high %v12466_v36, %v12475_v9  ;;  %v5032_v36 = vpop.permute.xlu1 %5031 }
 0xd1d   :  { %v6679_v37 = vpack.c.bf16 %v6191_v51, %v6191_v51  ;;  %v5671_v29 = vcombine.low %v12404_v59, %v12416_v44  ;;  %v5672_v16 = vcombine.high %v12404_v59, %v12416_v44  ;;  %v6680_v14 = vpack.c.bf16 %v6192_v11, %v6192_v11 }
 0xd1e   :  { %v6190_v56 = vrot.slane %v6176_v7, %v11041_v28  ;;  %v6142_v40 = vrot.slane %v6128_v15, %v11041_v28  ;;  %v6174_v58 = vrot.slane %v6160_v24, %v11041_v28  ;;  %v12514_v27 = vrot.slane %v9754_v45, %v11037_v19 }
 0xd1f   :  { %v5679_v18 = vrot.slane %v5671_v29, %v11037_v19  ;;  %v5686_v59 = vrot.slane %v5672_v16, %v11037_v19  ;;  %v6347_v44 = vcombine.low %v12364_v63, %v12378_v1  ;;  %v6379_v42 = vcombine.low %v12387_v12, %v12393_v47 }
 0xd20   :  { %10292 = vmatmul.mubr.msk.bf16.vlgmr.msra.gmra.mxu0 %vm2088_vm2, %v6679_v37  ;;  %10298 = vmatmul.mubr.msk.bf16.vlgmr.msra.gmra.mxu1 %vm2088_vm2, %v6680_v14  ;;  %v6197_v10 = vcombine.low %v6158_v41, %v6190_v56  ;;  %v6198_v17 = vcombine.high %v6158_v41, %v6190_v56  ;;  %v6193_v53 = vcombine.low %v6142_v40, %v6174_v58 }
 0xd21   :  { %v5719_v15 = vcombine.low %v5663_v26, %v5679_v18  ;;  %v5720_v24 = vcombine.high %v5663_v26, %v5679_v18  ;;  %v5735_v30 = vcombine.low %v5670_v34, %v5686_v59  ;;  %v5736_v22 = vcombine.high %v5670_v34, %v5686_v59  ;;  %10303 = vmatprep.mubr.msk.bf16.mxu0 %vm10772_vm1, %v10771_v5 }
 0xd22   :  { %v6697_v62 = vpack.c.bf16 %v6197_v10, %v6197_v10  ;;  %v6698_v9 = vpack.c.bf16 %v6198_v17, %v6198_v17  ;;  %10309 = vmatprep.mubr.msk.bf16.mxu1 %vm10772_vm1, %v10771_v5  ;;  %v5179_v50 = vcombine.low %v4996_v6, %v12487_v35  ;;  %v6194_v41 = vcombine.high %v6142_v40, %v6174_v58  ;;  %v12549_v10 = vpop.permute.xlu1 %5009 }
 0xd23   :  { %v5727_v51 = vrot.slane %v5719_v15, %v11041_v28  ;;  %v5734_v11 = vrot.slane %v5720_v24, %v11041_v28  ;;  %v5743_v20 = vrot.slane %v5735_v30, %v11041_v28  ;;  %v5750_v45 = vrot.slane %v5736_v22, %v11041_v28 }
 0xd24   :  { %v6987_v26 = vsel %vm2088_vm2, %v6697_v62, 0  ;;  %v7033_v34 = vsel %vm2088_vm2, %v6698_v9, 0  ;;  %v6355_v7 = vrot.slane %v6347_v44, %v11041_v28  ;;  %v6387_v56 = vrot.slane %v6379_v42, %v11041_v28 }
 0xd25   :  { %10302 = vmatpush3.bf16.xpose.msra.mxu0 %v6987_v26  ;;  %10308 = vmatpush3.bf16.xpose.msra.mxu1 %v7033_v34  ;;  %v9749_v37 = vcombine.low %v5727_v51, %v5734_v11  ;;  %v9751_v29 = vcombine.high %v5727_v51, %v5734_v11  ;;  %v9753_v16 = vcombine.low %v5743_v20, %v5750_v45 }
 0xd26   :  { %v9755_v14 = vcombine.high %v5743_v20, %v5750_v45  ;;  %10313 = vmatprep.subr.bf16.mxu0 %v10771_v5  ;;  %10319 = vmatprep.subr.bf16.mxu1 %v10771_v5  ;;  %v5180_v18 = vcombine.high %v4996_v6, %v12487_v35  ;;  %v12541_v59 = vrot.slane %v9756_v25, %v11037_v19 }
 0xd27   :  { %v12544_v40 = vrot.slane %v9749_v37, %v11037_v19  ;;  %v12547_v58 = vrot.slane %v9751_v29, %v11037_v19  ;;  %v6681_v44 = vpack.c.bf16 %v6193_v53, %v6193_v53  ;;  %v12552_v17 = vrot.slane %v9753_v16, %v11037_v19 }
 0xd28   :  { %v6682_v15 = vpack.c.bf16 %v6194_v41, %v6194_v41  ;;  %v6399_v24 = vcombine.low %v6355_v7, %v6387_v56  ;;  %v6400_v42 = vcombine.high %v6355_v7, %v6387_v56  ;;  %v12555_v35 = vrot.slane %v9755_v14, %v11037_v19 }
 0xd29   :  { %v5187_v25 = vrot.slane %v5179_v50, %v11037_v19  ;;  %v5195_v6 = vcombine.low %v12454_v55, %v5032_v36  ;;  %v5196_v30 = vcombine.high %v12454_v55, %v5032_v36  ;;  %v6535_v22 = vcombine.low %v12544_v40, %v12547_v58 }
 0xd2a   :  { %v6699_v62 = vpack.c.bf16 %v6399_v24, %v6399_v24  ;;  %v6700_v9 = vpack.c.bf16 %v6400_v42, %v6400_v42  ;;  %v5194_v53 = vrot.slane %v5180_v18, %v11037_v19  ;;  %v6339_v50 = vrot.slane %v6331_v32, %v11041_v28  ;;  %v4998_v18 = vpop.permute.xlu0 %4997 }
 0xd2b   :  { %v5203_v51 = vrot.slane %v5195_v6, %v11037_v19  ;;  %v5210_v11 = vrot.slane %v5196_v30, %v11037_v19  ;;  %v6371_v55 = vrot.slane %v6363_v31, %v11041_v28  ;;  %v6348_v45 = vcombine.high %v12364_v63, %v12378_v1  ;;  %v5022_v31 = vpop.permute.xlu1 %5021 }
 0xd2c   :  { %10304 = vmatmul.mubr.msk.bf16.vlgmr.msra.gmra.mxu0 %vm2088_vm2, %v6681_v44  ;;  %10310 = vmatmul.mubr.msk.bf16.vlgmr.msra.gmra.mxu1 %vm2088_vm2, %v6682_v15  ;;  %v7079_v36 = vsel %vm2088_vm2, %v6699_v62, 0  ;;  %v7125_v20 = vsel %vm2088_vm2, %v6700_v9, 0  ;;  %v6380_v26 = vcombine.high %v12387_v12, %v12393_v47  ;;  %v6536_v47 = vcombine.high %v12544_v40, %v12547_v58 }
 0xd2d   :  { %10314 = vmatpush3.bf16.xpose.msra.mxu0 %v7079_v36  ;;  %10320 = vmatpush3.bf16.xpose.msra.mxu1 %v7125_v20  ;;  %v5211_v32 = vcombine.low %v5187_v25, %v5203_v51  ;;  %v5212_v34 = vcombine.high %v5187_v25, %v5203_v51  ;;  %v5227_v41 = vcombine.low %v5194_v53, %v5210_v11 }
 0xd2e   :  { %v5228_v7 = vcombine.high %v5194_v53, %v5210_v11  ;;  %10315 = vmatprep.mubr.msk.bf16.mxu0 %vm10772_vm1, %v10771_v5  ;;  %10321 = vmatprep.mubr.msk.bf16.mxu1 %vm10772_vm1, %v10771_v5  ;;  %v6395_v37 = vcombine.low %v6339_v50, %v6371_v55  ;;  %v6396_v29 = vcombine.high %v6339_v50, %v6371_v55 }
 0xd2f   :  { %v5219_v63 = vrot.slane %v5211_v32, %v11041_v28  ;;  %v5226_v1 = vrot.slane %v5212_v34, %v11041_v28  ;;  %v5235_v12 = vrot.slane %v5227_v41, %v11041_v28  ;;  %10325 = vmatprep.subr.bf16.mxu0 %v10771_v5  ;;  %10331 = vmatprep.subr.bf16.mxu1 %v10771_v5  ;;  %v5034_v50 = vpop.permute.xlu1 %5033 }
 0xd30   :  { %v6567_v16 = vcombine.low %v12552_v17, %v12555_v35  ;;  %v5242_v14 = vrot.slane %v5228_v7, %v11041_v28  ;;  %v6362_v56 = vrot.slane %v6348_v45, %v11041_v28  ;;  %v6683_v24 = vpack.c.bf16 %v6395_v37, %v6395_v37 }
 0xd31   :  { %v5995_v44 = vcombine.low %v5219_v63, %v5226_v1  ;;  %v9727_v15 = vcombine.high %v5219_v63, %v5226_v1  ;;  %v6394_v42 = vrot.slane %v6380_v26, %v11041_v28  ;;  %v6684_v30 = vpack.c.bf16 %v6396_v29, %v6396_v29 }
 0xd32   :  { %v6011_v25 = vcombine.low %v5235_v12, %v5242_v14  ;;  %v9728_v6 = vcombine.high %v5235_v12, %v5242_v14  ;;  %v5383_v62 = vcombine.low %v4998_v18, %v5022_v31  ;;  %v5384_v51 = vcombine.high %v4998_v18, %v5022_v31 }
 0xd33   :  { %v6401_v9 = vcombine.low %v6362_v56, %v6394_v42  ;;  %v6402_v53 = vcombine.high %v6362_v56, %v6394_v42  ;;  %v6346_v11 = vrot.slane %v6332_v0, %v11041_v28  ;;  %v12602_v55 = vrot.slane %v5995_v44, %v11037_v19 }
 0xd34   :  { %v12605_v36 = vrot.slane %v9727_v15, %v11037_v19  ;;  %v12608_v20 = vrot.slane %v6011_v25, %v11037_v19  ;;  %10316 = vmatmul.mubr.msk.bf16.vlgmr.msra.gmra.mxu0 %vm2088_vm2, %v6683_v24  ;;  %10322 = vmatmul.mubr.msk.bf16.vlgmr.msra.gmra.mxu1 %vm2088_vm2, %v6684_v30  ;;  %v12613_v45 = vrot.slane %v9728_v6, %v11037_v19 }
 0xd35   :  { %v6701_v26 = vpack.c.bf16 %v6401_v9, %v6401_v9  ;;  %v6702_v46 = vpack.c.bf16 %v6402_v53, %v6402_v53  ;;  %10327 = vmatprep.mubr.msk.bf16.mxu0 %vm10772_vm1, %v10771_v5  ;;  %10333 = vmatprep.mubr.msk.bf16.mxu1 %vm10772_vm1, %v10771_v5  ;;  %v6378_v38 = vrot.slane %v6364_v21, %v11041_v28 }
 0xd36   :  { %v6551_v0 = vcombine.low %v12490_v57, %v12493_v61  ;;  %v6583_v32 = vcombine.low %v12514_v27, %v12541_v59  ;;  %v5399_v34 = vcombine.low %v12549_v10, %v5034_v50  ;;  %v5391_v7 = vrot.slane %v5383_v62, %v11037_v19 }
 0xd37   :  { %v7171_v41 = vsel %vm2088_vm2, %v6701_v26, 0  ;;  %v7217_v31 = vsel %vm2088_vm2, %v6702_v46, 0  ;;  %v5400_v37 = vcombine.high %v12549_v10, %v5034_v50  ;;  %v6397_v3 = vcombine.low %v6346_v11, %v6378_v38 }
 0xd38   :  { %10326 = vmatpush3.bf16.xpose.msra.mxu0 %v7171_v41  ;;  %10332 = vmatpush3.bf16.xpose.msra.mxu1 %v7217_v31  ;;  %v6398_v43 = vcombine.high %v6346_v11, %v6378_v38  ;;  %v6559_v21 = vrot.slane %v6551_v0, %v11041_v28  ;;  %v6591_v29 = vrot.slane %v6583_v32, %v11041_v28 }
 0xd39   :  { %10337 = vmatprep.subr.bf16.mxu0 %v10771_v5  ;;  %10343 = vmatprep.subr.bf16.mxu1 %v10771_v5  ;;  %v5407_v63 = vrot.slane %v5399_v34, %v11037_v19  ;;  %v5414_v1 = vrot.slane %v5400_v37, %v11037_v19  ;;  %v5398_v12 = vrot.slane %v5384_v51, %v11037_v19 }
 0xd3a   :  { %v6685_v14 = vpack.c.bf16 %v6397_v3, %v6397_v3  ;;  %v6543_v10 = vrot.slane %v6535_v22, %v11041_v28  ;;  %v6575_v56 = vrot.slane %v6567_v16, %v11041_v28  ;;  %v6603_v18 = vcombine.low %v6559_v21, %v6591_v29 }
 0xd3b   :  { %v6604_v44 = vcombine.high %v6559_v21, %v6591_v29  ;;  %v5415_v15 = vcombine.low %v5391_v7, %v5407_v63  ;;  %v5416_v24 = vcombine.high %v5391_v7, %v5407_v63  ;;  %v6686_v42 = vpack.c.bf16 %v6398_v43, %v6398_v43 }
 0xd3c   :  { %v5431_v25 = vcombine.low %v5398_v12, %v5414_v1  ;;  %v5432_v6 = vcombine.high %v5398_v12, %v5414_v1  ;;  %v6552_v30 = vcombine.high %v12490_v57, %v12493_v61  ;;  %v6703_v62 = vpack.c.bf16 %v6603_v18, %v6603_v18 }
 0xd3d   :  { %v6704_v9 = vpack.c.bf16 %v6604_v44, %v6604_v44  ;;  %v5423_v53 = vrot.slane %v5415_v15, %v11041_v28  ;;  %v5430_v51 = vrot.slane %v5416_v24, %v11041_v28  ;;  %v6599_v11 = vcombine.low %v6543_v10, %v6575_v56 }
 0xd3e   :  { %v5439_v22 = vrot.slane %v5431_v25, %v11041_v28  ;;  %v5446_v16 = vrot.slane %v5432_v6, %v11041_v28  ;;  %v6600_v50 = vcombine.high %v6543_v10, %v6575_v56  ;;  %v7263_v26 = vsel %vm2088_vm2, %v6703_v62, 0 }
 0xd3f   :  { %10328 = vmatmul.mubr.msk.bf16.vlgmr.msra.gmra.mxu0 %vm2088_vm2, %v6685_v14  ;;  %10334 = vmatmul.mubr.msk.bf16.vlgmr.msra.gmra.mxu1 %vm2088_vm2, %v6686_v42  ;;  %v7309_v57 = vsel %vm2088_vm2, %v6704_v9, 0  ;;  %v6199_v61 = vcombine.low %v5423_v53, %v5430_v51  ;;  %v9737_v46 = vcombine.high %v5423_v53, %v5430_v51  ;;  %v6566_v32 = vrot.slane %v6552_v30, %v11041_v28 }
 0xd40   :  { %10338 = vmatpush3.bf16.xpose.msra.mxu0 %v7263_v26  ;;  %10344 = vmatpush3.bf16.xpose.msra.mxu1 %v7309_v57  ;;  %v6215_v38 = vcombine.low %v5439_v22, %v5446_v16  ;;  %v9738_v0 = vcombine.high %v5439_v22, %v5446_v16  ;;  %v6584_v31 = vcombine.high %v12514_v27, %v12541_v59 }
 0xd41   :  { %v6206_v34 = vrot.slane %v6199_v61, %v11037_v19  ;;  %v6214_v41 = vrot.slane %v9737_v46, %v11037_v19  ;;  %10339 = vmatprep.mubr.msk.bf16.mxu0 %vm10772_vm1, %v10771_v5  ;;  %10345 = vmatprep.mubr.msk.bf16.mxu1 %vm10772_vm1, %v10771_v5  ;;  %v6568_v7 = vcombine.high %v12552_v17, %v12555_v35 }
 0xd42   :  { %v6222_v37 = vrot.slane %v6215_v38, %v11037_v19  ;;  %v6230_v3 = vrot.slane %v9738_v0, %v11037_v19  ;;  %10349 = vmatprep.subr.bf16.mxu0 %v10771_v5  ;;  %10355 = vmatprep.subr.bf16.mxu1 %v10771_v5  ;;  %v6687_v43 = vpack.c.bf16 %v6599_v11, %v6599_v11 }
 0xd43   :  { %v6598_v21 = vrot.slane %v6584_v31, %v11041_v28  ;;  %v6027_v29 = vcombine.low %v12602_v55, %v12605_v36  ;;  %v6043_v27 = vcombine.low %v12608_v20, %v12613_v45  ;;  %v6028_v59 = vcombine.high %v12602_v55, %v12605_v36 }
 0xd44   :  { %v6044_v17 = vcombine.high %v12608_v20, %v12613_v45  ;;  %v6231_v35 = vcombine.low %v6206_v34, %v6214_v41  ;;  %v6247_v63 = vcombine.low %v6222_v37, %v6230_v3  ;;  %v6688_v1 = vpack.c.bf16 %v6600_v50, %v6600_v50 }
 0xd45   :  { %v6605_v12 = vcombine.low %v6566_v32, %v6598_v21  ;;  %v6606_v14 = vcombine.high %v6566_v32, %v6598_v21  ;;  %v6550_v10 = vrot.slane %v6536_v47, %v11041_v28  ;;  %v6035_v56 = vrot.slane %v6027_v29, %v11041_v28 }
 0xd46   :  { %v6051_v18 = vrot.slane %v6043_v27, %v11041_v28  ;;  %v6042_v44 = vrot.slane %v6028_v59, %v11041_v28  ;;  %v6058_v55 = vrot.slane %v6044_v17, %v11041_v28  ;;  %v6582_v45 = vrot.slane %v6568_v7, %v11041_v28 }
 0xd47   :  { %10340 = vmatmul.mubr.msk.bf16.vlgmr.msra.gmra.mxu0 %vm2088_vm2, %v6687_v43  ;;  %10346 = vmatmul.mubr.msk.bf16.vlgmr.msra.gmra.mxu1 %vm2088_vm2, %v6688_v1  ;;  %v6705_v36 = vpack.c.bf16 %v6605_v12, %v6605_v12  ;;  %v6706_v20 = vpack.c.bf16 %v6606_v14, %v6606_v14  ;;  %v6239_v25 = vrot.slane %v6231_v35, %v11041_v28 }
 0xd48   :  { %10351 = vmatprep.mubr.msk.bf16.mxu0 %vm10772_vm1, %v10771_v5  ;;  %10357 = vmatprep.mubr.msk.bf16.mxu1 %vm10772_vm1, %v10771_v5  ;;  %v6059_v40 = vcombine.low %v6035_v56, %v6051_v18  ;;  %v6060_v58 = vcombine.high %v6035_v56, %v6051_v18  ;;  %v12695_v24 = vcombine.low %v6042_v44, %v6058_v55 }
 0xd49   :  { %v7355_v47 = vsel %vm2088_vm2, %v6705_v36, 0  ;;  %v7401_v15 = vsel %vm2088_vm2, %v6706_v20, 0  ;;  %v12697_v42 = vcombine.high %v6042_v44, %v6058_v55  ;;  %v6601_v6 = vcombine.low %v6550_v10, %v6582_v45 }
 0xd4a   :  { %10350 = vmatpush3.bf16.xpose.msra.mxu0 %v7355_v47  ;;  %10356 = vmatpush3.bf16.xpose.msra.mxu1 %v7401_v15  ;;  %v6602_v30 = vcombine.high %v6550_v10, %v6582_v45  ;;  %v6255_v62 = vrot.slane %v6247_v63, %v11041_v28  ;;  %v6232_v9 = vcombine.high %v6206_v34, %v6214_v41 }
 0xd4b   :  { %10361 = vmatprep.subr.bf16.mxu0 %v10771_v5  ;;  %10367 = vmatprep.subr.bf16.mxu1 %v10771_v5  ;;  %v6248_v53 = vcombine.high %v6222_v37, %v6230_v3  ;;  %v7635_v51 = vpack.c.bf16 %v6059_v40, %v6059_v40  ;;  %v7636_v22 = vpack.c.bf16 %v6060_v58, %v6060_v58 }
 0xd4c   :  { %v12703_v16 = vcombine.low %v6239_v25, %v6255_v62  ;;  %v12705_v11 = vcombine.high %v6239_v25, %v6255_v62  ;;  %v6246_v50 = vrot.slane %v6232_v9, %v11041_v28  ;;  %v6689_v57 = vpack.c.bf16 %v6601_v6, %v6601_v6 }
 0xd4d   :  { %v6262_v26 = vrot.slane %v6248_v53, %v11041_v28  ;;  %v6690_v61 = vpack.c.bf16 %v6602_v30, %v6602_v30  ;;  %v7655_v0 = vsel %vm3036_vm3, %v7635_v51, 0  ;;  %v7701_v32 = vsel %vm3036_vm3, %v7636_v22, 0 }
 0xd4f   :  { %v12709_v46 = vcombine.low %v6246_v50, %v6262_v26  ;;  %v12711_v38 = vcombine.high %v6246_v50, %v6262_v26 }
 0xd51   :  { %10352 = vmatmul.mubr.msk.bf16.vlgmr.msra.gmra.mxu0 %vm2088_vm2, %v6689_v57  ;;  %10358 = vmatmul.mubr.msk.bf16.vlgmr.msra.gmra.mxu1 %vm2088_vm2, %v6690_v61 }
 0xd52   :  { %10362 = vmatpush3.bf16.msra.mxu0 %v7655_v0  ;;  %10368 = vmatpush3.bf16.msra.mxu1 %v7701_v32 }
 0xd53   :  { %10363 = vmatprep.mubr.msk.bf16.mxu0 %vm10772_vm1, %v10771_v5  ;;  %10369 = vmatprep.mubr.msk.bf16.mxu1 %vm10772_vm1, %v10771_v5 }
 0xd54   :  { %10373 = vmatprep.subr.bf16.mxu0 %v10771_v5  ;;  %10379 = vmatprep.subr.bf16.mxu1 %v10771_v5 }
 0xdc6   :  { %v6747_v34 = vpop.f32.mrf.mxu0  ;;  %v6793_v41 = vpop.f32.mrf.mxu1 }
 0xdc7   :  { %v12724_v31 = vadd.f32 %v6747_v34, %v11503_v48  ;;  %v12727_v7 = vadd.f32 %v6793_v41, %v11503_v48 }
 0xdc8   :  { %v10269_v37 = vpop.f32.mrf.mxu0  ;;  %v10275_v3 = vpop.f32.mrf.mxu1 }
 0xdc9   :  { %v7446_v43 = vsel %vm2088_vm2, %v12727_v7, -inf  ;;  %v7443_v21 = vsel %vm2088_vm2, %v12724_v31, -inf }
 0xdca   :  { %7447 = vmax.xlane.f32.xlu1 %v7446_v43  ;;  %v6796_v29 = vpop.f32.mrf.mxu1  ;;  %7444 = vmax.xlane.f32.xlu0 %v7443_v21  ;;  %v6750_v27 = vpop.f32.mrf.mxu0 }
 0xdcc   :  { %v10270_v59 = vpop.f32.mrf.mxu0  ;;  %v10276_v17 = vpop.f32.mrf.mxu1 }
 0xdd6   :  { %v6839_v35 = vpop.f32.mrf.mxu0  ;;  %v6885_v63 = vpop.f32.mrf.mxu1 }
 0xdd7   :  { %v12734_v1 = vadd.f32 %v6839_v35, %v11503_v48  ;;  %v12737_v10 = vadd.f32 %v6885_v63, %v11503_v48 }
 0xdd8   :  { %v10281_v12 = vpop.f32.mrf.mxu0  ;;  %v10287_v14 = vpop.f32.mrf.mxu1 }
 0xdd9   :  { %v7449_v56 = vsel %vm2088_vm2, %v12734_v1, -inf  ;;  %v7452_v20 = vsel %vm2088_vm2, %v12737_v10, -inf }
 0xdda   :  { %v6888_v18 = vpop.f32.mrf.mxu1  ;;  %7450 = vmax.xlane.f32.xlu0 %v7449_v56  ;;  %v6842_v44 = vpop.f32.mrf.mxu0 }
 0xddc   :  { %v10282_v55 = vpop.f32.mrf.mxu0  ;;  %v10288_v36 = vpop.f32.mrf.mxu1 }
 0xdde   :  { %7453 = vmax.xlane.f32.xlu0 %v7452_v20 }
 0xde0   :  { %v6931_v45 = vpop.f32.mrf.mxu0  ;;  %v6977_v40 = vpop.f32.mrf.mxu1 }
 0xde1   :  { %v12744_v58 = vadd.f32 %v6931_v45, %v11529_v2  ;;  %v12747_v48 = vadd.f32 %v6977_v40, %v11529_v2 }
 0xde2   :  { %v10293_v47 = vpop.f32.mrf.mxu0  ;;  %v10299_v15 = vpop.f32.mrf.mxu1 }
 0xde3   :  { %v7458_v25 = vsel %vm2088_vm2, %v12747_v48, -inf  ;;  %v7455_v6 = vsel %vm2088_vm2, %v12744_v58, -inf }
 0xde4   :  { %7459 = vmax.xlane.f32.xlu1 %v7458_v25  ;;  %v6980_v30 = vpop.f32.mrf.mxu1  ;;  %7456 = vmax.xlane.f32.xlu0 %v7455_v6  ;;  %v6934_v62 = vpop.f32.mrf.mxu0 }
 0xde6   :  { %v10294_v9 = vpop.f32.mrf.mxu0  ;;  %v10300_v53 = vpop.f32.mrf.mxu1 }
 0xdec   :  { %v7023_v51 = vpop.f32.mrf.mxu0  ;;  %v7069_v22 = vpop.f32.mrf.mxu1 }
 0xded   :  { %v12754_v50 = vadd.f32 %v7023_v51, %v11529_v2  ;;  %v12757_v26 = vadd.f32 %v7069_v22, %v11529_v2 }
 0xdee   :  { %v10305_v57 = vpop.f32.mrf.mxu0  ;;  %v10311_v61 = vpop.f32.mrf.mxu1 }
 0xdef   :  { %v7464_v0 = vsel %vm2088_vm2, %v12757_v26, -inf  ;;  %v7461_v32 = vsel %vm2088_vm2, %v12754_v50, -inf }
 0xdf0   :  { %7465 = vmax.xlane.f32.xlu1 %v7464_v0  ;;  %v7072_v34 = vpop.f32.mrf.mxu1  ;;  %7462 = vmax.xlane.f32.xlu0 %v7461_v32  ;;  %v7026_v41 = vpop.f32.mrf.mxu0 }
 0xdf2   :  { %v10306_v37 = vpop.f32.mrf.mxu0  ;;  %v10312_v3 = vpop.f32.mrf.mxu1 }
 0xdf4   :  { %v7115_v43 = vpop.f32.mrf.mxu0  ;;  %v7161_v21 = vpop.f32.mrf.mxu1 }
 0xdf5   :  { %v12764_v29 = vadd.f32 %v7115_v43, %v11554_v49  ;;  %v12767_v2 = vadd.f32 %v7161_v21, %v11554_v49 }
 0xdf6   :  { %v10317_v27 = vpop.f32.mrf.mxu0  ;;  %v10323_v59 = vpop.f32.mrf.mxu1 }
 0xdf7   :  { %v7470_v17 = vsel %vm2088_vm2, %v12767_v2, -inf  ;;  %v7467_v35 = vsel %vm2088_vm2, %v12764_v29, -inf }
 0xdf8   :  { %7471 = vmax.xlane.f32.xlu1 %v7470_v17  ;;  %v7164_v63 = vpop.f32.mrf.mxu1  ;;  %7468 = vmax.xlane.f32.xlu0 %v7467_v35  ;;  %v7118_v12 = vpop.f32.mrf.mxu0 }
 0xdfa   :  { %v10318_v14 = vpop.f32.mrf.mxu0  ;;  %v10324_v56 = vpop.f32.mrf.mxu1 }
 0xdff   :  { %v7207_v18 = vpop.f32.mrf.mxu0  ;;  %v7253_v44 = vpop.f32.mrf.mxu1 }
 0xe00   :  { %v12774_v55 = vadd.f32 %v7207_v18, %v11554_v49  ;;  %v12785_v21 = vadd.f32 %v7253_v44, %v11554_v49 }
 0xe01   :  { %v10329_v36 = vpop.f32.mrf.mxu0  ;;  %v10335_v20 = vpop.f32.mrf.mxu1 }
 0xe02   :  { %v7473_v45 = vsel %vm2088_vm2, %v12774_v55, -inf  ;;  %v7476_v59 = vsel %vm2088_vm2, %v12785_v21, -inf }
 0xe03   :  { %v7256_v40 = vpop.f32.mrf.mxu1  ;;  %7474 = vmax.xlane.f32.xlu0 %v7473_v45  ;;  %v7210_v47 = vpop.f32.mrf.mxu0 }
 0xe05   :  { %v10330_v15 = vpop.f32.mrf.mxu0  ;;  %v10336_v25 = vpop.f32.mrf.mxu1 }
 0xe07   :  { %v7299_v6 = vpop.f32.mrf.mxu0  ;;  %v7345_v30 = vpop.f32.mrf.mxu1 }
 0xe08   :  { %v12788_v27 = vadd.f32 %v7345_v30, %v11583_v23  ;;  %v12793_v17 = vadd.f32 %v7299_v6, %v11583_v23 }
 0xe09   :  { %v10341_v62 = vpop.f32.mrf.mxu0  ;;  %v10347_v9 = vpop.f32.mrf.mxu1  ;;  %5011 = vrot.lane.b32.xlu1 %v12167_v33, %s13386_s4 }
 0xe0a   :  { %v7482_v63 = vsel %vm2088_vm2, %v12788_v27, -inf  ;;  %v7479_v12 = vsel %vm2088_vm2, %v12793_v17, -inf }
 0xe0b   :  { %v7302_v53 = vpop.f32.mrf.mxu0  ;;  %v7348_v51 = vpop.f32.mrf.mxu1 }
 0xe0d   :  { %v10342_v22 = vpop.f32.mrf.mxu0  ;;  %v10348_v57 = vpop.f32.mrf.mxu1  ;;  %5023 = vrot.lane.b32.xlu1 %v12167_v33, %s13387_s24 }
 0xe11   :  { %v7391_v61 = vpop.f32.mrf.mxu0  ;;  %v7437_v0 = vpop.f32.mrf.mxu1 }
 0xe12   :  { %v12796_v35 = vadd.f32 %v7437_v0, %v11583_v23  ;;  %v12801_v49 = vadd.f32 %v7391_v61, %v11583_v23 }
 0xe13   :  { %v10353_v32 = vpop.f32.mrf.mxu0  ;;  %v10359_v34 = vpop.f32.mrf.mxu1 }
 0xe14   :  { %v7488_v14 = vsel %vm2088_vm2, %v12796_v35, -inf  ;;  %v7485_v56 = vsel %vm2088_vm2, %v12801_v49, -inf }
 0xe15   :  { %v7394_v41 = vpop.f32.mrf.mxu0  ;;  %v7440_v37 = vpop.f32.mrf.mxu1 }
 0xe17   :  { %v10354_v3 = vpop.f32.mrf.mxu0  ;;  %v10360_v43 = vpop.f32.mrf.mxu1 }
 0xe19   :  { %4999 = vrot.lane.b32.xlu0 %v12167_v33, %s13385_s28 }
 0xe31   :  { %7477 = vmax.xlane.f32.xlu1 %v7476_v59 }
 0xe35   :  { %7483 = vmax.xlane.f32.xlu1 %v7482_v63 }
 0xe38   :  { %7480 = vmax.xlane.f32.xlu0 %v7479_v12 }
 0xe39   :  { %7489 = vmax.xlane.f32.xlu1 %v7488_v14 }
 0xe3c   :  { %7486 = vmax.xlane.f32.xlu0 %v7485_v56 }
 0xe4a   :  { %5035 = vrot.lane.b32.xlu1 %v12167_v33, %s13388_s6 }
 0xe53   :  { %v7448_v18 = vpop.xlane.xlu1 %7447  ;;  %v7445_v44 = vpop.xlane.xlu0 %7444 }
 0xe54   :  { %v7492_v23 = vsub.f32 %v12727_v7, %v7448_v18  ;;  %v7491_v36 = vsub.f32 %v12724_v31, %v7445_v44 }
 0xe56   :  { %v7507_v20 = vmul.f32 1.442695, %v7491_v36  ;;  %v7509_v45 = vmul.f32 1.442695, %v7492_v23 }
 0xe58   :  { %10692 = vpow2.f32 %v7507_v20 }
 0xe59   :  { %10694 = vpow2.f32 %v7509_v45 }
 0xe63   :  { %v7451_v40 = vpop.xlane.xlu0 %7450 }
 0xe64   :  { %v7493_v47 = vsub.f32 %v12734_v1, %v7451_v40 }
 0xe65   :  { %v12814_v15 = vpop.eup %10692 }
 0xe66   :  { %v7511_v25 = vmul.f32 1.442695, %v7493_v47  ;;  %v7539_v33 = vsel %vm2088_vm2, %v12814_v15, 0.0  ;;  %v12818_v30 = vpop.eup %10694 }
 0xe67   :  { %v7454_v6 = vpop.xlane.xlu0 %7453  ;;  %7540 = vadd.xlane.f32.xlu0 %v7539_v33  ;;  %v7542_v62 = vsel %vm2088_vm2, %v12818_v30, 0.0 }
 0xe68   :  { %10696 = vpow2.f32 %v7511_v25  ;;  %v7494_v7 = vsub.f32 %v12737_v10, %v7454_v6 }
 0xe6a   :  { %v7513_v31 = vmul.f32 1.442695, %v7494_v7 }
 0xe6c   :  { %10698 = vpow2.f32 %v7513_v31 }
 0xe6d   :  { %v7460_v9 = vpop.xlane.xlu1 %7459  ;;  %v7457_v1 = vpop.xlane.xlu0 %7456 }
 0xe6e   :  { %v7496_v53 = vsub.f32 %v12747_v48, %v7460_v9  ;;  %v7495_v51 = vsub.f32 %v12744_v58, %v7457_v1  ;;  %7543 = vadd.xlane.f32.xlu1 %v7542_v62 }
 0xe70   :  { %v7515_v22 = vmul.f32 1.442695, %v7495_v51  ;;  %v7517_v57 = vmul.f32 1.442695, %v7496_v53 }
 0xe72   :  { %10700 = vpow2.f32 %v7515_v22 }
 0xe73   :  { %10702 = vpow2.f32 %v7517_v57 }
 0xe75   :  { %v12825_v61 = vpop.eup %10696 }
 0xe76   :  { %v7545_v10 = vsel %vm2088_vm2, %v12825_v61, 0.0 }
 0xe77   :  { %7546 = vadd.xlane.f32.xlu0 %v7545_v10 }
 0xe79   :  { %v12829_v0 = vpop.eup %10698  ;;  %v7466_v32 = vpop.xlane.xlu1 %7465 }
 0xe7a   :  { %v7463_v34 = vpop.xlane.xlu0 %7462  ;;  %v7498_v41 = vsub.f32 %v12757_v26, %v7466_v32  ;;  %v7548_v58 = vsel %vm2088_vm2, %v12829_v0, 0.0 }
 0xe7b   :  { %v7497_v48 = vsub.f32 %v12754_v50, %v7463_v34  ;;  %7549 = vadd.xlane.f32.xlu1 %v7548_v58 }
 0xe7c   :  { %v7521_v37 = vmul.f32 1.442695, %v7498_v41 }
 0xe7d   :  { %v7519_v3 = vmul.f32 1.442695, %v7497_v48 }
 0xe7e   :  { %10704 = vpow2.f32 %v7521_v37 }
 0xe7f   :  { %10706 = vpow2.f32 %v7519_v3  ;;  %v12835_v43 = vpop.eup %10700 }
 0xe80   :  { %v7551_v12 = vsel %vm2088_vm2, %v12835_v43, 0.0  ;;  %v12839_v14 = vpop.eup %10702 }
 0xe81   :  { %v7472_v59 = vpop.xlane.xlu1 %7471  ;;  %v7469_v63 = vpop.xlane.xlu0 %7468  ;;  %7552 = vadd.xlane.f32.xlu0 %v7551_v12  ;;  %v7554_v44 = vsel %vm2088_vm2, %v12839_v14, 0.0 }
 0xe82   :  { %v7500_v26 = vsub.f32 %v12767_v2, %v7472_v59  ;;  %v7499_v50 = vsub.f32 %v12764_v29, %v7469_v63 }
 0xe84   :  { %v7523_v56 = vmul.f32 1.442695, %v7499_v50  ;;  %v7525_v18 = vmul.f32 1.442695, %v7500_v26 }
 0xe85   :  { %7555 = vadd.xlane.f32.xlu0 %v7554_v44  ;;  %v5012_v23 = vpop.permute.xlu1 %5011 }
 0xe86   :  { %10708 = vpow2.f32 %v7523_v56 }
 0xe87   :  { %10710 = vpow2.f32 %v7525_v18 }
 0xe89   :  { %v5024_v25 = vpop.permute.xlu1 %5023 }
 0xe8b   :  { %v12845_v36 = vpop.eup %10704 }
 0xe8c   :  { %v12847_v20 = vpop.eup %10706  ;;  %v7475_v45 = vpop.xlane.xlu0 %7474  ;;  %v7560_v2 = vsel %vm2088_vm2, %v12845_v36, 0.0 }
 0xe8d   :  { %v7501_v29 = vsub.f32 %v12774_v55, %v7475_v45  ;;  %7561 = vadd.xlane.f32.xlu1 %v7560_v2  ;;  %v7557_v40 = vsel %vm2088_vm2, %v12847_v20, 0.0 }
 0xe8e   :  { %7558 = vadd.xlane.f32.xlu0 %v7557_v40 }
 0xe8f   :  { %v7527_v47 = vmul.f32 1.442695, %v7501_v29 }
 0xe90   :  { %v5000_v6 = vpop.permute.xlu0 %4999 }
 0xe91   :  { %10712 = vpow2.f32 %v7527_v47  ;;  %v5587_v33 = vcombine.low %v5000_v6, %v5024_v25  ;;  %v5588_v7 = vcombine.high %v5000_v6, %v5024_v25 }
 0xe93   :  { %v12854_v31 = vpop.eup %10708  ;;  %v5595_v12 = vrot.slane %v5587_v33, %v11037_v19 }
 0xe94   :  { %v7563_v62 = vsel %vm2088_vm2, %v12854_v31, 0.0  ;;  %v12858_v9 = vpop.eup %10710 }
 0xe95   :  { %7564 = vadd.xlane.f32.xlu0 %v7563_v62  ;;  %v7566_v55 = vsel %vm2088_vm2, %v12858_v9, 0.0 }
 0xe99   :  { %7567 = vadd.xlane.f32.xlu0 %v7566_v55 }
 0xe9e   :  { %v12862_v1 = vpop.eup %10712 }
 0xe9f   :  { %v7569_v53 = vsel %vm2088_vm2, %v12862_v1, 0.0 }
 0xea0   :  { %7570 = vadd.xlane.f32.xlu0 %v7569_v53 }
 0xeba   :  { %v7478_v51 = vpop.xlane.xlu1 %7477 }
 0xebb   :  { %v7502_v22 = vsub.f32 %v12785_v21, %v7478_v51  ;;  %v5602_v21 = vrot.slane %v5588_v7, %v11037_v19 }
 0xebd   :  { %v7529_v57 = vmul.f32 1.442695, %v7502_v22 }
 0xebe   :  { %v7484_v10 = vpop.xlane.xlu1 %7483 }
 0xebf   :  { %10714 = vpow2.f32 %v7529_v57  ;;  %v7504_v32 = vsub.f32 %v12788_v27, %v7484_v10 }
 0xec1   :  { %v7481_v34 = vpop.xlane.xlu0 %7480  ;;  %v7533_v58 = vmul.f32 1.442695, %v7504_v32 }
 0xec2   :  { %v7503_v41 = vsub.f32 %v12793_v17, %v7481_v34  ;;  %v7490_v48 = vpop.xlane.xlu1 %7489 }
 0xec4   :  { %v7531_v37 = vmul.f32 1.442695, %v7503_v41 }
 0xec6   :  { %10716 = vpow2.f32 %v7531_v37  ;;  %v5036_v3 = vpop.permute.xlu1 %5035 }
 0xec7   :  { %v5603_v59 = vcombine.low %v5012_v23, %v5036_v3  ;;  %v5604_v63 = vcombine.high %v5012_v23, %v5036_v3  ;;  %10718 = vpow2.f32 %v7533_v58 }
 0xec9   :  { %v5611_v26 = vrot.slane %v5603_v59, %v11037_v19  ;;  %v5618_v50 = vrot.slane %v5604_v63, %v11037_v19 }
 0xecb   :  { %v5619_v27 = vcombine.low %v5595_v12, %v5611_v26  ;;  %v5620_v56 = vcombine.high %v5595_v12, %v5611_v26  ;;  %v5635_v18 = vcombine.low %v5602_v21, %v5618_v50  ;;  %v5636_v17 = vcombine.high %v5602_v21, %v5618_v50 }
 0xecc   :  { %v12873_v44 = vpop.eup %10714 }
 0xecd   :  { %v5627_v45 = vrot.slane %v5619_v27, %v11041_v28  ;;  %v5634_v2 = vrot.slane %v5620_v56, %v11041_v28  ;;  %v5643_v23 = vrot.slane %v5635_v18, %v11041_v28  ;;  %v5650_v29 = vrot.slane %v5636_v17, %v11041_v28  ;;  %v7487_v27 = vpop.xlane.xlu0 %7486 }
 0xece   :  { %v7572_v40 = vsel %vm2088_vm2, %v12873_v44, 0.0  ;;  %v7506_v18 = vsub.f32 %v12796_v35, %v7490_v48  ;;  %v7505_v17 = vsub.f32 %v12801_v49, %v7487_v27  ;;  %v7641_v27 = vpack.c.bf16 %v12709_v46, %v12709_v46 }
 0xecf   :  { %v6403_v47 = vcombine.low %v5627_v45, %v5634_v2  ;;  %v9747_v25 = vcombine.high %v5627_v45, %v5634_v2  ;;  %v6419_v6 = vcombine.low %v5643_v23, %v5650_v29  ;;  %v9748_v33 = vcombine.high %v5643_v23, %v5650_v29  ;;  %7573 = vadd.xlane.f32.xlu1 %v7572_v40 }
 0xed0   :  { %v7537_v45 = vmul.f32 1.442695, %v7506_v18  ;;  %v7535_v23 = vmul.f32 1.442695, %v7505_v17 }
 0xed1   :  { %v6410_v7 = vrot.slane %v6403_v47, %v11037_v19  ;;  %v6418_v62 = vrot.slane %v9747_v25, %v11037_v19  ;;  %v6426_v55 = vrot.slane %v6419_v6, %v11037_v19  ;;  %v6434_v53 = vrot.slane %v9748_v33, %v11037_v19 }
 0xed2   :  { %v7637_v25 = vpack.c.bf16 %v12695_v24, %v12695_v24 }
 0xed3   :  { %v12885_v51 = vpop.eup %10716  ;;  %v6435_v22 = vcombine.low %v6410_v7, %v6418_v62  ;;  %v6451_v57 = vcombine.low %v6426_v55, %v6434_v53  ;;  %v6436_v10 = vcombine.high %v6410_v7, %v6418_v62  ;;  %v6452_v32 = vcombine.high %v6426_v55, %v6434_v53 }
 0xed4   :  { %v7575_v34 = vsel %vm2088_vm2, %v12885_v51, 0.0  ;;  %v12889_v41 = vpop.eup %10718  ;;  %v7747_v35 = vsel %vm3036_vm3, %v7637_v25, 0 }
 0xed5   :  { %7576 = vadd.xlane.f32.xlu0 %v7575_v34  ;;  %v6443_v58 = vrot.slane %v6435_v22, %v11041_v28  ;;  %v6459_v37 = vrot.slane %v6451_v57, %v11041_v28  ;;  %v6450_v3 = vrot.slane %v6436_v10, %v11041_v28  ;;  %v6466_v59 = vrot.slane %v6452_v32, %v11041_v28 }
 0xed6   :  { %v7578_v21 = vsel %vm2088_vm2, %v12889_v41, 0.0  ;;  %v7639_v10 = vpack.c.bf16 %v12703_v16, %v12703_v16 }
 0xed7   :  { %v12895_v63 = vcombine.low %v6443_v58, %v6459_v37  ;;  %v12897_v12 = vcombine.high %v6443_v58, %v6459_v37  ;;  %v12901_v26 = vcombine.low %v6450_v3, %v6466_v59  ;;  %v12903_v50 = vcombine.high %v6450_v3, %v6466_v59 }
 0xed8   :  { %v7839_v58 = vsel %vm3036_vm3, %v7639_v10, 0  ;;  %v7640_v3 = vpack.c.bf16 %v12705_v11, %v12705_v11 }
 0xed9   :  { %7579 = vadd.xlane.f32.xlu0 %v7578_v21  ;;  %v7643_v25 = vpack.c.bf16 %v12895_v63, %v12895_v63 }
 0xeda   :  { %v7885_v21 = vsel %vm3036_vm3, %v7640_v3, 0 }
 0xee0   :  { %5013 = vrot.lane.b32.xlu1 %v12185_v4, %s13386_s4 }
 0xee4   :  { %5025 = vrot.lane.b32.xlu1 %v12185_v4, %s13387_s24 }
 0xee8   :  { %5037 = vrot.lane.b32.xlu1 %v12185_v4, %s13388_s6 }
 0xeef   :  { %5001 = vrot.lane.b32.xlu0 %v12185_v4, %s13385_s28 }
 0xef0   :  { %v7541_v56 = vpop.xlane.xlu0 %7540 }
 0xef1   :  { %10720 = vrcp.f32 %v7541_v56 }
 0xef7   :  { %v7544_v2 = vpop.xlane.xlu1 %7543 }
 0xef8   :  { %10722 = vrcp.f32 %v7544_v2  ;;  %v7642_v2 = vpack.c.bf16 %v12711_v38, %v12711_v38 }
 0xef9   :  { %10724 = vpow2.f32 %v7537_v45  ;;  %v7931_v45 = vsel %vm3036_vm3, %v7641_v27, 0 }
 0xefa   :  { %10726 = vpow2.f32 %v7535_v23  ;;  %v7977_v46 = vsel %vm3036_vm3, %v7642_v2, 0 }
 0xefe   :  { %v10721_v29 = vpop.eup %10720 }
 0xeff   :  { %v7603_v47 = vmul.f32 %v10721_v29, %v12814_v15  ;;  %v7638_v15 = vpack.c.bf16 %v12697_v42, %v12697_v42 }
 0xf00   :  { %v7547_v40 = vpop.xlane.xlu0 %7546 }
 0xf01   :  { %10728 = vrcp.f32 %v7547_v40  ;;  %v7619_v4 = vpack.c.bf16 %v7603_v47, %v7603_v47  ;;  %v7793_v62 = vsel %vm3036_vm3, %v7638_v15, 0 }
 0xf03   :  { %10364 = vmatmul.mubr.msk.bf16.vlgmr.msra.gmra.mxu0 %vm2088_vm2, %v7619_v4  ;;  %v7644_v4 = vpack.c.bf16 %v12897_v12, %v12897_v12  ;;  %v7645_v12 = vpack.c.bf16 %v12901_v26, %v12901_v26 }
 0xf04   :  { %v7550_v6 = vpop.xlane.xlu1 %7549  ;;  %10374 = vmatpush3.bf16.msra.mxu0 %v7747_v35  ;;  %10375 = vmatprep.mubr.msk.bf16.mxu0 %vm10772_vm1, %v10771_v5 }
 0xf05   :  { %v10723_v49 = vpop.eup %10722  ;;  %10730 = vrcp.f32 %v7550_v6  ;;  %10385 = vmatprep.subr.bf16.mxu0 %v10771_v5 }
 0xf06   :  { %v7604_v48 = vmul.f32 %v10723_v49, %v12818_v30  ;;  %v12926_v24 = vpop.eup %10724 }
 0xf07   :  { %v12928_v7 = vpop.eup %10726  ;;  %v7584_v55 = vsel %vm2088_vm2, %v12926_v24, 0.0 }
 0xf08   :  { %v7620_v33 = vpack.c.bf16 %v7604_v48, %v7604_v48  ;;  %v7581_v42 = vsel %vm2088_vm2, %v12928_v7, 0.0  ;;  %v8023_v48 = vsel %vm3036_vm3, %v7643_v25, 0 }
 0xf0a   :  { %10370 = vmatmul.mubr.msk.bf16.vlgmr.msra.gmra.mxu1 %vm2088_vm2, %v7620_v33  ;;  %v7553_v53 = vpop.xlane.xlu0 %7552 }
 0xf0b   :  { %10380 = vmatpush3.bf16.msra.mxu1 %v7793_v62  ;;  %10381 = vmatprep.mubr.msk.bf16.mxu1 %vm10772_vm1, %v10771_v5  ;;  %10732 = vrcp.f32 %v7553_v53  ;;  %v7646_v53 = vpack.c.bf16 %v12903_v50, %v12903_v50 }
 0xf0c   :  { %7585 = vadd.xlane.f32.xlu1 %v7584_v55  ;;  %10391 = vmatprep.subr.bf16.mxu1 %v10771_v5  ;;  %v8115_v55 = vsel %vm3036_vm3, %v7645_v12, 0 }
 0xf0e   :  { %v10729_v30 = vpop.eup %10728  ;;  %7582 = vadd.xlane.f32.xlu0 %v7581_v42  ;;  %v7556_v57 = vpop.xlane.xlu0 %7555 }
 0xf0f   :  { %v7605_v22 = vmul.f32 %v10729_v30, %v12825_v61  ;;  %10734 = vrcp.f32 %v7556_v57 }
 0xf11   :  { %v7621_v32 = vpack.c.bf16 %v7605_v22, %v7605_v22 }
 0xf12   :  { %v10731_v34 = vpop.eup %10730 }
 0xf13   :  { %10376 = vmatmul.mubr.msk.bf16.vlgmr.msra.gmra.mxu0 %vm2088_vm2, %v7621_v32  ;;  %v7606_v37 = vmul.f32 %v10731_v34, %v12829_v0 }
 0xf14   :  { %10386 = vmatpush3.bf16.msra.mxu0 %v7839_v58  ;;  %10387 = vmatprep.mubr.msk.bf16.mxu0 %vm10772_vm1, %v10771_v5 }
 0xf15   :  { %v7622_v61 = vpack.c.bf16 %v7606_v37, %v7606_v37  ;;  %10397 = vmatprep.subr.bf16.mxu0 %v10771_v5 }
 0xf16   :  { %v7562_v16 = vpop.xlane.xlu1 %7561 }
 0xf17   :  { %10736 = vrcp.f32 %v7562_v16  ;;  %v7559_v59 = vpop.xlane.xlu0 %7558  ;;  %10382 = vmatmul.mubr.msk.bf16.vlgmr.msra.gmra.mxu1 %vm2088_vm2, %v7622_v61 }
 0xf18   :  { %10738 = vrcp.f32 %v7559_v59  ;;  %10392 = vmatpush3.bf16.msra.mxu1 %v7885_v21  ;;  %10393 = vmatprep.mubr.msk.bf16.mxu1 %vm10772_vm1, %v10771_v5  ;;  %v10733_v11 = vpop.eup %10732 }
 0xf19   :  { %10403 = vmatprep.subr.bf16.mxu1 %v10771_v5  ;;  %v7607_v0 = vmul.f32 %v10733_v11, %v12835_v43 }
 0xf1b   :  { %v7623_v56 = vpack.c.bf16 %v7607_v0, %v7607_v0 }
 0xf1c   :  { %v10735_v18 = vpop.eup %10734 }
 0xf1d   :  { %v7608_v17 = vmul.f32 %v10735_v18, %v12839_v14  ;;  %10388 = vmatmul.mubr.msk.bf16.vlgmr.msra.gmra.mxu0 %vm2088_vm2, %v7623_v56 }
 0xf1e   :  { %v7565_v23 = vpop.xlane.xlu0 %7564  ;;  %10398 = vmatpush3.bf16.msra.mxu0 %v7931_v45  ;;  %10399 = vmatprep.mubr.msk.bf16.mxu0 %vm10772_vm1, %v10771_v5 }
 0xf1f   :  { %v7624_v43 = vpack.c.bf16 %v7608_v17, %v7608_v17  ;;  %10740 = vrcp.f32 %v7565_v23  ;;  %10409 = vmatprep.subr.bf16.mxu0 %v10771_v5 }
 0xf21   :  { %10394 = vmatmul.mubr.msk.bf16.vlgmr.msra.gmra.mxu1 %vm2088_vm2, %v7624_v43 }
 0xf22   :  { %v7568_v14 = vpop.xlane.xlu0 %7567  ;;  %10404 = vmatpush3.bf16.msra.mxu1 %v7977_v46  ;;  %10405 = vmatprep.mubr.msk.bf16.mxu1 %vm10772_vm1, %v10771_v5 }
 0xf23   :  { %10742 = vrcp.f32 %v7568_v14  ;;  %10415 = vmatprep.subr.bf16.mxu1 %v10771_v5 }
 0xf24   :  { %v10737_v29 = vpop.eup %10736 }
 0xf25   :  { %v10739_v38 = vpop.eup %10738  ;;  %v7610_v40 = vmul.f32 %v10737_v29, %v12845_v36  ;;  %v8069_v36 = vsel %vm3036_vm3, %v7644_v4, 0 }
 0xf26   :  { %v7609_v47 = vmul.f32 %v10739_v38, %v12847_v20 }
 0xf27   :  { %v7626_v6 = vpack.c.bf16 %v7610_v40, %v7610_v40 }
 0xf28   :  { %v7625_v35 = vpack.c.bf16 %v7609_v47, %v7609_v47 }
 0xf29   :  { %v7571_v49 = vpop.xlane.xlu0 %7570  ;;  %10406 = vmatmul.mubr.msk.bf16.vlgmr.msra.gmra.mxu1 %vm2088_vm2, %v7626_v6 }
 0xf2a   :  { %10744 = vrcp.f32 %v7571_v49  ;;  %10400 = vmatmul.mubr.msk.bf16.vlgmr.msra.gmra.mxu0 %vm2088_vm2, %v7625_v35  ;;  %10416 = vmatpush3.bf16.msra.mxu1 %v8069_v36 }
 0xf2b   :  { %10410 = vmatpush3.bf16.msra.mxu0 %v8023_v48  ;;  %10411 = vmatprep.mubr.msk.bf16.mxu0 %vm10772_vm1, %v10771_v5 }
 0xf2c   :  { %10421 = vmatprep.subr.bf16.mxu0 %v10771_v5  ;;  %v10741_v20 = vpop.eup %10740  ;;  %10417 = vmatprep.mubr.msk.bf16.mxu1 %vm10772_vm1, %v10771_v5 }
 0xf2d   :  { %10427 = vmatprep.subr.bf16.mxu1 %v10771_v5  ;;  %v7611_v63 = vmul.f32 %v10741_v20, %v12854_v31  ;;  %v8161_v31 = vsel %vm3036_vm3, %v7646_v53, 0 }
 0xf2f   :  { %v7627_v15 = vpack.c.bf16 %v7611_v63, %v7611_v63 }
 0xf30   :  { %v10743_v33 = vpop.eup %10742 }
 0xf31   :  { %v7612_v62 = vmul.f32 %v10743_v33, %v12858_v9 }
 0xf32   :  { %10412 = vmatmul.mubr.msk.bf16.vlgmr.msra.gmra.mxu0 %vm2088_vm2, %v7627_v15 }
 0xf33   :  { %10422 = vmatpush3.bf16.msra.mxu0 %v8115_v55  ;;  %10423 = vmatprep.mubr.msk.bf16.mxu0 %vm10772_vm1, %v10771_v5  ;;  %v7628_v42 = vpack.c.bf16 %v7612_v62, %v7612_v62 }
 0xf34   :  { %10433 = vmatprep.subr.bf16.mxu0 %v10771_v5 }
 0xf35   :  { %10418 = vmatmul.mubr.msk.bf16.vlgmr.msra.gmra.mxu1 %vm2088_vm2, %v7628_v42 }
 0xf36   :  { %10428 = vmatpush3.bf16.msra.mxu1 %v8161_v31  ;;  %10429 = vmatprep.mubr.msk.bf16.mxu1 %vm10772_vm1, %v10771_v5 }
 0xf37   :  { %v10745_v26 = vpop.eup %10744  ;;  %10439 = vmatprep.subr.bf16.mxu1 %v10771_v5 }
 0xf38   :  { %v7613_v9 = vmul.f32 %v10745_v26, %v12862_v1 }
 0xf3a   :  { %v7629_v50 = vpack.c.bf16 %v7613_v9, %v7613_v9 }
 0xf3c   :  { %10424 = vmatmul.mubr.msk.bf16.vlgmr.msra.gmra.mxu0 %vm2088_vm2, %v7629_v50 }
 0xf3d   :  { %10435 = vmatprep.mubr.msk.bf16.mxu0 %vm10772_vm1, %v10771_v5 }
 0xf58   :  { %v7574_v30 = vpop.xlane.xlu1 %7573 }
 0xf59   :  { %10746 = vrcp.f32 %v7574_v30 }
 0xf5c   :  { %v5014_v22 = vpop.permute.xlu1 %5013 }
 0xf5e   :  { %v7577_v57 = vpop.xlane.xlu0 %7576 }
 0xf5f   :  { %10748 = vrcp.f32 %v7577_v57 }
 0xf60   :  { %v5026_v10 = vpop.permute.xlu1 %5025 }
 0xf62   :  { %v7580_v32 = vpop.xlane.xlu0 %7579 }
 0xf63   :  { %10750 = vrcp.f32 %v7580_v32 }
 0xf64   :  { %v5038_v34 = vpop.permute.xlu1 %5037 }
 0xf65   :  { %v5807_v58 = vcombine.low %v5014_v22, %v5038_v34  ;;  %v5808_v37 = vcombine.high %v5014_v22, %v5038_v34 }
 0xf66   :  { %v10747_v3 = vpop.eup %10746  ;;  %v5002_v61 = vpop.permute.xlu0 %5001 }
 0xf67   :  { %v7614_v1 = vmul.f32 %v10747_v3, %v12873_v44  ;;  %v5815_v16 = vrot.slane %v5807_v58, %v11037_v19  ;;  %v5791_v59 = vcombine.low %v5002_v61, %v5026_v10  ;;  %v5822_v21 = vrot.slane %v5808_v37, %v11037_v19 }
 0xf68   :  { %v5792_v11 = vcombine.high %v5002_v61, %v5026_v10 }
 0xf69   :  { %v7630_v0 = vpack.c.bf16 %v7614_v1, %v7614_v1  ;;  %v5799_v27 = vrot.slane %v5791_v59, %v11037_v19 }
 0xf6a   :  { %v5806_v56 = vrot.slane %v5792_v11, %v11037_v19 }
 0xf6b   :  { %v5823_v18 = vcombine.low %v5799_v27, %v5815_v16  ;;  %v5824_v17 = vcombine.high %v5799_v27, %v5815_v16  ;;  %10430 = vmatmul.mubr.msk.bf16.vlgmr.msra.gmra.mxu1 %vm2088_vm2, %v7630_v0 }
 0xf6c   :  { %v5839_v45 = vcombine.low %v5806_v56, %v5822_v21  ;;  %v5840_v2 = vcombine.high %v5806_v56, %v5822_v21  ;;  %10441 = vmatprep.mubr.msk.bf16.mxu1 %vm10772_vm1, %v10771_v5  ;;  %v10749_v12 = vpop.eup %10748 }
 0xf6d   :  { %v5831_v44 = vrot.slane %v5823_v18, %v11041_v28  ;;  %v5838_v23 = vrot.slane %v5824_v17, %v11041_v28  ;;  %v7615_v26 = vmul.f32 %v10749_v12, %v12885_v51 }
 0xf6e   :  { %v5847_v43 = vrot.slane %v5839_v45, %v11041_v28  ;;  %v5854_v46 = vrot.slane %v5840_v2, %v11041_v28 }
 0xf6f   :  { %v6607_v14 = vcombine.low %v5831_v44, %v5838_v23  ;;  %v9757_v29 = vcombine.high %v5831_v44, %v5838_v23  ;;  %v7631_v34 = vpack.c.bf16 %v7615_v26, %v7615_v26 }
 0xf70   :  { %v6623_v38 = vcombine.low %v5847_v43, %v5854_v46  ;;  %v9758_v40 = vcombine.high %v5847_v43, %v5854_v46  ;;  %v10751_v62 = vpop.eup %10750 }
 0xf71   :  { %v6614_v47 = vrot.slane %v6607_v14, %v11037_v19  ;;  %v6622_v25 = vrot.slane %v9757_v29, %v11037_v19  ;;  %v7616_v9 = vmul.f32 %v10751_v62, %v12889_v41 }
 0xf72   :  { %v6630_v4 = vrot.slane %v6623_v38, %v11037_v19  ;;  %v6638_v6 = vrot.slane %v9758_v40, %v11037_v19 }
 0xf73   :  { %v6639_v35 = vcombine.low %v6614_v47, %v6622_v25  ;;  %v6640_v49 = vcombine.high %v6614_v47, %v6622_v25  ;;  %v7632_v58 = vpack.c.bf16 %v7616_v9, %v7616_v9 }
 0xf74   :  { %v6655_v48 = vcombine.low %v6630_v4, %v6638_v6  ;;  %v6656_v36 = vcombine.high %v6630_v4, %v6638_v6 }
 0xf75   :  { %v6647_v20 = vrot.slane %v6639_v35, %v11041_v28  ;;  %v6654_v63 = vrot.slane %v6640_v49, %v11041_v28 }
 0xf76   :  { %v6663_v15 = vrot.slane %v6655_v48, %v11041_v28  ;;  %v6670_v33 = vrot.slane %v6656_v36, %v11041_v28 }
 0xf78   :  { %v6671_v55 = vcombine.low %v6647_v20, %v6663_v15  ;;  %v6672_v53 = vcombine.high %v6647_v20, %v6663_v15  ;;  %v6673_v42 = vcombine.low %v6654_v63, %v6670_v33  ;;  %v6674_v31 = vcombine.high %v6654_v63, %v6670_v33 }
 0xf7a   :  { %v7647_v50 = vpack.c.bf16 %v6671_v55, %v6671_v55  ;;  %v7648_v30 = vpack.c.bf16 %v6672_v53, %v6672_v53  ;;  %v7649_v10 = vpack.c.bf16 %v6673_v42, %v6673_v42  ;;  %v7650_v32 = vpack.c.bf16 %v6674_v31, %v6674_v31 }
 0xf7c   :  { %v8207_v22 = vsel %vm3036_vm3, %v7647_v50, 0  ;;  %v8253_v57 = vsel %vm3036_vm3, %v7648_v30, 0  ;;  %v8299_v51 = vsel %vm3036_vm3, %v7649_v10, 0  ;;  %v8345_v41 = vsel %vm3036_vm3, %v7650_v32, 0 }
 0xf7d   :  { %10434 = vmatpush3.bf16.msra.mxu0 %v8207_v22  ;;  %10440 = vmatpush3.bf16.msra.mxu1 %v8253_v57 }
 0xf7e   :  { %10445 = vmatprep.subr.bf16.mxu0 %v10771_v5  ;;  %10451 = vmatprep.subr.bf16.mxu1 %v10771_v5 }
 0xf80   :  { %10436 = vmatmul.mubr.msk.bf16.vlgmr.msra.gmra.mxu0 %vm2088_vm2, %v7631_v34  ;;  %10442 = vmatmul.mubr.msk.bf16.vlgmr.msra.gmra.mxu1 %vm2088_vm2, %v7632_v58 }
 0xf81   :  { %10446 = vmatpush3.bf16.msra.mxu0 %v8299_v51  ;;  %10452 = vmatpush3.bf16.msra.mxu1 %v8345_v41 }
 0xf82   :  { %10447 = vmatprep.mubr.msk.bf16.mxu0 %vm10772_vm1, %v10771_v5  ;;  %10453 = vmatprep.mubr.msk.bf16.mxu1 %vm10772_vm1, %v10771_v5 }
 0xf83   :  { %10468 = vmatprep.subr.mxu1 %v10771_v5  ;;  %10457 = vmatprep.subr.mxu0 %v10771_v5 }
 0xf95   :  { %v7586_v37 = vpop.xlane.xlu1 %7585 }
 0xf96   :  { %10752 = vrcp.f32 %v7586_v37 }
 0xf97   :  { %v7583_v3 = vpop.xlane.xlu0 %7582 }
 0xf98   :  { %10754 = vrcp.f32 %v7583_v3 }
 0xfa3   :  { %v10753_v61 = vpop.eup %10752 }
 0xfa4   :  { %v7618_v1 = vmul.f32 %v10753_v61, %v12926_v24 }
 0xfa5   :  { %v10755_v16 = vpop.eup %10754 }
 0xfa6   :  { %v7634_v59 = vpack.c.bf16 %v7618_v1, %v7618_v1  ;;  %v7617_v21 = vmul.f32 %v10755_v16, %v12928_v7 }
 0xfa8   :  { %v7633_v11 = vpack.c.bf16 %v7617_v21, %v7617_v21  ;;  %10454 = vmatmul.mubr.msk.bf16.vlgmr.msra.gmra.mxu1 %vm2088_vm2, %v7634_v59 }
 0xfa9   :  { %10469 = vmatpush3.msra.mxu1 %v12129_v39  ;;  %10476 = vmatprep.mubr.msk.f32.mxu1 %vm10772_vm1, %v10771_v5 }
 0xfaa   :  { %10448 = vmatmul.mubr.msk.bf16.vlgmr.msra.gmra.mxu0 %vm2088_vm2, %v7633_v11  ;;  %10470 = vmatprep.subr.mxu1 %v10771_v5 }
 0xfab   :  { %10471 = vmatpush3.msra.mxu1 %v12127_v60  ;;  %10465 = vmatprep.mubr.msk.f32.mxu0 %vm10772_vm1, %v10771_v5 }
 0xfac   :  { %10472 = vmatprep.subr.mxu1 %v10771_v5 }
 0xfad   :  { %10473 = vmatpush3.msra.mxu1 %v12122_v54 }
 0xfae   :  { %10474 = vmatprep.subr.mxu1 %v10771_v5 }
 0xfaf   :  { %10475 = vmatpush3.msra.mxu1 %v12120_v52 }
 0xfb0   :  { %10487 = vmatprep.subr.bf16.mxu1 %v10771_v5 }
 0xfc3   :  { %v7691_v39 = vpop.f32.mrf.mxu0 }
 0xfc5   :  { %v10365_v24 = vpop.f32.mrf.mxu0 }
 0xfc7   :  { %v7694_v7 = vpop.f32.mrf.mxu0 }
 0xfc9   :  { %v10366_v27 = vpop.f32.mrf.mxu0 }
 0xfca   :  { %v7737_v0 = vpop.f32.mrf.mxu1 }
 0xfcc   :  { %v10371_v56 = vpop.f32.mrf.mxu1 }
 0xfce   :  { %v7740_v60 = vpop.f32.mrf.mxu1 }
 0xfd0   :  { %v10372_v18 = vpop.f32.mrf.mxu1 }
 0xfd3   :  { %v7783_v17 = vpop.f32.mrf.mxu0 }
 0xfd4   :  { %v8387_v45 = vcombine.low %v7691_v39, %v7783_v17  ;;  %v8388_v2 = vcombine.high %v7691_v39, %v7783_v17 }
 0xfd5   :  { %v10377_v44 = vpop.f32.mrf.mxu0 }
 0xfd6   :  { %v8395_v29 = vrot.slane %v8387_v45, %v11037_v19  ;;  %v8402_v38 = vrot.slane %v8388_v2, %v11037_v19 }
 0xfd7   :  { %v7786_v23 = vpop.f32.mrf.mxu0  ;;  %v7829_v54 = vpop.f32.mrf.mxu1 }
 0xfd8   :  { %v8403_v43 = vcombine.low %v7737_v0, %v7829_v54  ;;  %v8404_v46 = vcombine.high %v7737_v0, %v7829_v54 }
 0xfd9   :  { %v10378_v14 = vpop.f32.mrf.mxu0  ;;  %v10383_v52 = vpop.f32.mrf.mxu1 }
 0xfda   :  { %v8411_v40 = vrot.slane %v8403_v43, %v11037_v19  ;;  %v8418_v47 = vrot.slane %v8404_v46, %v11037_v19 }
 0xfdb   :  { %v7832_v25 = vpop.f32.mrf.mxu1 }
 0xfdc   :  { %v8419_v4 = vcombine.low %v8395_v29, %v8411_v40  ;;  %v8420_v6 = vcombine.high %v8395_v29, %v8411_v40  ;;  %v8435_v35 = vcombine.low %v8402_v38, %v8418_v47  ;;  %v8436_v49 = vcombine.high %v8402_v38, %v8418_v47 }
 0xfdd   :  { %v10384_v48 = vpop.f32.mrf.mxu1  ;;  %v7875_v15 = vpop.f32.mrf.mxu0 }
 0xfde   :  { %v8427_v36 = vrot.slane %v8419_v4, %v11041_v28  ;;  %v8434_v20 = vrot.slane %v8420_v6, %v11041_v28  ;;  %v8443_v63 = vrot.slane %v8435_v35, %v11041_v28  ;;  %v8450_v12 = vrot.slane %v8436_v49, %v11041_v28 }
 0xfdf   :  { %v10389_v42 = vpop.f32.mrf.mxu0 }
 0xfe0   :  { %v8659_v33 = vcombine.low %v8427_v36, %v8434_v20  ;;  %v9791_v62 = vcombine.high %v8427_v36, %v8434_v20  ;;  %v8675_v55 = vcombine.low %v8443_v63, %v8450_v12  ;;  %v9792_v53 = vcombine.high %v8443_v63, %v8450_v12 }
 0xfe1   :  { %v7878_v30 = vpop.f32.mrf.mxu0  ;;  %v7921_v22 = vpop.f32.mrf.mxu1 }
 0xfe2   :  { %v8666_v31 = vrot.slane %v8659_v33, %v11037_v19  ;;  %v8674_v26 = vrot.slane %v9791_v62, %v11037_v19  ;;  %v8682_v9 = vrot.slane %v8675_v55, %v11037_v19  ;;  %v8690_v50 = vrot.slane %v9792_v53, %v11037_v19 }
 0xfe3   :  { %v10390_v57 = vpop.f32.mrf.mxu0  ;;  %v10395_v10 = vpop.f32.mrf.mxu1 }
 0xfe4   :  { %v8691_v32 = vcombine.low %v8666_v31, %v8674_v26  ;;  %v8707_v34 = vcombine.low %v8682_v9, %v8690_v50  ;;  %v8692_v58 = vcombine.high %v8666_v31, %v8674_v26  ;;  %v8708_v51 = vcombine.high %v8682_v9, %v8690_v50 }
 0xfe5   :  { %v7924_v41 = vpop.f32.mrf.mxu1 }
 0xfe6   :  { %v13072_v37 = vrot.slane %v8691_v32, %v11041_v28  ;;  %v13075_v3 = vrot.slane %v8707_v34, %v11041_v28  ;;  %v13078_v61 = vrot.slane %v8692_v58, %v11041_v28  ;;  %v13081_v1 = vrot.slane %v8708_v51, %v11041_v28 }
 0xfe7   :  { %v10396_v16 = vpop.f32.mrf.mxu1 }
 0xfe8   :  { %v8724_v59 = vcombine.high %v13072_v37, %v13075_v3  ;;  %v8725_v21 = vcombine.low %v13078_v61, %v13081_v1  ;;  %v8726_v11 = vcombine.high %v13078_v61, %v13081_v1  ;;  %v8723_v39 = vcombine.low %v13072_v37, %v13075_v3  ;;  %v10585_v37 = vld [vmem:[%s13381_s29 + $0x10] sm:$0xff]  }
 0xfe9   :  { %v8013_v7 = vpop.f32.mrf.mxu1 }
 0xfea   :  { %v7967_v24 = vpop.f32.mrf.mxu0  ;;  %v8471_v56 = vcombine.low %v7921_v22, %v8013_v7  ;;  %v8472_v60 = vcombine.high %v7921_v22, %v8013_v7 }
 0xfeb   :  { %v8455_v0 = vcombine.low %v7875_v15, %v7967_v24  ;;  %v8456_v27 = vcombine.high %v7875_v15, %v7967_v24  ;;  %v10407_v17 = vpop.f32.mrf.mxu1 }
 0xfec   :  { %v10401_v18 = vpop.f32.mrf.mxu0  ;;  %v8479_v44 = vrot.slane %v8471_v56, %v11037_v19  ;;  %v8486_v23 = vrot.slane %v8472_v60, %v11037_v19 }
 0xfed   :  { %v8463_v45 = vrot.slane %v8455_v0, %v11037_v19  ;;  %v8470_v2 = vrot.slane %v8456_v27, %v11037_v19  ;;  %v8016_v43 = vpop.f32.mrf.mxu1 }
 0xfee   :  { %v7970_v54 = vpop.f32.mrf.mxu0 }
 0xfef   :  { %v8487_v46 = vcombine.low %v8463_v45, %v8479_v44  ;;  %v8488_v14 = vcombine.high %v8463_v45, %v8479_v44  ;;  %v8503_v52 = vcombine.low %v8470_v2, %v8486_v23  ;;  %v8504_v29 = vcombine.high %v8470_v2, %v8486_v23  ;;  %v10408_v40 = vpop.f32.mrf.mxu1 }
 0xff0   :  { %v10402_v38 = vpop.f32.mrf.mxu0 }
 0xff1   :  { %v8495_v47 = vrot.slane %v8487_v46, %v11041_v28  ;;  %v8502_v25 = vrot.slane %v8488_v14, %v11041_v28  ;;  %v8511_v4 = vrot.slane %v8503_v52, %v11041_v28  ;;  %v8518_v6 = vrot.slane %v8504_v29, %v11041_v28 }
 0xff2   :  { %v8059_v35 = vpop.f32.mrf.mxu0 }
 0xff3   :  { %v8727_v49 = vcombine.low %v8495_v47, %v8502_v25  ;;  %v9793_v48 = vcombine.high %v8495_v47, %v8502_v25  ;;  %v8743_v36 = vcombine.low %v8511_v4, %v8518_v6  ;;  %v9794_v20 = vcombine.high %v8511_v4, %v8518_v6 }
 0xff4   :  { %v10413_v63 = vpop.f32.mrf.mxu0 }
 0xff5   :  { %v8734_v12 = vrot.slane %v8727_v49, %v11037_v19  ;;  %v8742_v15 = vrot.slane %v9793_v48, %v11037_v19  ;;  %v8750_v33 = vrot.slane %v8743_v36, %v11037_v19  ;;  %v8758_v62 = vrot.slane %v9794_v20, %v11037_v19  ;;  %v8105_v53 = vpop.f32.mrf.mxu1 }
 0xff6   :  { %v8062_v55 = vpop.f32.mrf.mxu0 }
 0xff7   :  { %v8759_v42 = vcombine.low %v8734_v12, %v8742_v15  ;;  %v8775_v31 = vcombine.low %v8750_v33, %v8758_v62  ;;  %v8760_v26 = vcombine.high %v8734_v12, %v8742_v15  ;;  %v8776_v9 = vcombine.high %v8750_v33, %v8758_v62  ;;  %v10419_v30 = vpop.f32.mrf.mxu1 }
 0xff8   :  { %v10414_v50 = vpop.f32.mrf.mxu0 }
 0xff9   :  { %v13104_v22 = vrot.slane %v8759_v42, %v11041_v28  ;;  %v13107_v57 = vrot.slane %v8775_v31, %v11041_v28  ;;  %v13110_v10 = vrot.slane %v8760_v26, %v11041_v28  ;;  %v13113_v32 = vrot.slane %v8776_v9, %v11041_v28  ;;  %v8108_v34 = vpop.f32.mrf.mxu1 }
 0xffb   :  { %v8792_v58 = vcombine.high %v13104_v22, %v13107_v57  ;;  %v8791_v51 = vcombine.low %v13104_v22, %v13107_v57  ;;  %v8794_v41 = vcombine.high %v13110_v10, %v13113_v32  ;;  %v10420_v24 = vpop.f32.mrf.mxu1  ;;  %v8793_v0 = vcombine.low %v13110_v10, %v13113_v32 }
 0xffc   :  { %v8151_v16 = vpop.f32.mrf.mxu0 }
 0xffd   :  { %8937 = vrot.lane.b32.xlu1 %v8792_v58, %s13389_s26  ;;  %v8523_v60 = vcombine.low %v8059_v35, %v8151_v16  ;;  %v8524_v18 = vcombine.high %v8059_v35, %v8151_v16 }
 0xffe   :  { %v10425_v7 = vpop.f32.mrf.mxu0 }
 0xfff   :  { %v8531_v23 = vrot.slane %v8523_v60, %v11037_v19  ;;  %v8538_v54 = vrot.slane %v8524_v18, %v11037_v19 }
0x1000   :  { %v8154_v27 = vpop.f32.mrf.mxu0 }
0x1001   :  { %8953 = vrot.lane.b32.xlu1 %v8793_v0, %s13390_s25 }
0x1002   :  { %v10426_v56 = vpop.f32.mrf.mxu0 }
0x102b   :  { %v8197_v17 = vpop.f32.mrf.mxu1 }
0x102c   :  { %v8539_v45 = vcombine.low %v8105_v53, %v8197_v17  ;;  %v8540_v2 = vcombine.high %v8105_v53, %v8197_v17 }
0x102d   :  { %v10431_v44 = vpop.f32.mrf.mxu1 }
0x102e   :  { %v8547_v43 = vrot.slane %v8539_v45, %v11037_v19  ;;  %v8554_v46 = vrot.slane %v8540_v2, %v11037_v19 }
0x102f   :  { %v8200_v14 = vpop.f32.mrf.mxu1 }
0x1030   :  { %v8555_v52 = vcombine.low %v8531_v23, %v8547_v43  ;;  %v8556_v29 = vcombine.high %v8531_v23, %v8547_v43  ;;  %v8571_v38 = vcombine.low %v8538_v54, %v8554_v46  ;;  %v8572_v40 = vcombine.high %v8538_v54, %v8554_v46 }
0x1031   :  { %v10432_v47 = vpop.f32.mrf.mxu1 }
0x1032   :  { %v8563_v25 = vrot.slane %v8555_v52, %v11041_v28  ;;  %v8570_v4 = vrot.slane %v8556_v29, %v11041_v28  ;;  %v8579_v6 = vrot.slane %v8571_v38, %v11041_v28  ;;  %v8586_v35 = vrot.slane %v8572_v40, %v11041_v28 }
0x1034   :  { %v8795_v49 = vcombine.low %v8563_v25, %v8570_v4  ;;  %v9795_v48 = vcombine.high %v8563_v25, %v8570_v4  ;;  %v8811_v36 = vcombine.low %v8579_v6, %v8586_v35  ;;  %v9796_v20 = vcombine.high %v8579_v6, %v8586_v35 }
0x1036   :  { %v8802_v63 = vrot.slane %v8795_v49, %v11037_v19  ;;  %v8810_v12 = vrot.slane %v9795_v48, %v11037_v19  ;;  %v8818_v15 = vrot.slane %v8811_v36, %v11037_v19  ;;  %v8826_v33 = vrot.slane %v9796_v20, %v11037_v19 }
0x1038   :  { %v8827_v62 = vcombine.low %v8802_v63, %v8810_v12  ;;  %v8843_v55 = vcombine.low %v8818_v15, %v8826_v33  ;;  %v8828_v53 = vcombine.high %v8802_v63, %v8810_v12  ;;  %v8844_v42 = vcombine.high %v8818_v15, %v8826_v33 }
0x103a   :  { %v13138_v31 = vrot.slane %v8827_v62, %v11041_v28  ;;  %v13141_v26 = vrot.slane %v8843_v55, %v11041_v28  ;;  %v8842_v50 = vrot.slane %v8828_v53, %v11041_v28  ;;  %v8858_v30 = vrot.slane %v8844_v42, %v11041_v28 }
0x103c   :  { %v8860_v9 = vcombine.high %v13138_v31, %v13141_v26  ;;  %v8859_v34 = vcombine.low %v13138_v31, %v13141_v26  ;;  %v8861_v24 = vcombine.low %v8842_v50, %v8858_v30  ;;  %v8862_v60 = vcombine.high %v8842_v50, %v8858_v30 }
0x103e   :  { %8939 = vrot.lane.b32.xlu0 %v8860_v9, %s13389_s26 }
0x1040   :  { %v8243_v58 = vpop.f32.mrf.mxu0  ;;  %v8289_v16 = vpop.f32.mrf.mxu1 }
0x1042   :  { %v10437_v7 = vpop.f32.mrf.mxu0  ;;  %v10443_v0 = vpop.f32.mrf.mxu1  ;;  %8955 = vrot.lane.b32.xlu0 %v8861_v24, %s13390_s25 }
0x1044   :  { %v8246_v27 = vpop.f32.mrf.mxu0  ;;  %v8292_v56 = vpop.f32.mrf.mxu1 }
0x1046   :  { %v10438_v18 = vpop.f32.mrf.mxu0  ;;  %v10444_v17 = vpop.f32.mrf.mxu1  ;;  %8971 = vrot.lane.b32.xlu0 %v8862_v60, %s13391_s30 }
0x1068   :  { %v8381_v45 = vpop.f32.mrf.mxu1 }
0x1069   :  { %v8607_v2 = vcombine.low %v8289_v16, %v8381_v45  ;;  %v8608_v44 = vcombine.high %v8289_v16, %v8381_v45 }
0x106a   :  { %v8335_v23 = vpop.f32.mrf.mxu0  ;;  %v10455_v54 = vpop.f32.mrf.mxu1 }
0x106b   :  { %v8591_v43 = vcombine.low %v8243_v58, %v8335_v23  ;;  %v8592_v46 = vcombine.high %v8243_v58, %v8335_v23  ;;  %v8615_v14 = vrot.slane %v8607_v2, %v11037_v19  ;;  %v8622_v52 = vrot.slane %v8608_v44, %v11037_v19 }
0x106c   :  { %v10449_v29 = vpop.f32.mrf.mxu0  ;;  %v8384_v38 = vpop.f32.mrf.mxu1  ;;  %v184_v2 = vmul.u32 8, %v11034_v13 }
0x106d   :  { %v8599_v40 = vrot.slane %v8591_v43, %v11037_v19  ;;  %v8606_v47 = vrot.slane %v8592_v46, %v11037_v19 }
0x106e   :  { %v8338_v25 = vpop.f32.mrf.mxu0  ;;  %v10456_v4 = vpop.f32.mrf.mxu1 }
0x106f   :  { %v8623_v6 = vcombine.low %v8599_v40, %v8615_v14  ;;  %v8624_v35 = vcombine.high %v8599_v40, %v8615_v14  ;;  %v8639_v49 = vcombine.low %v8606_v47, %v8622_v52  ;;  %v8640_v48 = vcombine.high %v8606_v47, %v8622_v52  ;;  %v8938_v13 = vpop.permute.xlu1 %8937 }
0x1070   :  { %v10450_v36 = vpop.f32.mrf.mxu0 }
0x1071   :  { %v8631_v20 = vrot.slane %v8623_v6, %v11041_v28  ;;  %v8638_v63 = vrot.slane %v8624_v35, %v11041_v28  ;;  %v8647_v12 = vrot.slane %v8639_v49, %v11041_v28  ;;  %v8654_v15 = vrot.slane %v8640_v48, %v11041_v28  ;;  %v9806_v6 = vld [vmem:[%s13328_s7 + $0x1] ss:$0 sm:$0xff] }
0x1073   :  { %v8863_v33 = vcombine.low %v8631_v20, %v8638_v63  ;;  %v9797_v62 = vcombine.high %v8631_v20, %v8638_v63  ;;  %v8879_v55 = vcombine.low %v8647_v12, %v8654_v15  ;;  %v9798_v53 = vcombine.high %v8647_v12, %v8654_v15  ;;  %v8954_v23 = vpop.permute.xlu1 %8953 }
0x1075   :  { %v8870_v42 = vrot.slane %v8863_v33, %v11037_v19  ;;  %v8878_v9 = vrot.slane %v9797_v62, %v11037_v19  ;;  %v8886_v50 = vrot.slane %v8879_v55, %v11037_v19  ;;  %v8894_v30 = vrot.slane %v9798_v53, %v11037_v19 }
0x1076   :  { %v183_v19 = vand.u32 127, %v159_v8 }
0x1077   :  { %v8896_v58 = vcombine.high %v8870_v42, %v8878_v9  ;;  %v8912_v16 = vcombine.high %v8886_v50, %v8894_v30  ;;  %v8895_v24 = vcombine.low %v8870_v42, %v8878_v9  ;;  %v8911_v7 = vcombine.low %v8886_v50, %v8894_v30  ;;  %v10586_v42 = vld [vmem:[%s13329_s10 + $0x18] sm:$0xff]   ;;  %v10587_v9 = vld [vmem:[%s13329_s10 + $0x10] sm:$0xff]  }
0x1078   :  { %vm185_vm7 = vcmp.eq.s32.totalorder %v183_v19, %v184_v2  ;;  %v10591_v19 = vld [vmem:[%s13332_s12 + $0x20] sm:$0xff]  }
0x1079   :  { %v8910_v0 = vrot.slane %v8896_v58, %v11041_v28  ;;  %v8926_v27 = vrot.slane %v8912_v16, %v11041_v28  ;;  %v8903_v56 = vrot.slane %v8895_v24, %v11041_v28  ;;  %v8919_v60 = vrot.slane %v8911_v7, %v11041_v28  ;;  %v9812_v24 = vld [vmem:[%s13330_s8 + $0x1] ss:$0 sm:$0xff] }
0x107a   :  { %v9602_v28 = vsel %vm185_vm7, 1.0, %v10771_v5  ;;  %v9819_v2 = vld [vmem:[%s13333_s11 + $0x1] ss:$0 sm:$0xff] }
0x107b   :  { %v8929_v18 = vcombine.low %v8910_v0, %v8926_v27  ;;  %v8928_v17 = vcombine.high %v8903_v56, %v8919_v60  ;;  %v8927_v45 = vcombine.low %v8903_v56, %v8919_v60  ;;  %v8930_v44 = vcombine.high %v8910_v0, %v8926_v27  ;;  %10477 = vmatmul.mubr.msk.f32.vlgmr.msra.gmra.mxu1 %vm78_vm0, %v9602_v28  ;;  %v9813_v0 = vld [vmem:[%s13331_s9 + $0x1] ss:$0 sm:$0xff] }
0x107c   :  { %10491 = vmatprep.mubr.msk.bf16.mxu1 %vm10772_vm1, %v10771_v5  ;;  %10488 = vmatpush3.bf16.msra.mxu1 %v10586_v42 }
0x107d   :  { %8957 = vrot.lane.b32.xlu1 %v8929_v18, %s13390_s25  ;;  %8941 = vrot.lane.b32.xlu0 %v8928_v17, %s13389_s26  ;;  %v10588_v18 = vld [vmem:[%s13332_s12 + $0x38] sm:$0xff]   ;;  %v10589_v17 = vld [vmem:[%s13332_s12 + $0x30] sm:$0xff]  }
0x107e   :  { %10489 = vmatprep.subr.bf16.mxu1 %v10771_v5 }
0x1080   :  { %10490 = vmatpush3.bf16.msra.mxu1 %v10587_v9 }
0x1081   :  { %8973 = vrot.lane.b32.xlu1 %v8930_v44, %s13391_s30  ;;  %8935 = vrot.lane.b32.xlu0 %v8724_v59, %s13389_s26 }
0x1082   :  { %10507 = vmatprep.subr.bf16.mxu1 %v10771_v5 }
0x1085   :  { %8969 = vrot.lane.b32.xlu1 %v8794_v41, %s13391_s30  ;;  %8951 = vrot.lane.b32.xlu0 %v8725_v21, %s13390_s25 }
0x1089   :  { %8967 = vrot.lane.b32.xlu1 %v8726_v11, %s13391_s30  ;;  %v8980_v11 = vsel %vm2088_vm2, %v8791_v51, %v8938_v13 }
0x108a   :  { %v8984_v29 = vsel %vm4366_vm4, %v8980_v11, %v8954_v23 }
0x10b0   :  { %v8940_v8 = vpop.permute.xlu0 %8939 }
0x10b1   :  { %v8981_v21 = vsel %vm2088_vm2, %v8859_v34, %v8940_v8  ;;  %v10584_v34 = vld [vmem:[%s13381_s29 + $0x18] sm:$0xff]  }
0x10b4   :  { %v8956_v59 = vpop.permute.xlu0 %8955 }
0x10b5   :  { %v8985_v1 = vsel %vm4366_vm4, %v8981_v21, %v8956_v59 }
0x10b8   :  { %v8972_v54 = vpop.permute.xlu0 %8971 }
0x10b9   :  { %v8989_v52 = vsel %vm4371_vm5, %v8985_v1, %v8972_v54  ;;  %v9832_v1 = vld [vmem:[%s13334_s13 + $0x1] ss:$0 sm:$0xff] }
0x10ef   :  { %v8958_v43 = vpop.permute.xlu1 %8957  ;;  %v8942_v46 = vpop.permute.xlu0 %8941 }
0x10f0   :  { %v8982_v10 = vsel %vm2088_vm2, %v8927_v45, %v8942_v46  ;;  %v10590_v45 = vld [vmem:[%s13332_s12 + $0x28] sm:$0xff]  }
0x10f1   :  { %v8986_v41 = vsel %vm4366_vm4, %v8982_v10, %v8958_v43 }
0x10f3   :  { %v8974_v32 = vpop.permute.xlu1 %8973  ;;  %v8936_v14 = vpop.permute.xlu0 %8935 }
0x10f4   :  { %v8990_v61 = vsel %vm4371_vm5, %v8986_v41, %v8974_v32  ;;  %v8979_v22 = vsel %vm2088_vm2, %v8723_v39, %v8936_v14 }
0x10f5   :  { %10458 = vmatpush3.msra.mxu0 %v8990_v61 }
0x10f6   :  { %10459 = vmatprep.subr.mxu0 %v10771_v5 }
0x10f7   :  { %v8970_v38 = vpop.permute.xlu1 %8969  ;;  %10460 = vmatpush3.msra.mxu0 %v8989_v52  ;;  %v8952_v26 = vpop.permute.xlu0 %8951 }
0x10f8   :  { %v8988_v31 = vsel %vm4371_vm5, %v8984_v29, %v8970_v38  ;;  %10461 = vmatprep.subr.mxu0 %v10771_v5  ;;  %v8983_v57 = vsel %vm4366_vm4, %v8979_v22, %v8952_v26 }
0x10f9   :  { %10462 = vmatpush3.msra.mxu0 %v8988_v31 }
0x10fa   :  { %10463 = vmatprep.subr.mxu0 %v10771_v5 }
0x10fb   :  { %v8968_v51 = vpop.permute.xlu1 %8967 }
0x10fc   :  { %v8987_v40 = vsel %vm4371_vm5, %v8983_v57, %v8968_v51 }
0x10fd   :  { %10464 = vmatpush3.msra.mxu0 %v8987_v40 }
0x10fe   :  { %10466 = vmatmul.mubr.msk.f32.vlgmr.msra.gmra.mxu0 %vm78_vm0, %v9602_v28  ;;  %10479 = vmatprep.subr.bf16.mxu0 %v10771_v5 }
0x10ff   :  { %10480 = vmatpush3.bf16.msra.mxu0 %v10584_v34  ;;  %10483 = vmatprep.mubr.msk.bf16.mxu0 %vm10772_vm1, %v10771_v5 }
0x1100   :  { %10481 = vmatprep.subr.bf16.mxu0 %v10771_v5 }
0x1103   :  { %10482 = vmatpush3.bf16.msra.mxu0 %v10585_v37 }
0x1104   :  { %10495 = vmatprep.subr.bf16.mxu0 %v10771_v5 }
0x113b   :  { %v9130_v25 = vpop.f32.mrf.mxu1 }
0x113d   :  { %v10478_v4 = vpop.f32.mrf.mxu1 }
0x11be   :  { %v9060_v3 = vpop.f32.mrf.mxu0 }
0x11bf   :  { %v9134_v39 = vpack.c.bf16 %v9060_v3, %v9060_v3  ;;  %v10592_v3 = vld [vmem:[%s13337_s16 + $0x8] sm:$0xff]  }
0x11c0   :  { %v10467_v47 = vpop.f32.mrf.mxu0 }
0x11c1   :  { %10484 = vmatmul.mubr.msk.bf16.vlgmr.msra.gmra.mxu0 %vm78_vm0, %v9134_v39  ;;  %v10593_v39 = vld [vmem:[%s13337_s16] sm:$0xff]  }
0x11c2   :  { %10503 = vmatprep.mubr.msk.bf16.mxu0 %vm10772_vm1, %v10771_v5  ;;  %10496 = vmatpush3.bf16.msra.mxu0 %v10588_v18  ;;  %v9846_v18 = vld [vmem:[%s13340_s18] ss:$0 sm:$0xff] }
0x11c3   :  { %10497 = vmatprep.subr.bf16.mxu0 %v10771_v5 }
0x11c6   :  { %10498 = vmatpush3.bf16.msra.mxu0 %v10589_v17 }
0x11c7   :  { %10499 = vmatprep.subr.bf16.mxu0 %v10771_v5 }
0x11ca   :  { %10500 = vmatpush3.bf16.msra.mxu0 %v10590_v45  ;;  %v9847_v45 = vld [vmem:[%s13341_s19] ss:$0 sm:$0xff] }
0x11cb   :  { %10501 = vmatprep.subr.bf16.mxu0 %v10771_v5 }
0x11ce   :  { %10502 = vmatpush3.bf16.msra.mxu0 %v10591_v19 }
0x1281   :  { %v9197_v35 = vpop.f32.mrf.mxu0 }
0x1282   :  { %v9198_v49 = vadd.f32 %v9806_v6, %v9197_v35  ;;  %v9840_v35 = vld [vmem:[%s13335_s14 + $0x1] ss:$0 sm:$0xff] }
0x1283   :  { %v10485_v48 = vpop.f32.mrf.mxu0 }
0x1284   :  { %v9203_v36 = vadd.f32 %v9198_v49, %v9130_v25  ;;  %v9841_v48 = vld [vmem:[%s13336_s15 + $0x1] ss:$0 sm:$0xff] }
0x1285   :  { %v9200_v20 = vpop.f32.mrf.mxu0 }
0x1286   :  { %v9209_v63 = vsel %vm9208_vm8, %v9203_v36, 0.0 }
0x1287   :  { %9210 = vadd.xlane.f32.xlu0 %v9209_v63  ;;  %v10486_v12 = vpop.f32.mrf.mxu0 }
0x1288   :  { %v9842_v12 = vld [vmem:[%s13338_s17] ss:$0 sm:$0xff] }
0x1310   :  { %v9211_v15 = vpop.xlane.xlu0 %9210 }
0x1311   :  { %v9212_v33 = vmul.f32 0.03125, %v9211_v15 }
0x1313   :  { %v9213_v62 = vsub.f32 %v9203_v36, %v9212_v33 }
0x1315   :  { %v9214_v55 = vmul.f32 %v9213_v62, %v9213_v62 }
0x1317   :  { %v9215_v53 = vsel %vm9208_vm8, %v9214_v55, 0.0 }
0x1318   :  { %9216 = vadd.xlane.f32.xlu1 %v9215_v53 }
0x13a1   :  { %v9217_v50 = vpop.xlane.xlu1 %9216 }
0x13a2   :  { %v9218_v30 = vmul.f32 0.03125, %v9217_v50 }
0x13a4   :  { %v9219_v58 = vadd.f32 1e-12, %v9218_v30 }
0x13a6   :  { %10756 = vrsqrt.f32 %v9219_v58 }
0x13b3   :  { %v10757_v16 = vpop.eup %10756 }
0x13b4   :  { %v9221_v7 = vmul.f32 %v10757_v16, %v9213_v62 }
0x13b6   :  { %v9228_v27 = vmul.f32 %v9812_v24, %v9221_v7  ;;  %v10594_v24 = vld [vmem:[%s13339_s20 + $0x8] sm:$0xff]   ;;  %v10595_v7 = vld [vmem:[%s13339_s20] sm:$0xff]  }
0x13b8   :  { %v9235_v56 = vadd.f32 %v9813_v0, %v9228_v27 }
0x13ba   :  { %v9236_v60 = vpack.c.bf16 %v9235_v56, %v9235_v56 }
0x13bc   :  { %10492 = vmatmul.mubr.msk.bf16.vlgmr.msra.gmra.mxu1 %vm78_vm0, %v9236_v60 }
0x13bd   :  { %10511 = vmatprep.mubr.msk.bf16.mxu1 %vm10772_vm1, %v10771_v5  ;;  %10508 = vmatpush3.bf16.msra.mxu1 %v10592_v3 }
0x13be   :  { %10509 = vmatprep.subr.bf16.mxu1 %v10771_v5 }
0x13c1   :  { %10510 = vmatpush3.bf16.msra.mxu1 %v10593_v39 }
0x13c2   :  { %10515 = vmatprep.subr.bf16.mxu1 %v10771_v5 }
0x147c   :  { %v9299_v44 = vpop.f32.mrf.mxu1 }
0x147d   :  { %v9300_v28 = vadd.f32 %v9819_v2, %v9299_v44 }
0x147e   :  { %v10493_v8 = vpop.f32.mrf.mxu1 }
0x147f   :  { %v9305_v13 = vmul.f32 %v9300_v28, %v9300_v28 }
0x1480   :  { %v9302_v59 = vpop.f32.mrf.mxu1 }
0x1481   :  { %v9306_v23 = vmul.f32 %v9305_v13, %v9300_v28 }
0x1482   :  { %v10494_v54 = vpop.f32.mrf.mxu1 }
0x1483   :  { %v9307_v43 = vmul.f32 0.044715, %v9306_v23 }
0x1485   :  { %v9308_v46 = vadd.f32 %v9307_v43, %v9300_v28 }
0x1487   :  { %v9309_v10 = vmul.f32 0.7978846, %v9308_v46 }
0x1489   :  { %10758 = vtanh.f32 %v9309_v10 }
0x1496   :  { %v10759_v32 = vpop.eup %10758 }
0x1497   :  { %v9311_v41 = vadd.f32 1.0, %v10759_v32 }
0x1499   :  { %v9312_v14 = vmul.f32 0.5, %v9311_v41 }
0x149b   :  { %v9313_v21 = vmul.f32 %v9312_v14, %v9300_v28 }
0x149d   :  { %v9314_v61 = vpack.c.bf16 %v9313_v21, %v9313_v21 }
0x149f   :  { %10504 = vmatmul.mubr.msk.bf16.vlgmr.msra.gmra.mxu0 %vm4691_vm6, %v9314_v61 }
0x155f   :  { %v9393_v11 = vpop.f32.mrf.mxu0 }
0x1560   :  { %v9394_v52 = vadd.f32 %v9832_v1, %v9393_v11 }
0x1561   :  { %v10505_v29 = vpop.f32.mrf.mxu0 }
0x1562   :  { %v9399_v38 = vadd.f32 %v9394_v52, %v9235_v56 }
0x1563   :  { %v9396_v31 = vpop.f32.mrf.mxu0 }
0x1564   :  { %v9404_v26 = vsel %vm9208_vm8, %v9399_v38, 0.0 }
0x1565   :  { %9405 = vadd.xlane.f32.xlu0 %v9404_v26  ;;  %v10506_v22 = vpop.f32.mrf.mxu0 }
0x15ee   :  { %v9406_v57 = vpop.xlane.xlu0 %9405 }
0x15ef   :  { %v9407_v51 = vmul.f32 0.03125, %v9406_v57 }
0x15f1   :  { %v9408_v34 = vsub.f32 %v9399_v38, %v9407_v51 }
0x15f3   :  { %v9409_v40 = vmul.f32 %v9408_v34, %v9408_v34 }
0x15f5   :  { %v9410_v37 = vsel %vm9208_vm8, %v9409_v40, 0.0 }
0x15f6   :  { %9411 = vadd.xlane.f32.xlu0 %v9410_v37 }
0x167f   :  { %v9412_v47 = vpop.xlane.xlu0 %9411 }
0x1680   :  { %v9413_v25 = vmul.f32 0.03125, %v9412_v47 }
0x1682   :  { %v9414_v4 = vadd.f32 1e-12, %v9413_v25 }
0x1684   :  { %10760 = vrsqrt.f32 %v9414_v4 }
0x1691   :  { %v10761_v6 = vpop.eup %10760 }
0x1692   :  { %v9416_v49 = vmul.f32 %v10761_v6, %v9408_v34 }
0x1694   :  { %v9423_v36 = vmul.f32 %v9840_v35, %v9416_v49 }
0x1696   :  { %v9430_v20 = vadd.f32 %v9841_v48, %v9423_v36 }
0x1698   :  { %v9431_v63 = vpack.c.bf16 %v9430_v20, %v9430_v20 }
0x169a   :  { %10512 = vmatmul.mubr.msk.bf16.vlgmr.msra.gmra.mxu1 %vm78_vm0, %v9431_v63 }
0x169b   :  { %10519 = vmatprep.mubr.msk.bf16.mxu1 %vm10772_vm1, %v10771_v5  ;;  %10516 = vmatpush3.bf16.msra.mxu1 %v10594_v24 }
0x169c   :  { %10517 = vmatprep.subr.bf16.mxu1 %v10771_v5  ;;  %v9848_v5 = vld [vmem:[%s13342_s21] ss:$0 sm:$0xff] }
0x169f   :  { %10518 = vmatpush3.bf16.msra.mxu1 %v10595_v7 }
0x175a   :  { %v9492_v15 = vpop.f32.mrf.mxu1 }
0x175b   :  { %v9493_v33 = vadd.f32 %v9842_v12, %v9492_v15 }
0x175c   :  { %v10513_v62 = vpop.f32.mrf.mxu1 }
0x175d   :  { %v9500_v55 = vsel %vm9208_vm8, %v9493_v33, 0.0 }
0x175e   :  { %9501 = vadd.xlane.f32.xlu0 %v9500_v55  ;;  %v9495_v53 = vpop.f32.mrf.mxu1 }
0x1760   :  { %v10514_v42 = vpop.f32.mrf.mxu1 }
0x17e7   :  { %v9502_v9 = vpop.xlane.xlu0 %9501 }
0x17e8   :  { %v9503_v50 = vmul.f32 0.03125, %v9502_v9 }
0x17ea   :  { %v9504_v30 = vsub.f32 %v9493_v33, %v9503_v50 }
0x17ec   :  { %v9505_v58 = vmul.f32 %v9504_v30, %v9504_v30 }
0x17ee   :  { %v9506_v16 = vsel %vm9208_vm8, %v9505_v58, 0.0 }
0x17ef   :  { %9507 = vadd.xlane.f32.xlu1 %v9506_v16 }
0x1878   :  { %v9508_v0 = vpop.xlane.xlu1 %9507 }
0x1879   :  { %v9509_v27 = vmul.f32 0.03125, %v9508_v0 }
0x187b   :  { %v9510_v56 = vadd.f32 1e-05, %v9509_v27 }
0x187d   :  { %10762 = vrsqrt.f32 %v9510_v56 }
0x188a   :  { %v10763_v60 = vpop.eup %10762 }
0x188b   :  { %v9512_v17 = vmul.f32 %v10763_v60, %v9504_v30 }
0x188d   :  { %v9519_v19 = vmul.f32 %v9846_v18, %v9512_v17 }
0x188f   :  { %v9526_v2 = vadd.f32 %v9847_v45, %v9519_v19 }
0x1891   :  { %v9527_v44 = vmax.f32 %v9526_v2, 0.0 }
0x1893   :  { %v9528_v28 = vpack.c.bf16 %v9527_v44, %v9527_v44 }
0x1895   :  { %10520 = vmatmul.mubr.msk.bf16.vlgmr.msra.gmra.mxu1 %vm78_vm0, %v9528_v28 }
0x1955   :  { %v9589_v8 = vpop.f32.mrf.mxu1 }
0x1956   :  { %v9590_v13 = vadd.f32 %v9848_v5, %v9589_v8 }
0x1957   :  { %v10521_v59 = vpop.f32.mrf.mxu1 }
0x1958   :  { %9595 = vst.msk [vmem:[%s13343_s22] sm:$0xf] %vm9208_vm8, %v9590_v13 }
0x1959   :  { %v9592_v23 = vpop.f32.mrf.mxu1 }
0x195b   :  { %v10522_v54 = vpop.f32.mrf.mxu1 }

</bundles_post_ra>
